<compile_context>
chip_gen: v6e
topology: v6e:2x2x1
jax: 0.10.0
libtpu: 0.0.40
codegen_flags: <defaults>
</compile_context>

<pallas_src>
import jax
import jax.numpy as jnp
import numpy as np
from jax import lax
from jax.experimental import pallas as pl
from jax.experimental.pallas import tpu as pltpu


# -----------------------------------------------------------------------------
# Pallas kernel
# -----------------------------------------------------------------------------
def _mixed_up_kernel(xpad_ref, wnT_ref, wbT_ref, wcT_ref, biasT_ref, wdw_ref, o_ref):
    NB, HP, WP, C = xpad_ref.shape            # (nb, H+2, W+2, C) edge-padded block
    H, W = HP - 2, WP - 2
    R = NB * H * W
    f32 = jnp.float32

    def shift(dh, dw):                        # ref-level static slice -> direct load
        return xpad_ref[:, 1 + dh:1 + dh + H, 1 + dw:1 + dw + W, :]

    def flat(a):                              # (NB,H,W,C) -> (R,C)
        return a.reshape(R, C)

    # ---- shared loads / terms (CSE across the 4 parity planes) --------------
    x00 = flat(shift(0, 0))
    a_near = jnp.maximum(x00, 0.0)            # relu(x): nearest branch + convT center

    xm0 = flat(shift(-1, 0))
    x0m = flat(shift(0, -1))
    xmm = flat(shift(-1, -1))
    xmp = flat(shift(-1, 1))
    xpm = flat(shift(1, -1))
    xp0_4 = shift(1, 0)                       # down / right / down-right neighbors
    x0p_4 = shift(0, 1)                       # (needed clamped AND zero-padded)
    xpp_4 = shift(1, 1)
    xp0 = flat(xp0_4)
    x0p = flat(x0p_4)
    xpp = flat(xpp_4)

    # Bilinear tap products, computed once and reused across planes.
    t_x = 0.5625 * x00
    t_m0 = 0.1875 * xm0
    t_p0 = 0.1875 * xp0
    t_0m = 0.1875 * x0m
    t_0p = 0.1875 * x0p
    bil_ee = t_x + t_m0 + t_0m + 0.0625 * xmm
    bil_eo = t_x + t_m0 + t_0p + 0.0625 * xmp
    bil_oe = t_x + t_p0 + t_0m + 0.0625 * xpm
    bil_oo = t_x + t_p0 + t_0p + 0.0625 * xpp

    # Zero-pad shifts for the depthwise ConvTranspose branch: edge-clamped shift
    # with the last row / last column masked to zero (boundary iota masks).
    mask_w = (lax.broadcasted_iota(jnp.int32, (1, 1, W, 1), 2) < (W - 1)).astype(f32)
    mask_h = (lax.broadcasted_iota(jnp.int32, (1, H, 1, 1), 1) < (H - 1)).astype(f32)
    r01 = flat(jnp.maximum(x0p_4, 0.0) * mask_w)
    r10 = flat(jnp.maximum(xp0_4, 0.0) * mask_h)
    r11 = flat(jnp.maximum(xpp_4, 0.0) * (mask_h * mask_w))

    # Depthwise-convT taps: loaded + broadcast ONCE (hoisted above plane math).
    wdw = wdw_ref[...]                        # (9, 1, C), index = ky*3 + kx
    k00, k01, k02 = wdw[0], wdw[1], wdw[2]
    k10, k11, k12 = wdw[3], wdw[4], wdw[5]
    k20, k21, k22 = wdw[6], wdw[7], wdw[8]

    ct_ee = a_near * k11
    ct_eo = r01 * k10 + a_near * k12
    ct_oe = r10 * k01 + a_near * k21
    ct_oo = r11 * k00 + r10 * k02 + r01 * k20 + a_near * k22

    # ---- fuse the 4 parity planes along the matmul N dim (row concat, cheap),
    #      keep the 3 branches as separate matmuls (no lane concat of small C).
    bil_all = jnp.maximum(
        jnp.concatenate([bil_ee, bil_eo, bil_oe, bil_oo], axis=0), 0.0)      # (4R, C)
    ct_all = jnp.concatenate([ct_ee, ct_eo, ct_oe, ct_oo], axis=0)           # (4R, C)

    # 'oc,rc->or': lhs (OC,C) canonical, rhs contracted on its minor dim
    # (transpose_rhs) -> natively supported MXU pattern; result has pixels on
    # lanes so every store below is lane-dense.
    nt = (((1,), (1,)), ((), ()))
    y_near = lax.dot_general(wnT_ref[...], a_near, nt,
                             preferred_element_type=f32) + biasT_ref[...]    # (OC, R)
    y_bil = lax.dot_general(wbT_ref[...], bil_all, nt,
                            preferred_element_type=f32)                      # (OC, 4R)
    y_ct = lax.dot_general(wcT_ref[...], ct_all, nt,
                           preferred_element_type=f32)                       # (OC, 4R)
    y_planes = y_bil + y_ct

    # 128-aligned lane slices of the fused result (R % 128 == 0 by wrapper
    # construction) + the shared nearest-branch term; 4 dense (OC, R) stores.
    for p in range(4):
        o_ref[p, :, :] = y_planes[:, p * R:(p + 1) * R] + y_near


# -----------------------------------------------------------------------------
# Wrapper: layout transposes, single edge pad, arch-weight folding, block pick,
# parity-plane interleave (output comes back directly in NCHW order).
# -----------------------------------------------------------------------------
def _pick_images_per_step(N, H, W, C, OC, budget_bytes=10 * 1024 * 1024):
    # Rough per-image live footprint (f32): double-buffered in/out blocks plus
    # the ~14 (R,C)-class and (OC,*)-class intermediates.
    per_img = 4 * (2 * (H + 2) * (W + 2) * C
                   + 2 * 4 * H * W * OC
                   + H * W * (14 * C + 8 * OC))
    nb = 1
    for d in range(1, N + 1):
        if N % d == 0 and d * per_img <= budget_bytes and (N // d) >= min(2, N):
            nb = d
    # Lane-dense stores want a 128-multiple pixel count per block; otherwise
    # collapse to a single block (block dim == full dim, always legal).
    if (nb * H * W) % 128 != 0:
        nb = N
    return nb


def mixed_up_forward(x_nchw, arch_weights, params):
    x = jnp.transpose(x_nchw, (0, 2, 3, 1)).astype(jnp.float32)              # NHWC
    N, H, W, C = x.shape
    OC = params["wc0"].shape[1]
    w = arch_weights.astype(jnp.float32)

    # Fold arch weights into the 1x1 weights; pre-transpose to (OC, C) so the
    # kernel matmuls use the canonical transpose_rhs pattern.
    wnT = (w[0] * params["wc0"]).T                                           # (OC, C)
    wbT = (w[1] * params["wc1"]).T                                           # (OC, C)
    wcT = (w[2] * params["wc2"]).T                                           # (OC, C)
    biasT = (w[0] * params["b0"] + w[1] * params["b1"]).reshape(OC, 1)       # (OC, 1)
    wdw9 = jnp.transpose(params["wdw"], (1, 2, 0)).reshape(9, C)[:, None, :]  # (9,1,C)

    # Single edge-padded copy; all 9 shifted views are ref-sliced in-kernel.
    xpad = jnp.pad(x, ((0, 0), (1, 1), (1, 1), (0, 0)), mode="edge")         # (N,H+2,W+2,C)

    nb = _pick_images_per_step(N, H, W, C, OC)
    R = nb * H * W

    out = pl.pallas_call(
        _mixed_up_kernel,
        out_shape=jax.ShapeDtypeStruct((4, OC, N * H * W), jnp.float32),
        grid=(N // nb,),
        in_specs=[
            pl.BlockSpec((nb, H + 2, W + 2, C), lambda i: (i, 0, 0, 0)),
            pl.BlockSpec((OC, C), lambda i: (0, 0)),
            pl.BlockSpec((OC, C), lambda i: (0, 0)),
            pl.BlockSpec((OC, C), lambda i: (0, 0)),
            pl.BlockSpec((OC, 1), lambda i: (0, 0)),
            pl.BlockSpec((9, 1, C), lambda i: (0, 0, 0)),
        ],
        out_specs=pl.BlockSpec((4, OC, R), lambda i: (0, 0, i)),
        compiler_params=pltpu.CompilerParams(
            dimension_semantics=("parallel",),
            # 32 MiB is safe on every generation (v7x physical VMEM is 64 MiB);
            # on v6e this can be raised with larger image blocks.
            vmem_limit_bytes=32 * 1024 * 1024,
        ),
    )(xpad, wnT, wbT, wcT, biasT, wdw9)

    # (4, OC, N*H*W), plane p = 2*rh + rw  ->  (N, OC, 2H, 2W)  (already NCHW).
    out = out.reshape(2, 2, OC, N, H, W)
    out = jnp.transpose(out, (3, 2, 4, 0, 5, 1))
    return out.reshape(N, OC, 2 * H, 2 * W)


# -----------------------------------------------------------------------------
# Deterministic parameter init (shapes follow the PyTorch module)
# -----------------------------------------------------------------------------
def init_params(key, in_ch, out_ch):
    ks = jax.random.split(key, 6)
    wc0 = 0.1 * jax.random.normal(ks[0], (in_ch, out_ch), jnp.float32)   # Conv2d(in,out,1) W^T
    b0 = 0.1 * jax.random.normal(ks[1], (1, out_ch), jnp.float32)
    wc1 = 0.1 * jax.random.normal(ks[2], (in_ch, out_ch), jnp.float32)
    b1 = 0.1 * jax.random.normal(ks[3], (1, out_ch), jnp.float32)
    wdw = 0.1 * jax.random.normal(ks[4], (in_ch, 3, 3), jnp.float32)     # ConvT2d(in,in,3,g=in) weight[:,0]
    wc2 = 0.1 * jax.random.normal(ks[5], (in_ch, out_ch), jnp.float32)   # Conv2d(in,out,1,bias=False)
    return dict(wc0=wc0, b0=b0, wc1=wc1, b1=b1, wdw=wdw, wc2=wc2)


# -----------------------------------------------------------------------------
# Pure-JAX reference (mirrors PyTorch semantics) for validation
# -----------------------------------------------------------------------------
def _bilinear_up2(x):
    N, H, W, C = x.shape

    def coords(size):
        d = jnp.arange(2 * size, dtype=jnp.float32)
        src = jnp.maximum((d + 0.5) / 2.0 - 0.5, 0.0)
        i0 = jnp.floor(src).astype(jnp.int32)
        i1 = jnp.minimum(i0 + 1, size - 1)
        lam = src - i0.astype(jnp.float32)
        return i0, i1, lam

    h0, h1, lh = coords(H)
    w0, w1, lw = coords(W)
    xh0, xh1 = x[:, h0], x[:, h1]

    def iw(a):
        return (a[:, :, w0] * (1.0 - lw)[None, None, :, None]
                + a[:, :, w1] * lw[None, None, :, None])

    return (iw(xh0) * (1.0 - lh)[None, :, None, None]
            + iw(xh1) * lh[None, :, None, None])


def reference_forward(x_nchw, arch_w, params):
    x = jnp.transpose(x_nchw, (0, 2, 3, 1)).astype(jnp.float32)
    N, H, W, C = x.shape

    def conv1x1(a, w, b=None):
        y = jnp.einsum("nhwc,co->nhwo", a, w, precision=lax.Precision.HIGHEST)
        return y if b is None else y + b.reshape(1, 1, 1, -1)

    up_n = jnp.repeat(jnp.repeat(x, 2, axis=1), 2, axis=2)                 # nearest
    y0 = conv1x1(jax.nn.relu(up_n), params["wc0"], params["b0"])
    y1 = conv1x1(jax.nn.relu(_bilinear_up2(x)), params["wc1"], params["b1"])

    z = jax.nn.relu(x)                                                     # convT branch
    wdw = params["wdw"]                                                    # (C,3,3)
    w_flip = jnp.transpose(wdw[:, ::-1, ::-1], (1, 2, 0))[:, :, None, :]   # (3,3,1,C)
    ct = lax.conv_general_dilated(
        z, w_flip, window_strides=(1, 1), padding=((1, 2), (1, 2)),
        lhs_dilation=(2, 2), rhs_dilation=(1, 1),
        dimension_numbers=("NHWC", "HWIO", "NHWC"),
        feature_group_count=C)
    y2 = conv1x1(ct, params["wc2"])

    out = arch_w[0] * y0 + arch_w[1] * y1 + arch_w[2] * y2
    return jnp.transpose(out, (0, 3, 1, 2))


if __name__ == "__main__":
    key = jax.random.PRNGKey(0)
    kx, ka, kp = jax.random.split(key, 3)
    N, IN_CH, OUT_CH, H, W = 2, 4, 8, 16, 16

    x = jax.random.normal(kx, (N, IN_CH, H, W), jnp.float32)             # NCHW like PyTorch
    arch_w = jax.nn.softmax(jax.random.normal(ka, (3,), jnp.float32))    # mixing weights (3,)
    params = init_params(kp, IN_CH, OUT_CH)

    out = jax.jit(mixed_up_forward)(x, arch_w, params)
    out = jax.block_until_ready(out)
    assert out.shape == (N, OUT_CH, 2 * H, 2 * W)

    ref = jax.block_until_ready(reference_forward(x, arch_w, params))
    np.testing.assert_allclose(np.asarray(out), np.asarray(ref), rtol=5e-3, atol=5e-3)

    print("KERNEL_OK")
</pallas_src>

<mosaic_0001>
module attributes {stable_mosaic.version = 11 : i64} {
  func.func @_mixed_up_kernel(%arg0: i32, %arg1: memref<1x18x18x4xf32, #tpu.memory_space<vmem>>, %arg2: memref<8x4xf32, #tpu.memory_space<vmem>>, %arg3: memref<8x4xf32, #tpu.memory_space<vmem>>, %arg4: memref<8x4xf32, #tpu.memory_space<vmem>>, %arg5: memref<8x1xf32, #tpu.memory_space<vmem>>, %arg6: memref<9x1x4xf32, #tpu.memory_space<vmem>>, %arg7: memref<4x8x256xf32, #tpu.memory_space<vmem>>) attributes {dimension_semantics = [#tpu.dimension_semantics<parallel>], iteration_bounds = array<i64: 2>, scalar_prefetch = 0 : i64, scratch_operands = 0 : i64, tpu.core_type = #tpu.core_type<tc>, window_params = [{transform_indices = @transform_0, window_bounds = array<i64: 1, 18, 18, 4>}, {pipeline_mode = #tpu.pipeline_mode<synchronous>, transform_indices = @transform_1, window_bounds = array<i64: 8, 4>}, {pipeline_mode = #tpu.pipeline_mode<synchronous>, transform_indices = @transform_2, window_bounds = array<i64: 8, 4>}, {pipeline_mode = #tpu.pipeline_mode<synchronous>, transform_indices = @transform_3, window_bounds = array<i64: 8, 4>}, {pipeline_mode = #tpu.pipeline_mode<synchronous>, transform_indices = @transform_4, window_bounds = array<i64: 8, 1>}, {pipeline_mode = #tpu.pipeline_mode<synchronous>, transform_indices = @transform_5, window_bounds = array<i64: 9, 1, 4>}, {transform_indices = @transform_6, window_bounds = array<i64: 4, 8, 256>}]} {
    %c0 = arith.constant 0 : index
    %c1 = arith.constant 1 : index
    %c1_0 = arith.constant 1 : index
    %c0_1 = arith.constant 0 : index
    %0 = vector.load %arg1[%c0, %c1, %c1_0, %c0_1] : memref<1x18x18x4xf32, #tpu.memory_space<vmem>>, vector<1x16x16x4xf32>
    %1 = vector.shape_cast %0 : vector<1x16x16x4xf32> to vector<256x4xf32>
    %cst = arith.constant 0.000000e+00 : f32
    %2 = vector.broadcast %cst : f32 to vector<256x4xf32>
    %3 = arith.maximumf %1, %2 : vector<256x4xf32>
    %c0_2 = arith.constant 0 : index
    %c0_3 = arith.constant 0 : index
    %c1_4 = arith.constant 1 : index
    %c0_5 = arith.constant 0 : index
    %4 = vector.load %arg1[%c0_2, %c0_3, %c1_4, %c0_5] : memref<1x18x18x4xf32, #tpu.memory_space<vmem>>, vector<1x16x16x4xf32>
    %5 = vector.shape_cast %4 : vector<1x16x16x4xf32> to vector<256x4xf32>
    %c0_6 = arith.constant 0 : index
    %c1_7 = arith.constant 1 : index
    %c0_8 = arith.constant 0 : index
    %c0_9 = arith.constant 0 : index
    %6 = vector.load %arg1[%c0_6, %c1_7, %c0_8, %c0_9] : memref<1x18x18x4xf32, #tpu.memory_space<vmem>>, vector<1x16x16x4xf32>
    %7 = vector.shape_cast %6 : vector<1x16x16x4xf32> to vector<256x4xf32>
    %c0_10 = arith.constant 0 : index
    %c0_11 = arith.constant 0 : index
    %c0_12 = arith.constant 0 : index
    %c0_13 = arith.constant 0 : index
    %8 = vector.load %arg1[%c0_10, %c0_11, %c0_12, %c0_13] : memref<1x18x18x4xf32, #tpu.memory_space<vmem>>, vector<1x16x16x4xf32>
    %9 = vector.shape_cast %8 : vector<1x16x16x4xf32> to vector<256x4xf32>
    %c0_14 = arith.constant 0 : index
    %c0_15 = arith.constant 0 : index
    %c2 = arith.constant 2 : index
    %c0_16 = arith.constant 0 : index
    %10 = vector.load %arg1[%c0_14, %c0_15, %c2, %c0_16] : memref<1x18x18x4xf32, #tpu.memory_space<vmem>>, vector<1x16x16x4xf32>
    %11 = vector.shape_cast %10 : vector<1x16x16x4xf32> to vector<256x4xf32>
    %c0_17 = arith.constant 0 : index
    %c2_18 = arith.constant 2 : index
    %c0_19 = arith.constant 0 : index
    %c0_20 = arith.constant 0 : index
    %12 = vector.load %arg1[%c0_17, %c2_18, %c0_19, %c0_20] : memref<1x18x18x4xf32, #tpu.memory_space<vmem>>, vector<1x16x16x4xf32>
    %13 = vector.shape_cast %12 : vector<1x16x16x4xf32> to vector<256x4xf32>
    %c0_21 = arith.constant 0 : index
    %c2_22 = arith.constant 2 : index
    %c1_23 = arith.constant 1 : index
    %c0_24 = arith.constant 0 : index
    %14 = vector.load %arg1[%c0_21, %c2_22, %c1_23, %c0_24] : memref<1x18x18x4xf32, #tpu.memory_space<vmem>>, vector<1x16x16x4xf32>
    %c0_25 = arith.constant 0 : index
    %c1_26 = arith.constant 1 : index
    %c2_27 = arith.constant 2 : index
    %c0_28 = arith.constant 0 : index
    %15 = vector.load %arg1[%c0_25, %c1_26, %c2_27, %c0_28] : memref<1x18x18x4xf32, #tpu.memory_space<vmem>>, vector<1x16x16x4xf32>
    %c0_29 = arith.constant 0 : index
    %c2_30 = arith.constant 2 : index
    %c2_31 = arith.constant 2 : index
    %c0_32 = arith.constant 0 : index
    %16 = vector.load %arg1[%c0_29, %c2_30, %c2_31, %c0_32] : memref<1x18x18x4xf32, #tpu.memory_space<vmem>>, vector<1x16x16x4xf32>
    %17 = vector.shape_cast %14 : vector<1x16x16x4xf32> to vector<256x4xf32>
    %18 = vector.shape_cast %15 : vector<1x16x16x4xf32> to vector<256x4xf32>
    %19 = vector.shape_cast %16 : vector<1x16x16x4xf32> to vector<256x4xf32>
    %cst_33 = arith.constant 5.625000e-01 : f32
    %20 = vector.broadcast %cst_33 : f32 to vector<256x4xf32>
    %21 = arith.mulf %20, %1 : vector<256x4xf32>
    %cst_34 = arith.constant 1.875000e-01 : f32
    %22 = vector.broadcast %cst_34 : f32 to vector<256x4xf32>
    %23 = arith.mulf %22, %5 : vector<256x4xf32>
    %cst_35 = arith.constant 1.875000e-01 : f32
    %24 = vector.broadcast %cst_35 : f32 to vector<256x4xf32>
    %25 = arith.mulf %24, %17 : vector<256x4xf32>
    %cst_36 = arith.constant 1.875000e-01 : f32
    %26 = vector.broadcast %cst_36 : f32 to vector<256x4xf32>
    %27 = arith.mulf %26, %7 : vector<256x4xf32>
    %cst_37 = arith.constant 1.875000e-01 : f32
    %28 = vector.broadcast %cst_37 : f32 to vector<256x4xf32>
    %29 = arith.mulf %28, %18 : vector<256x4xf32>
    %30 = arith.addf %21, %23 : vector<256x4xf32>
    %31 = arith.addf %30, %27 : vector<256x4xf32>
    %cst_38 = arith.constant 6.250000e-02 : f32
    %32 = vector.broadcast %cst_38 : f32 to vector<256x4xf32>
    %33 = arith.mulf %32, %9 : vector<256x4xf32>
    %34 = arith.addf %31, %33 : vector<256x4xf32>
    %35 = arith.addf %21, %23 : vector<256x4xf32>
    %36 = arith.addf %35, %29 : vector<256x4xf32>
    %cst_39 = arith.constant 6.250000e-02 : f32
    %37 = vector.broadcast %cst_39 : f32 to vector<256x4xf32>
    %38 = arith.mulf %37, %11 : vector<256x4xf32>
    %39 = arith.addf %36, %38 : vector<256x4xf32>
    %40 = arith.addf %21, %25 : vector<256x4xf32>
    %41 = arith.addf %40, %27 : vector<256x4xf32>
    %cst_40 = arith.constant 6.250000e-02 : f32
    %42 = vector.broadcast %cst_40 : f32 to vector<256x4xf32>
    %43 = arith.mulf %42, %13 : vector<256x4xf32>
    %44 = arith.addf %41, %43 : vector<256x4xf32>
    %45 = arith.addf %21, %25 : vector<256x4xf32>
    %46 = arith.addf %45, %29 : vector<256x4xf32>
    %cst_41 = arith.constant 6.250000e-02 : f32
    %47 = vector.broadcast %cst_41 : f32 to vector<256x4xf32>
    %48 = arith.mulf %47, %19 : vector<256x4xf32>
    %49 = arith.addf %46, %48 : vector<256x4xf32>
    %50 = tpu.iota {dimensions = array<i32: 2>} : vector<1x1x16x1xi32>
    %c15_i32 = arith.constant 15 : i32
    %51 = vector.broadcast %c15_i32 : i32 to vector<1x1x16x1xi32>
    %52 = arith.cmpi slt, %50, %51 : vector<1x1x16x1xi32>
    %53 = arith.extui %52 : vector<1x1x16x1xi1> to vector<1x1x16x1xi32>
    %54 = arith.sitofp %53 : vector<1x1x16x1xi32> to vector<1x1x16x1xf32>
    %55 = tpu.iota {dimensions = array<i32: 1>} : vector<1x16x1x1xi32>
    %c15_i32_42 = arith.constant 15 : i32
    %56 = vector.broadcast %c15_i32_42 : i32 to vector<1x16x1x1xi32>
    %57 = arith.cmpi slt, %55, %56 : vector<1x16x1x1xi32>
    %58 = arith.extui %57 : vector<1x16x1x1xi1> to vector<1x16x1x1xi32>
    %59 = arith.sitofp %58 : vector<1x16x1x1xi32> to vector<1x16x1x1xf32>
    %cst_43 = arith.constant 0.000000e+00 : f32
    %60 = vector.broadcast %cst_43 : f32 to vector<1x16x16x4xf32>
    %61 = arith.maximumf %15, %60 : vector<1x16x16x4xf32>
    %62 = vector.broadcast %54 : vector<1x1x16x1xf32> to vector<1x16x16x4xf32>
    %63 = arith.mulf %61, %62 : vector<1x16x16x4xf32>
    %64 = vector.shape_cast %63 : vector<1x16x16x4xf32> to vector<256x4xf32>
    %cst_44 = arith.constant 0.000000e+00 : f32
    %65 = vector.broadcast %cst_44 : f32 to vector<1x16x16x4xf32>
    %66 = arith.maximumf %14, %65 : vector<1x16x16x4xf32>
    %67 = vector.broadcast %59 : vector<1x16x1x1xf32> to vector<1x16x16x4xf32>
    %68 = arith.mulf %66, %67 : vector<1x16x16x4xf32>
    %69 = vector.shape_cast %68 : vector<1x16x16x4xf32> to vector<256x4xf32>
    %cst_45 = arith.constant 0.000000e+00 : f32
    %70 = vector.broadcast %cst_45 : f32 to vector<1x16x16x4xf32>
    %71 = arith.maximumf %16, %70 : vector<1x16x16x4xf32>
    %72 = vector.broadcast %59 : vector<1x16x1x1xf32> to vector<1x16x16x1xf32>
    %73 = vector.broadcast %54 : vector<1x1x16x1xf32> to vector<1x16x16x1xf32>
    %74 = arith.mulf %72, %73 : vector<1x16x16x1xf32>
    %75 = vector.broadcast %74 : vector<1x16x16x1xf32> to vector<1x16x16x4xf32>
    %76 = arith.mulf %71, %75 : vector<1x16x16x4xf32>
    %77 = vector.shape_cast %76 : vector<1x16x16x4xf32> to vector<256x4xf32>
    %c0_46 = arith.constant 0 : index
    %c0_47 = arith.constant 0 : index
    %c0_48 = arith.constant 0 : index
    %78 = vector.load %arg6[%c0_46, %c0_47, %c0_48] : memref<9x1x4xf32, #tpu.memory_space<vmem>>, vector<9x1x4xf32>
    %79 = vector.extract_strided_slice %78 {offsets = [0, 0, 0], sizes = [1, 1, 4], strides = [1, 1, 1]} : vector<9x1x4xf32> to vector<1x1x4xf32>
    %80 = vector.shape_cast %79 : vector<1x1x4xf32> to vector<1x4xf32>
    %81 = vector.extract_strided_slice %78 {offsets = [1, 0, 0], sizes = [1, 1, 4], strides = [1, 1, 1]} : vector<9x1x4xf32> to vector<1x1x4xf32>
    %82 = vector.shape_cast %81 : vector<1x1x4xf32> to vector<1x4xf32>
    %83 = vector.extract_strided_slice %78 {offsets = [2, 0, 0], sizes = [1, 1, 4], strides = [1, 1, 1]} : vector<9x1x4xf32> to vector<1x1x4xf32>
    %84 = vector.shape_cast %83 : vector<1x1x4xf32> to vector<1x4xf32>
    %85 = vector.extract_strided_slice %78 {offsets = [3, 0, 0], sizes = [1, 1, 4], strides = [1, 1, 1]} : vector<9x1x4xf32> to vector<1x1x4xf32>
    %86 = vector.shape_cast %85 : vector<1x1x4xf32> to vector<1x4xf32>
    %87 = vector.extract_strided_slice %78 {offsets = [4, 0, 0], sizes = [1, 1, 4], strides = [1, 1, 1]} : vector<9x1x4xf32> to vector<1x1x4xf32>
    %88 = vector.shape_cast %87 : vector<1x1x4xf32> to vector<1x4xf32>
    %89 = vector.extract_strided_slice %78 {offsets = [5, 0, 0], sizes = [1, 1, 4], strides = [1, 1, 1]} : vector<9x1x4xf32> to vector<1x1x4xf32>
    %90 = vector.shape_cast %89 : vector<1x1x4xf32> to vector<1x4xf32>
    %91 = vector.extract_strided_slice %78 {offsets = [6, 0, 0], sizes = [1, 1, 4], strides = [1, 1, 1]} : vector<9x1x4xf32> to vector<1x1x4xf32>
    %92 = vector.shape_cast %91 : vector<1x1x4xf32> to vector<1x4xf32>
    %93 = vector.extract_strided_slice %78 {offsets = [7, 0, 0], sizes = [1, 1, 4], strides = [1, 1, 1]} : vector<9x1x4xf32> to vector<1x1x4xf32>
    %94 = vector.shape_cast %93 : vector<1x1x4xf32> to vector<1x4xf32>
    %95 = vector.extract_strided_slice %78 {offsets = [8, 0, 0], sizes = [1, 1, 4], strides = [1, 1, 1]} : vector<9x1x4xf32> to vector<1x1x4xf32>
    %96 = vector.shape_cast %95 : vector<1x1x4xf32> to vector<1x4xf32>
    %97 = vector.broadcast %88 : vector<1x4xf32> to vector<256x4xf32>
    %98 = arith.mulf %3, %97 : vector<256x4xf32>
    %99 = vector.broadcast %86 : vector<1x4xf32> to vector<256x4xf32>
    %100 = arith.mulf %64, %99 : vector<256x4xf32>
    %101 = vector.broadcast %90 : vector<1x4xf32> to vector<256x4xf32>
    %102 = arith.mulf %3, %101 : vector<256x4xf32>
    %103 = arith.addf %100, %102 : vector<256x4xf32>
    %104 = vector.broadcast %82 : vector<1x4xf32> to vector<256x4xf32>
    %105 = arith.mulf %69, %104 : vector<256x4xf32>
    %106 = vector.broadcast %94 : vector<1x4xf32> to vector<256x4xf32>
    %107 = arith.mulf %3, %106 : vector<256x4xf32>
    %108 = arith.addf %105, %107 : vector<256x4xf32>
    %109 = vector.broadcast %80 : vector<1x4xf32> to vector<256x4xf32>
    %110 = arith.mulf %77, %109 : vector<256x4xf32>
    %111 = vector.broadcast %84 : vector<1x4xf32> to vector<256x4xf32>
    %112 = arith.mulf %69, %111 : vector<256x4xf32>
    %113 = arith.addf %110, %112 : vector<256x4xf32>
    %114 = vector.broadcast %92 : vector<1x4xf32> to vector<256x4xf32>
    %115 = arith.mulf %64, %114 : vector<256x4xf32>
    %116 = arith.addf %113, %115 : vector<256x4xf32>
    %117 = vector.broadcast %96 : vector<1x4xf32> to vector<256x4xf32>
    %118 = arith.mulf %3, %117 : vector<256x4xf32>
    %119 = arith.addf %116, %118 : vector<256x4xf32>
    %120 = tpu.concatenate %34, %39, %44, %49 in 0 : vector<256x4xf32>, vector<256x4xf32>, vector<256x4xf32>, vector<256x4xf32> -> vector<1024x4xf32>
    %cst_49 = arith.constant 0.000000e+00 : f32
    %121 = vector.broadcast %cst_49 : f32 to vector<1024x4xf32>
    %122 = arith.maximumf %120, %121 : vector<1024x4xf32>
    %123 = tpu.concatenate %98, %103, %108, %119 in 0 : vector<256x4xf32>, vector<256x4xf32>, vector<256x4xf32>, vector<256x4xf32> -> vector<1024x4xf32>
    %c0_50 = arith.constant 0 : index
    %c0_51 = arith.constant 0 : index
    %124 = vector.load %arg2[%c0_50, %c0_51] : memref<8x4xf32, #tpu.memory_space<vmem>>, vector<8x4xf32>
    %cst_52 = arith.constant dense<0.000000e+00> : vector<8x256xf32>
    %125 = tpu.matmul %124, %3, %cst_52 {dimension_numbers = #tpu.dot_dimension_numbers<[1], [1], [0], [0], [0, 0, 1, 0], [], []>} : vector<8x4xf32>, vector<256x4xf32>, vector<8x256xf32> -> vector<8x256xf32>
    %c0_53 = arith.constant 0 : index
    %c0_54 = arith.constant 0 : index
    %126 = vector.load %arg5[%c0_53, %c0_54] : memref<8x1xf32, #tpu.memory_space<vmem>>, vector<8x1xf32>
    %127 = vector.broadcast %126 : vector<8x1xf32> to vector<8x256xf32>
    %128 = arith.addf %125, %127 : vector<8x256xf32>
    %c0_55 = arith.constant 0 : index
    %c0_56 = arith.constant 0 : index
    %129 = vector.load %arg3[%c0_55, %c0_56] : memref<8x4xf32, #tpu.memory_space<vmem>>, vector<8x4xf32>
    %cst_57 = arith.constant dense<0.000000e+00> : vector<8x1024xf32>
    %130 = tpu.matmul %129, %122, %cst_57 {dimension_numbers = #tpu.dot_dimension_numbers<[1], [1], [0], [0], [0, 0, 1, 0], [], []>} : vector<8x4xf32>, vector<1024x4xf32>, vector<8x1024xf32> -> vector<8x1024xf32>
    %c0_58 = arith.constant 0 : index
    %c0_59 = arith.constant 0 : index
    %131 = vector.load %arg4[%c0_58, %c0_59] : memref<8x4xf32, #tpu.memory_space<vmem>>, vector<8x4xf32>
    %cst_60 = arith.constant dense<0.000000e+00> : vector<8x1024xf32>
    %132 = tpu.matmul %131, %123, %cst_60 {dimension_numbers = #tpu.dot_dimension_numbers<[1], [1], [0], [0], [0, 0, 1, 0], [], []>} : vector<8x4xf32>, vector<1024x4xf32>, vector<8x1024xf32> -> vector<8x1024xf32>
    %133 = arith.addf %130, %132 : vector<8x1024xf32>
    %134 = vector.extract_strided_slice %133 {offsets = [0, 0], sizes = [8, 256], strides = [1, 1]} : vector<8x1024xf32> to vector<8x256xf32>
    %135 = arith.addf %134, %128 : vector<8x256xf32>
    %c0_61 = arith.constant 0 : index
    %c0_62 = arith.constant 0 : index
    %c0_63 = arith.constant 0 : index
    %136 = vector.load %arg7[%c0_61, %c0_62, %c0_63] : memref<4x8x256xf32, #tpu.memory_space<vmem>>, vector<1x8x256xf32>
    %137 = vector.shape_cast %136 : vector<1x8x256xf32> to vector<8x256xf32>
    %138 = vector.shape_cast %135 : vector<8x256xf32> to vector<1x8x256xf32>
    tpu.vector_store %arg7[%c0_61, %c0_62, %c0_63], %138 {strides = array<i32>} : memref<4x8x256xf32, #tpu.memory_space<vmem>>, vector<1x8x256xf32>,
    %139 = vector.extract_strided_slice %133 {offsets = [0, 256], sizes = [8, 256], strides = [1, 1]} : vector<8x1024xf32> to vector<8x256xf32>
    %140 = arith.addf %139, %128 : vector<8x256xf32>
    %c1_64 = arith.constant 1 : index
    %c0_65 = arith.constant 0 : index
    %c0_66 = arith.constant 0 : index
    %141 = vector.load %arg7[%c1_64, %c0_65, %c0_66] : memref<4x8x256xf32, #tpu.memory_space<vmem>>, vector<1x8x256xf32>
    %142 = vector.shape_cast %141 : vector<1x8x256xf32> to vector<8x256xf32>
    %143 = vector.shape_cast %140 : vector<8x256xf32> to vector<1x8x256xf32>
    tpu.vector_store %arg7[%c1_64, %c0_65, %c0_66], %143 {strides = array<i32>} : memref<4x8x256xf32, #tpu.memory_space<vmem>>, vector<1x8x256xf32>,
    %144 = vector.extract_strided_slice %133 {offsets = [0, 512], sizes = [8, 256], strides = [1, 1]} : vector<8x1024xf32> to vector<8x256xf32>
    %145 = arith.addf %144, %128 : vector<8x256xf32>
    %c2_67 = arith.constant 2 : index
    %c0_68 = arith.constant 0 : index
    %c0_69 = arith.constant 0 : index
    %146 = vector.load %arg7[%c2_67, %c0_68, %c0_69] : memref<4x8x256xf32, #tpu.memory_space<vmem>>, vector<1x8x256xf32>
    %147 = vector.shape_cast %146 : vector<1x8x256xf32> to vector<8x256xf32>
    %148 = vector.shape_cast %145 : vector<8x256xf32> to vector<1x8x256xf32>
    tpu.vector_store %arg7[%c2_67, %c0_68, %c0_69], %148 {strides = array<i32>} : memref<4x8x256xf32, #tpu.memory_space<vmem>>, vector<1x8x256xf32>,
    %149 = vector.extract_strided_slice %133 {offsets = [0, 768], sizes = [8, 256], strides = [1, 1]} : vector<8x1024xf32> to vector<8x256xf32>
    %150 = arith.addf %149, %128 : vector<8x256xf32>
    %c3 = arith.constant 3 : index
    %c0_70 = arith.constant 0 : index
    %c0_71 = arith.constant 0 : index
    %151 = vector.load %arg7[%c3, %c0_70, %c0_71] : memref<4x8x256xf32, #tpu.memory_space<vmem>>, vector<1x8x256xf32>
    %152 = vector.shape_cast %151 : vector<1x8x256xf32> to vector<8x256xf32>
    %153 = vector.shape_cast %150 : vector<8x256xf32> to vector<1x8x256xf32>
    tpu.vector_store %arg7[%c3, %c0_70, %c0_71], %153 {strides = array<i32>} : memref<4x8x256xf32, #tpu.memory_space<vmem>>, vector<1x8x256xf32>,
    return
  }
  func.func @transform_0(%arg0: i32) -> (i32, i32, i32, i32) {
    %c0_i32 = arith.constant 0 : i32
    %c0_i32_0 = arith.constant 0 : i32
    %c0_i32_1 = arith.constant 0 : i32
    %c0_i32_2 = arith.constant 0 : i32
    return %arg0, %c0_i32, %c0_i32_0, %c0_i32_1 : i32, i32, i32, i32
  }
  func.func @transform_1(%arg0: i32) -> (i32, i32) {
    %c0_i32 = arith.constant 0 : i32
    %c0_i32_0 = arith.constant 0 : i32
    %c0_i32_1 = arith.constant 0 : i32
    return %c0_i32, %c0_i32_0 : i32, i32
  }
  func.func @transform_2(%arg0: i32) -> (i32, i32) {
    %c0_i32 = arith.constant 0 : i32
    %c0_i32_0 = arith.constant 0 : i32
    %c0_i32_1 = arith.constant 0 : i32
    return %c0_i32, %c0_i32_0 : i32, i32
  }
  func.func @transform_3(%arg0: i32) -> (i32, i32) {
    %c0_i32 = arith.constant 0 : i32
    %c0_i32_0 = arith.constant 0 : i32
    %c0_i32_1 = arith.constant 0 : i32
    return %c0_i32, %c0_i32_0 : i32, i32
  }
  func.func @transform_4(%arg0: i32) -> (i32, i32) {
    %c0_i32 = arith.constant 0 : i32
    %c0_i32_0 = arith.constant 0 : i32
    %c0_i32_1 = arith.constant 0 : i32
    return %c0_i32, %c0_i32_0 : i32, i32
  }
  func.func @transform_5(%arg0: i32) -> (i32, i32, i32) {
    %c0_i32 = arith.constant 0 : i32
    %c0_i32_0 = arith.constant 0 : i32
    %c0_i32_1 = arith.constant 0 : i32
    %c0_i32_2 = arith.constant 0 : i32
    return %c0_i32, %c0_i32_0, %c0_i32_1 : i32, i32, i32
  }
  func.func @transform_6(%arg0: i32) -> (i32, i32, i32) {
    %c0_i32 = arith.constant 0 : i32
    %c0_i32_0 = arith.constant 0 : i32
    %c0_i32_1 = arith.constant 0 : i32
    return %c0_i32, %c0_i32_0, %arg0 : i32, i32, i32
  }
}

</mosaic_0001>

<bundles_post_ra>
// kernel: mixed_up_forward.1
= control target key start
LH: loop header
LB: loop body
LE: loop exit
PB: predicated region body
PF: predicated region fallthrough
CT: control target
= control target key end

     0   :  { %s4627_s21 = smov 0   ;;  %s4629_s22 = smov 0   ;;  %s7492_s0 = inlined_call_operand.vmem [shape: f32[2,18,18,4], index: 0, kind: input, shape index: {}]   ;;  %s7493_s1 = inlined_call_operand.vmem [shape: f32[8,4], index: 1, kind: input, shape index: {}]   ;;  %s7494_s2 = inlined_call_operand.vmem [shape: f32[8,4], index: 2, kind: input, shape index: {}]   ;;  %s7495_s3 = inlined_call_operand.vmem [shape: f32[8,4], index: 3, kind: input, shape index: {}]   ;;  %s7496_s4 = inlined_call_operand.vmem [shape: f32[8,1], index: 4, kind: input, shape index: {}]   ;;  %s7497_s5 = inlined_call_operand.vmem [shape: f32[9,1,4], index: 5, kind: input, shape index: {}]   ;;  %s7498_s6 = inlined_call_operand.vmem [shape: f32[4,8,512], index: 6, kind: output, shape index: {}]  }
   0x1   :  { %s4631_s23 = smov 0  }
   0x2 LB: > { %s4640_s24 = sadd.s32 4294967295, %s4588_s23   ;;  %s4642_s25 = sadd.s32 1, %s4588_s23   ;;  %s4588_s23 = sphi %s4631_s23, %s8306_s23   ;;  %s4584_s22 = sphi %s4629_s22, %s8305_s22   ;;  %s4580_s21 = sphi %s4627_s21, %s8304_s21  }
   0x3   : > { %s151_s26 = ssub.s32 %s4588_s23, %s4642_s25  ;;  %s154_s27 = sadd.s32 1, %s4584_s22 }
   0x4   : > { %p152_p0 = scmp.eq.s32.totalorder %s151_s26, 0  ;;  %p164_p1 = scmp.ne.s32.totalorder %s4584_s22, %s4580_s21 }
   0x5   : > { %p165_p2 = scmp.eq.s32.totalorder %s4640_s24, 1  ;;  %p3659_p3 = scmp.ge.s32.totalorder %s4588_s23, 1 }
   0x6   : > { %s4650_s28 = scalar_select %p152_p0, %s4584_s22, %s154_s27  }
   0x7   : > { %p4652_p4 = por %p165_p2, %p164_p1  ;;  %p212_p5 = scmp.lt.s32.totalorder %s4588_s23, 3 }
   0x9   : > { %p213_p6 = pnand %p3659_p3, %p212_p5 }
   0xb   : > { %216 = sbr.rel (%p213_p6) target bundleno = 609 (0x261), region = 44 }
  0x10   : > { %p241_p7 = scmp.lt.s32.totalorder %s4640_s24, 1  ;;  %vm2030_vm0 = vcmask 31744   ;;  %v4660_v0 = vld [vmem:[%s7493_s1] sm:$0xff]  ;;  %v1177_v1 = vlaneseq  ;;  %v4590_v19 = vmov 0.0  }
  0x11   : > { %7769 = vst [vmem:[#allocation3_spill] sm:$0xff] %v4660_v0  ;;  %4205 = vmatprep.mubr.msk.f32.mxu0 %vm2030_vm0, %v4660_v0  ;;  %v4667_v2 = vld [vmem:[%s7495_s3] sm:$0xff] }
  0x12   : > { %7770 = vst [vmem:[#allocation4_spill] sm:$0xff] %v4667_v2  ;;  %s242_s10 = scalar_select %p241_p7, %s4640_s24, 1  ;;  %v1178_v3 = vshrl.u32 %v1177_v1, 7  ;;  %4239 = vmatprep.mubr.msk.f32.mxu1 %vm2030_vm0, %v4667_v2  ;;  %v4680_v5 = vld [vmem:[%s7497_s5 + $0x4] ss:$0 sm:$0xff] }
  0x14   : > { %s4479_s11 = smul.u32 432, %s242_s10  ;;  %v1179_v4 = vadd.s32 8, %v1178_v3 }
  0x16   : > { %s4675_s14 = scalar_lea.vmem %s7492_s0, %s4479_s11  ;;  %vm1181_vm1 = vcmp.lt.s32.totalorder %v1179_v4, 15 }
  0x17   : > { %v4683_v6 = vld [vmem:[%s4675_s14 + $0x189] sm:$0xff]  ;;  %v327_v8 = vld [vmem:[%s4675_s14 + $0xb1] sm:$0xff]  ;;  %v4693_v11 = vld [vmem:[%s4675_s14 + $0xe1] sm:$0xff]  ;;  %v4707_v20 = vsel %vm1181_vm1, 1.0, %v4590_v19 }
  0x18   : > { %v3677_v7 = vld [vmem:[%s4675_s14 + $0xc9] sm:$0xff]  ;;  %v4688_v9 = vmax.f32 %v4683_v6, 0.0  ;;  %v4695_v13 = vmul.f32 0.1875, %v327_v8  ;;  %v4698_v14 = vld [vmem:[%s4675_s14 + $0x181] sm:$0xff]  ;;  %v648_v15 = vmul.f32 0.1875, %v4693_v11  ;;  %v4705_v18 = vmax.f32 %v327_v8, 0.0 }
  0x19   : > { %v4690_v10 = vmax.f32 %v3677_v7, 0.0  ;;  %v584_v12 = vmul.f32 0.5625, %v3677_v7  ;;  %v4702_v16 = vmax.f32 %v4698_v14, 0.0  ;;  %v3676_v17 = vld [vmem:[%s4675_s14 + $0xc1] sm:$0xff]  ;;  %v326_v25 = vld [vmem:[%s4675_s14 + $0xa9] sm:$0xff]  ;;  %v4722_v26 = vld [vmem:[%s4675_s14 + $0xd9] sm:$0xff] }
  0x1a   : > { %7771 = vst [vmem:[#allocation5_spill] sm:$0xff] %v4688_v9  ;;  %7774 = vst [vmem:[#allocation8_spill] sm:$0xff] %v4705_v18  ;;  %4173 = vmatprep.subr.msk.mxu0 %vm2030_vm0, %v4688_v9  ;;  %v1430_v22 = vmul.f32 %v4680_v5, %v4688_v9  ;;  %v4718_v24 = vmax.f32 %v3676_v17, 0.0  ;;  %v4725_v27 = vld [vmem:[%s4675_s14 + $0x171] sm:$0xff]  ;;  %v583_v29 = vmul.f32 0.5625, %v3676_v17  ;;  %v615_v30 = vmul.f32 0.1875, %v326_v25 }
  0x1b   : > { %7772 = vst [vmem:[#allocation6_spill] sm:$0xff] %v4690_v10  ;;  %7773 = vst [vmem:[#allocation7_spill] sm:$0xff] %v4702_v16  ;;  %v4712_v21 = vadd.f32 %v4695_v13, %v584_v12  ;;  %v1414_v23 = vmul.f32 %v4680_v5, %v4690_v10  ;;  %v4727_v28 = vadd.f32 %v648_v15, %v584_v12  ;;  %4174 = vmatpush3.xpose.msk.msra.mxu0 %vm2030_vm0, %v4690_v10  ;;  %v4733_v32 = vld [vmem:[%s4675_s14 + $0x169] sm:$0xff]  ;;  %v325_v36 = vld [vmem:[%s4675_s14 + $0x99] sm:$0xff] }
  0x1c   : > { %7776 = vst [vmem:[#allocation10_spill] sm:$0xff] %v4718_v24  ;;  %v647_v31 = vmul.f32 0.1875, %v4722_v26  ;;  %4207 = vmatprep.subr.msk.mxu1 %vm2030_vm0, %v1430_v22  ;;  %4175 = vmatprep.subr.msk.mxu0 %vm2030_vm0, %v4702_v16  ;;  %v1429_v33 = vmul.f32 %v4680_v5, %v4702_v16  ;;  %v1413_v34 = vmul.f32 %v4680_v5, %v4718_v24  ;;  %v4743_v35 = vmax.f32 %v4725_v27, 0.0  ;;  %v4752_v42 = vld [vmem:[%s4675_s14 + $0x159] sm:$0xff]  ;;  %v324_v47 = vld [vmem:[%s4675_s14 + $0x91] sm:$0xff]  ;;  %v323_v57 = vld [vmem:[%s4675_s14 + $0x81] sm:$0xff] }
  0x1d   : > { %7775 = vst [vmem:[#allocation9_spill] sm:$0xff] %v4712_v21  ;;  %7777 = vst [vmem:[#allocation11_spill] sm:$0xff] %v4727_v28  ;;  %v582_v37 = vmul.f32 0.5625, %v327_v8  ;;  %4208 = vmatpush3.xpose.msk.msra.mxu1 %vm2030_vm0, %v1414_v23  ;;  %v4747_v38 = vadd.f32 %v615_v30, %v583_v29  ;;  %v614_v40 = vmul.f32 0.1875, %v325_v36  ;;  %v646_v41 = vmul.f32 0.1875, %v3677_v7  ;;  %v4772_v52 = vld [vmem:[%s4675_s14 + $0x151] sm:$0xff] }
  0x1e   : > { %7778 = vst [vmem:[#allocation12_spill] sm:$0xff] %v4743_v35  ;;  %v4749_v39 = vadd.f32 %v647_v31, %v583_v29  ;;  %7781 = vst [vmem:[#allocation15_spill] sm:$0xff] %v4752_v42  ;;  %4209 = vmatprep.subr.msk.mxu1 %vm2030_vm0, %v1429_v33  ;;  %v1428_v43 = vmul.f32 %v4680_v5, %v4743_v35  ;;  %v1412_v44 = vmul.f32 %v4680_v5, %v4705_v18  ;;  %v4790_v62 = vld [vmem:[%s4675_s14 + $0x141] sm:$0xff]  ;;  %v322_v15 = vld [vmem:[%s4675_s14 + $0x79] sm:$0xff] }
  0x1f   : > { %7779 = vst [vmem:[#allocation13_spill] sm:$0xff] %v4747_v38  ;;  %v4760_v45 = vmax.f32 %v4733_v32, 0.0  ;;  %v4762_v46 = vmax.f32 %v326_v25, 0.0  ;;  %4176 = vmatpush3.xpose.msk.msra.mxu0 %vm2030_vm0, %v4718_v24  ;;  %v4767_v48 = vadd.f32 %v614_v40, %v582_v37  ;;  %v4769_v49 = vadd.f32 %v646_v41, %v582_v37  ;;  %7786 = vst [vmem:[#allocation20_spill] sm:$0xff] %v4772_v52  ;;  %v4813_v19 = vld [vmem:[%s4675_s14 + $0x139] sm:$0xff]  ;;  %v321_v29 = vld [vmem:[%s4675_s14 + $0x69] sm:$0xff] }
  0x20   : > { %7780 = vst [vmem:[#allocation14_spill] sm:$0xff] %v4749_v39  ;;  %v581_v50 = vmul.f32 0.5625, %v326_v25  ;;  %v613_v51 = vmul.f32 0.1875, %v324_v47  ;;  %4177 = vmatprep.subr.msk.mxu0 %vm2030_vm0, %v4743_v35  ;;  %v645_v53 = vmul.f32 0.1875, %v3676_v17  ;;  %v4781_v56 = vmax.f32 %v4752_v42, 0.0  ;;  %7790 = vst [vmem:[#allocation24_spill] sm:$0xff] %v4790_v62 }
  0x21   : > { %7782 = vst [vmem:[#allocation16_spill] sm:$0xff] %v4760_v45  ;;  %7783 = vst [vmem:[#allocation17_spill] sm:$0xff] %v4762_v46  ;;  %v1427_v54 = vmul.f32 %v4680_v5, %v4760_v45  ;;  %v1411_v55 = vmul.f32 %v4680_v5, %v4762_v46  ;;  %4210 = vmatpush3.xpose.msk.msra.mxu1 %vm2030_vm0, %v1413_v34  ;;  %v4787_v59 = vmax.f32 %v325_v36, 0.0  ;;  %v580_v60 = vmul.f32 0.5625, %v325_v36  ;;  %v4833_v37 = vld [vmem:[%s4675_s14 + $0x129] sm:$0xff]  ;;  %v4881_v39 = vld [vmem:[%s4675_s14 + $0x111] sm:$0xff] }
  0x22   : > { %7784 = vst [vmem:[#allocation18_spill] sm:$0xff] %v4767_v48  ;;  %7785 = vst [vmem:[#allocation19_spill] sm:$0xff] %v4769_v49  ;;  %v4785_v58 = vadd.f32 %v613_v51, %v581_v50  ;;  %v612_v61 = vmul.f32 0.1875, %v323_v57  ;;  %4211 = vmatprep.subr.msk.mxu1 %vm2030_vm0, %v1428_v43  ;;  %v4793_v63 = vadd.f32 %v645_v53, %v581_v50  ;;  %v4798_v3 = vmax.f32 %v4772_v52, 0.0  ;;  %v4929_v21 = vld [vmem:[%s4675_s14 + $0xf9] sm:$0xff] }
  0x23   : > { %7787 = vst [vmem:[#allocation21_spill] sm:$0xff] %v4781_v56  ;;  %7789 = vst [vmem:[#allocation23_spill] sm:$0xff] %v4787_v59  ;;  %v1426_v1 = vmul.f32 %v4680_v5, %v4781_v56  ;;  %v4800_v4 = vmax.f32 %v324_v47, 0.0  ;;  %4178 = vmatpush3.xpose.msk.msra.mxu0 %vm2030_vm0, %v4705_v18  ;;  %v4807_v8 = vadd.f32 %v4695_v13, %v580_v60  ;;  %v579_v17 = vmul.f32 0.5625, %v324_v47 }
  0x24   : > { %7788 = vst [vmem:[#allocation22_spill] sm:$0xff] %v4785_v58  ;;  %7791 = vst [vmem:[#allocation25_spill] sm:$0xff] %v4793_v63  ;;  %v4804_v7 = vadd.f32 %v612_v61, %v580_v60  ;;  %v1410_v12 = vmul.f32 %v4680_v5, %v4787_v59  ;;  %4179 = vmatprep.subr.msk.mxu0 %vm2030_vm0, %v4760_v45  ;;  %v611_v22 = vmul.f32 0.1875, %v322_v15  ;;  %v4824_v13 = vmax.f32 %v4790_v62, 0.0  ;;  %v4859_v60 = vld [vmem:[%s4675_s14 + $0x121] sm:$0xff] }
  0x25   : > { %7792 = vst [vmem:[#allocation26_spill] sm:$0xff] %v4798_v3  ;;  %7793 = vst [vmem:[#allocation27_spill] sm:$0xff] %v4800_v4  ;;  %v1425_v23 = vmul.f32 %v4680_v5, %v4798_v3  ;;  %v4821_v25 = vmul.f32 %v4680_v5, %v4800_v4  ;;  %4212 = vmatpush3.xpose.msk.msra.mxu1 %vm2030_vm0, %v1412_v44  ;;  %v4828_v31 = vadd.f32 %v615_v30, %v579_v17 }
  0x26   : > { %7794 = vst [vmem:[#allocation28_spill] sm:$0xff] %v4804_v7  ;;  %7795 = vst [vmem:[#allocation29_spill] sm:$0xff] %v4807_v8  ;;  %v4830_v33 = vmax.f32 %v323_v57, 0.0  ;;  %v578_v34 = vmul.f32 0.5625, %v323_v57  ;;  %v610_v36 = vmul.f32 0.1875, %v321_v29  ;;  %4213 = vmatprep.subr.msk.mxu1 %vm2030_vm0, %v1427_v54  ;;  %v4836_v41 = vadd.f32 %v611_v22, %v579_v17  ;;  %v320_v54 = vld [vmem:[%s4675_s14 + $0x61] sm:$0xff] }
  0x27   : > { %7796 = vst [vmem:[#allocation30_spill] sm:$0xff] %v4813_v19  ;;  %7797 = vst [vmem:[#allocation31_spill] sm:$0xff] %v4824_v13  ;;  %v4840_v43 = vmul.f32 %v4680_v5, %v4824_v13  ;;  %v4843_v44 = vmax.f32 %v4813_v19, 0.0  ;;  %v4845_v30 = vmax.f32 %v322_v15, 0.0  ;;  %4180 = vmatpush3.xpose.msk.msra.mxu0 %vm2030_vm0, %v4762_v46  ;;  %v577_v57 = vmul.f32 0.5625, %v322_v15 }
  0x28   : > { %7798 = vst [vmem:[#allocation32_spill] sm:$0xff] %v4828_v31  ;;  %7799 = vst [vmem:[#allocation33_spill] sm:$0xff] %v4830_v33  ;;  %v4849_v47 = vadd.f32 %v610_v36, %v578_v34  ;;  %v4851_v50 = vadd.f32 %v614_v40, %v578_v34  ;;  %v4855_v53 = vmul.f32 %v4680_v5, %v4830_v33  ;;  %4181 = vmatprep.subr.msk.mxu0 %vm2030_vm0, %v4781_v56 }
  0x29   : > { %7800 = vst [vmem:[#allocation34_spill] sm:$0xff] %v4833_v37  ;;  %7801 = vst [vmem:[#allocation35_spill] sm:$0xff] %v4836_v41  ;;  %v609_v17 = vmul.f32 0.1875, %v320_v54  ;;  %v4865_v31 = vmul.f32 %v4680_v5, %v4843_v44  ;;  %v4869_v40 = vmul.f32 %v4680_v5, %v4845_v30  ;;  %v4872_v34 = vmax.f32 %v4833_v37, 0.0  ;;  %4214 = vmatpush3.xpose.msk.msra.mxu1 %vm2030_vm0, %v1411_v55  ;;  %v4907_v41 = vld [vmem:[%s4675_s14 + $0x109] sm:$0xff]  ;;  %v4955_v37 = vld [vmem:[%s4675_s14 + $0xf1] sm:$0xff] }
  0x2a   : > { %7802 = vst [vmem:[#allocation36_spill] sm:$0xff] %v4843_v44  ;;  %7803 = vst [vmem:[#allocation37_spill] sm:$0xff] %v4845_v30  ;;  %v4876_v15 = vadd.f32 %v613_v51, %v577_v57  ;;  %v4878_v8 = vmax.f32 %v321_v29, 0.0  ;;  %v576_v63 = vmul.f32 0.5625, %v321_v29  ;;  %4215 = vmatprep.subr.msk.mxu1 %vm2030_vm0, %v1426_v1  ;;  %v4891_v55 = vmax.f32 %v4859_v60, 0.0 }
  0x2b   : > { %7804 = vst [vmem:[#allocation38_spill] sm:$0xff] %v4849_v47  ;;  %7805 = vst [vmem:[#allocation39_spill] sm:$0xff] %v4851_v50  ;;  %v319_v50 = vld [vmem:[%s4675_s14 + $0x51] sm:$0xff]  ;;  %v4884_v28 = vadd.f32 %v609_v17, %v577_v57  ;;  %v4888_v47 = vmul.f32 %v4680_v5, %v4872_v34  ;;  %v4893_v51 = vmax.f32 %v320_v54, 0.0  ;;  %4182 = vmatpush3.xpose.msk.msra.mxu0 %vm2030_vm0, %v4787_v59  ;;  %v318_v57 = vld [vmem:[%s4675_s14 + $0x49] sm:$0xff]  ;;  %v4986_v52 = vmax.f32 %v4955_v37, 0.0 }
  0x2c   : > { %7806 = vst [vmem:[#allocation40_spill] sm:$0xff] %v4859_v60  ;;  %7807 = vst [vmem:[#allocation41_spill] sm:$0xff] %v4872_v34  ;;  %v608_v49 = vmul.f32 0.1875, %v319_v50  ;;  %v4903_v1 = vmul.f32 %v4680_v5, %v4878_v8  ;;  %4183 = vmatprep.subr.msk.mxu0 %vm2030_vm0, %v4798_v3  ;;  %v607_v7 = vmul.f32 0.1875, %v318_v57  ;;  %v4913_v58 = vmul.f32 %v4680_v5, %v4891_v55 }
  0x2d   : > { %7808 = vst [vmem:[#allocation42_spill] sm:$0xff] %v4876_v15  ;;  %7809 = vst [vmem:[#allocation43_spill] sm:$0xff] %v4878_v8  ;;  %v4899_v15 = vadd.f32 %v612_v61, %v576_v63  ;;  %v4917_v61 = vmul.f32 %v4680_v5, %v4893_v51  ;;  %4216 = vmatpush3.xpose.msk.msra.mxu1 %vm2030_vm0, %v1410_v12  ;;  %v574_v48 = vmul.f32 0.5625, %v319_v50  ;;  %v4939_v12 = vmax.f32 %v4907_v41, 0.0 }
  0x2e   : > { %7810 = vst [vmem:[#allocation44_spill] sm:$0xff] %v4881_v39  ;;  %7811 = vst [vmem:[#allocation45_spill] sm:$0xff] %v4884_v28  ;;  %v4897_v29 = vadd.f32 %v608_v49, %v576_v63  ;;  %v575_v28 = vmul.f32 0.5625, %v320_v54  ;;  %v4920_v63 = vmax.f32 %v4881_v39, 0.0  ;;  %4217 = vmatprep.subr.msk.mxu1 %vm2030_vm0, %v1425_v23  ;;  %v316_v23 = vld [vmem:[%s4675_s14 + $0x31] sm:$0xff] }
  0x2f   : > { %7812 = vst [vmem:[#allocation46_spill] sm:$0xff] %v4891_v55  ;;  %7813 = vst [vmem:[#allocation47_spill] sm:$0xff] %v4893_v51  ;;  %4184 = vmatpush3.xpose.msk.msra.mxu0 %vm2030_vm0, %v4800_v4  ;;  %v4961_v19 = vmul.f32 %v4680_v5, %v4939_v12  ;;  %v4988_v42 = vmax.f32 %v316_v23, 0.0 }
  0x30   : > { %7814 = vst [vmem:[#allocation48_spill] sm:$0xff] %v4897_v29  ;;  %7815 = vst [vmem:[#allocation49_spill] sm:$0xff] %v4899_v15  ;;  %v317_v15 = vld [vmem:[%s4675_s14 + $0x39] sm:$0xff]  ;;  %v4924_v54 = vadd.f32 %v611_v22, %v575_v28  ;;  %v4926_v29 = vmax.f32 %v319_v50, 0.0  ;;  %v4932_v60 = vadd.f32 %v607_v7, %v575_v28  ;;  %v4936_v39 = vmul.f32 %v4680_v5, %v4920_v63 }
  0x31   : > { %7816 = vst [vmem:[#allocation50_spill] sm:$0xff] %v4907_v41  ;;  %7817 = vst [vmem:[#allocation51_spill] sm:$0xff] %v4920_v63  ;;  %v606_v38 = vmul.f32 0.1875, %v317_v15  ;;  %v4941_v22 = vmax.f32 %v318_v57, 0.0  ;;  %4185 = vmatprep.subr.msk.mxu0 %vm2030_vm0, %v4824_v13  ;;  %v605_v41 = vmul.f32 0.1875, %v316_v23  ;;  %4218 = vmatpush3.xpose.msk.msra.mxu1 %vm2030_vm0, %v4821_v25  ;;  %v572_v2 = vmul.f32 0.5625, %v317_v15 }
  0x32   : > { %7818 = vst [vmem:[#allocation52_spill] sm:$0xff] %v4924_v54  ;;  %7819 = vst [vmem:[#allocation53_spill] sm:$0xff] %v4926_v29  ;;  %v4947_v54 = vadd.f32 %v610_v36, %v574_v48  ;;  %v4951_v28 = vmul.f32 %v4680_v5, %v4926_v29  ;;  %v4968_v36 = vmax.f32 %v4929_v21, 0.0  ;;  %4219 = vmatprep.subr.msk.mxu1 %vm2030_vm0, %v4840_v43  ;;  %v313_v25 = vld [vmem:[%s4675_s14 + $0x9] sm:$0xff] }
  0x33   : > { %7820 = vst [vmem:[#allocation54_spill] sm:$0xff] %v4929_v21  ;;  %7821 = vst [vmem:[#allocation55_spill] sm:$0xff] %v4932_v60  ;;  %v4945_v50 = vadd.f32 %v606_v38, %v574_v48  ;;  %v573_v60 = vmul.f32 0.5625, %v318_v57  ;;  %v4965_v48 = vmul.f32 %v4680_v5, %v4941_v22  ;;  %4186 = vmatpush3.xpose.msk.msra.mxu0 %vm2030_vm0, %v4830_v33  ;;  %v3821_v33 = vld [vmem:[%s4675_s14 + $0x18a] sm:$0xff] }
  0x34   : > { %7822 = vst [vmem:[#allocation56_spill] sm:$0xff] %v4939_v12  ;;  %7823 = vst [vmem:[#allocation57_spill] sm:$0xff] %v4941_v22  ;;  %v4983_v21 = vmul.f32 %v4680_v5, %v4968_v36  ;;  %v4995_v43 = vadd.f32 %v608_v49, %v572_v2  ;;  %4187 = vmatprep.subr.msk.mxu0 %vm2030_vm0, %v4843_v44  ;;  %v312_v44 = vld [vmem:[%s4675_s14 + $0x1] sm:$0xff] }
  0x35   : > { %7824 = vst [vmem:[#allocation58_spill] sm:$0xff] %v4945_v50  ;;  %7825 = vst [vmem:[#allocation59_spill] sm:$0xff] %v4947_v54  ;;  %v315_v54 = vld [vmem:[%s4675_s14 + $0x21] sm:$0xff]  ;;  %v4973_v57 = vadd.f32 %v609_v17, %v573_v60  ;;  %v4975_v50 = vmax.f32 %v317_v15, 0.0  ;;  %v4979_v0 = vadd.f32 %v605_v41, %v573_v60  ;;  %v314_v15 = vld [vmem:[%s4675_s14 + $0x19] sm:$0xff]  ;;  %4220 = vmatpush3.xpose.msk.msra.mxu1 %vm2030_vm0, %v4855_v53  ;;  %v5032_v53 = vmax.f32 %v4722_v26, 0.0 }
  0x36   : > { %7826 = vst [vmem:[#allocation60_spill] sm:$0xff] %v4955_v37  ;;  %7827 = vst [vmem:[#allocation61_spill] sm:$0xff] %v4968_v36  ;;  %v604_v62 = vmul.f32 0.1875, %v315_v54  ;;  %v5006_v37 = vmul.f32 %v4680_v5, %v4986_v52  ;;  %4221 = vmatprep.subr.msk.mxu1 %vm2030_vm0, %v4865_v31 }
  0x37   : > { %7828 = vst [vmem:[#allocation62_spill] sm:$0xff] %v4973_v57  ;;  %7829 = vst [vmem:[#allocation63_spill] sm:$0xff] %v4975_v50  ;;  %v4999_v60 = vmul.f32 %v4680_v5, %v4975_v50  ;;  %v571_v57 = vmul.f32 0.5625, %v316_v23  ;;  %v5019_v23 = vmax.f32 %v315_v54, 0.0  ;;  %4188 = vmatpush3.xpose.msk.msra.mxu0 %vm2030_vm0, %v4845_v30  ;;  %v601_v30 = vmul.f32 0.1875, %v312_v44 }
  0x38   : > { %7830 = vst [vmem:[#allocation64_spill] sm:$0xff] %v4979_v0  ;;  %7831 = vst [vmem:[#allocation65_spill] sm:$0xff] %v4986_v52  ;;  %v4993_v17 = vadd.f32 %v604_v62, %v572_v2  ;;  %v603_v0 = vmul.f32 0.1875, %v314_v15  ;;  %v5010_v62 = vmul.f32 %v4680_v5, %v4988_v42  ;;  %v5013_v2 = vmax.f32 %v4693_v11, 0.0  ;;  %4189 = vmatprep.subr.msk.mxu0 %vm2030_vm0, %v4872_v34  ;;  %v5081_v44 = vld [vmem:[%s7497_s5 + $0x3] ss:$0 sm:$0xff] }
  0x39   : > { %7832 = vst [vmem:[#allocation66_spill] sm:$0xff] %v4988_v42  ;;  %7834 = vst [vmem:[#allocation68_spill] sm:$0xff] %v4995_v43  ;;  %v5017_v49 = vadd.f32 %v607_v7, %v571_v57  ;;  %v570_v43 = vmul.f32 0.5625, %v315_v54  ;;  %v5034_v7 = vmax.f32 %v314_v15, 0.0  ;;  %v5039_v54 = vld [vmem:[%s7497_s5 + $0x5] ss:$0 sm:$0xff]  ;;  %v5050_v26 = vmul.f32 %v4680_v5, %v5019_v23  ;;  %4222 = vmatpush3.xpose.msk.msra.mxu1 %vm2030_vm0, %v4869_v40 }
  0x3a   : > { %7833 = vst [vmem:[#allocation67_spill] sm:$0xff] %v4993_v17  ;;  %7835 = vst [vmem:[#allocation69_spill] sm:$0xff] %v5013_v2  ;;  %v602_v17 = vmul.f32 0.1875, %v313_v25  ;;  %v5025_v13 = vadd.f32 %v603_v0, %v571_v57  ;;  %v5029_v11 = vmul.f32 %v4680_v5, %v5013_v2  ;;  %v3805_v25 = vld [vmem:[%s4675_s14 + $0xca] sm:$0xff]  ;;  %v569_v57 = vmul.f32 0.5625, %v314_v15  ;;  %4223 = vmatprep.subr.msk.mxu1 %vm2030_vm0, %v4888_v47 }
  0x3b   : > { %7836 = vst [vmem:[#allocation70_spill] sm:$0xff] %v5017_v49  ;;  %7837 = vst [vmem:[#allocation71_spill] sm:$0xff] %v5019_v23  ;;  %v5046_v31 = vadd.f32 %v606_v38, %v570_v43  ;;  %v3789_v49 = vld [vmem:[%s4675_s14 + $0x1a1] sm:$0xff]  ;;  %v5062_v38 = vmul.f32 %v4680_v5, %v5032_v53  ;;  %v1490_v34 = vmul.f32 %v5039_v54, %v4690_v10  ;;  %4190 = vmatpush3.xpose.msk.msra.mxu0 %vm2030_vm0, %v4878_v8 }
  0x3c   : > { %7838 = vst [vmem:[#allocation72_spill] sm:$0xff] %v5025_v13  ;;  %7839 = vst [vmem:[#allocation73_spill] sm:$0xff] %v5032_v53  ;;  %v5044_v0 = vadd.f32 %v602_v17, %v570_v43  ;;  %v5056_v13 = vld [vmem:[%s7497_s5 + $0x7] ss:$0 sm:$0xff]  ;;  %v5066_v17 = vmul.f32 %v4680_v5, %v5034_v7  ;;  %v1219_v43 = vmax.f32 %v3821_v33, 0.0  ;;  %v1506_v5 = vmul.f32 %v5039_v54, %v4688_v9 }
  0x3d   : > { %7840 = vst [vmem:[#allocation74_spill] sm:$0xff] %v5034_v7  ;;  %7842 = vst [vmem:[#allocation76_spill] sm:$0xff] %v5046_v31  ;;  %v5071_v15 = vld [vmem:[%s7497_s5 + $0x1] ss:$0 sm:$0xff]  ;;  %v3820_v31 = vld [vmem:[%s4675_s14 + $0x182] sm:$0xff]  ;;  %v1203_v33 = vmax.f32 %v3805_v25, 0.0  ;;  %v1614_v7 = vmul.f32 %v5056_v13, %v4688_v9  ;;  %4191 = vmatprep.subr.msk.mxu0 %vm2030_vm0, %v4891_v55  ;;  %4224 = vmatpush3.xpose.msk.msra.mxu1 %vm2030_vm0, %v4903_v1 }
  0x3e   : > { %7841 = vst [vmem:[#allocation75_spill] sm:$0xff] %v5044_v0  ;;  %7843 = vst [vmem:[#allocation77_spill] sm:$0xff] %v5050_v26  ;;  %v5076_v0 = vadd.f32 %v605_v41, %v569_v57  ;;  %v5092_v41 = vadd.f32 %v601_v30, %v569_v57  ;;  %v5095_v40 = vmul.f32 %v4707_v20, %v1219_v43  ;;  %v5108_v47 = vmax.f32 %v3820_v31, 0.0  ;;  %v3788_v57 = vld [vmem:[%s4675_s14 + $0x199] sm:$0xff] }
  0x3f   : > { %7844 = vst [vmem:[#allocation78_spill] sm:$0xff] %v5062_v38  ;;  %7845 = vst [vmem:[#allocation79_spill] sm:$0xff] %v5066_v17  ;;  %v5088_v17 = vld [vmem:[%s4675_s14 + $0xc2] sm:$0xff]  ;;  %v5102_v25 = vmul.f32 %v4707_v20, %v1203_v33  ;;  %v1560_v38 = vmul.f32 %v5071_v15, %v5013_v2  ;;  %v1598_v30 = vmul.f32 %v5056_v13, %v4690_v10  ;;  %4225 = vmatprep.subr.msk.mxu1 %vm2030_vm0, %v4913_v58 }
  0x40   : > { %7846 = vst [vmem:[#allocation80_spill] sm:$0xff] %v5076_v0  ;;  %7847 = vst [vmem:[#allocation81_spill] sm:$0xff] %v5088_v17  ;;  %v1283_v0 = vmax.f32 %v3789_v49, 0.0  ;;  %v1468_v49 = vmul.f32 %v5081_v44, %v5095_v40  ;;  %v1505_v33 = vmul.f32 %v5039_v54, %v4702_v16  ;;  %v1467_v55 = vmul.f32 %v5081_v44, %v5108_v47 }
  0x41   : > { %7848 = vst [vmem:[#allocation82_spill] sm:$0xff] %v5092_v41  ;;  %7849 = vst [vmem:[#allocation83_spill] sm:$0xff] %v5095_v40  ;;  %v1452_v31 = vmul.f32 %v5081_v44, %v5102_v25  ;;  %v5124_v8 = vadd.f32 %v1598_v30, %v1560_v38  ;;  %v7854_v1 = vmax.f32 %v5088_v17, 0.0  ;;  %v1282_v38 = vmax.f32 %v3788_v57, 0.0  ;;  %v3819_v30 = vld [vmem:[%s4675_s14 + $0x172] sm:$0xff]  ;;  %4192 = vmatpush3.xpose.msk.msra.mxu0 %vm2030_vm0, %v4893_v51 }
  0x42   : > { %7850 = vst [vmem:[#allocation84_spill] sm:$0xff] %v5102_v25  ;;  %7851 = vst [vmem:[#allocation85_spill] sm:$0xff] %v5108_v47  ;;  %v5115_v43 = vmul.f32 0.0, %v1283_v0  ;;  %v1489_v0 = vmul.f32 %v5039_v54, %v4718_v24  ;;  %v5132_v40 = vadd.f32 %v1506_v5, %v1468_v49  ;;  %v5145_v26 = vadd.f32 %v1505_v33, %v1467_v55 }
  0x43   : > { %7853 = vst [vmem:[#allocation87_spill] sm:$0xff] %v5124_v8  ;;  %v1451_v25 = vmul.f32 %v5081_v44, %v7854_v1  ;;  %v3803_v8 = vld [vmem:[%s4675_s14 + $0xb2] sm:$0xff]  ;;  %v5143_v47 = vadd.f32 %v1490_v34, %v1452_v31  ;;  %v1613_v58 = vmul.f32 %v5056_v13, %v4702_v16  ;;  %v1559_v5 = vmul.f32 %v5071_v15, %v5032_v53 }
  0x44   : > { %7852 = vst [vmem:[#allocation86_spill] sm:$0xff] %v5115_v43  ;;  %v1576_v41 = vmul.f32 %v5071_v15, %v5115_v43  ;;  %4193 = vmatprep.subr.msk.mxu0 %vm2030_vm0, %v4920_v63  ;;  %v5157_v1 = vmul.f32 0.0, %v1282_v38  ;;  %v1597_v34 = vmul.f32 %v5056_v13, %v4718_v24  ;;  %4226 = vmatpush3.xpose.msk.msra.mxu1 %vm2030_vm0, %v4917_v61  ;;  %v1217_v55 = vmax.f32 %v3819_v30, 0.0 }
  0x45   : > { %v5155_v49 = vadd.f32 %v1489_v0, %v1451_v25  ;;  %v1504_v33 = vmul.f32 %v5039_v54, %v4743_v35  ;;  %v1201_v31 = vmax.f32 %v3803_v8, 0.0  ;;  %v1488_v17 = vmul.f32 %v5039_v54, %v4705_v18  ;;  %4227 = vmatprep.subr.msk.mxu1 %vm2030_vm0, %v4936_v39  ;;  %v5182_v8 = vld [vmem:[%s4675_s14 + $0xaa] sm:$0xff]  ;;  %4194 = vmatpush3.xpose.msk.msra.mxu0 %vm2030_vm0, %v4926_v29 }
  0x46   : > { %v5153_v57 = vadd.f32 %v1614_v7, %v1576_v41  ;;  %7855 = vst [vmem:[#allocation88_spill] sm:$0xff] %v5157_v1  ;;  %v5168_v7 = vld [vmem:[%s4675_s14 + $0x16a] sm:$0xff]  ;;  %v1575_v41 = vmul.f32 %v5071_v15, %v5157_v1  ;;  %v5174_v25 = vadd.f32 %v1597_v34, %v1559_v5  ;;  %v5177_v61 = vmul.f32 0.1875, %v4683_v6  ;;  %7858 = vst [vmem:[#allocation91_spill] sm:$0xff] %v5182_v8 }
  0x47   : > { %7856 = vst [vmem:[#allocation89_spill] sm:$0xff] %v5168_v7  ;;  %v1574_v0 = vmul.f32 %v5071_v15, %v4688_v9  ;;  %v5187_v38 = vmul.f32 %v4707_v20, %v1217_v55  ;;  %v5190_v39 = vmul.f32 %v4707_v20, %v1201_v31  ;;  %v1612_v30 = vmul.f32 %v5056_v13, %v4743_v35 }
  0x48   : > { %7857 = vst [vmem:[#allocation90_spill] sm:$0xff] %v5177_v61  ;;  %v1558_v6 = vmul.f32 %v5071_v15, %v4690_v10  ;;  %4195 = vmatprep.subr.msk.mxu0 %vm2030_vm0, %v4939_v12  ;;  %v5198_v5 = vadd.f32 %v1613_v58, %v1575_v41  ;;  %v1596_v34 = vmul.f32 %v5056_v13, %v4705_v18  ;;  %v7574_v55 = vmax.f32 %v5168_v7, 0.0 }
  0x49   : > { %7859 = vst [vmem:[#allocation92_spill] sm:$0xff] %v5187_v38  ;;  %7860 = vst [vmem:[#allocation93_spill] sm:$0xff] %v5190_v39  ;;  %v1503_v31 = vmul.f32 %v5039_v54, %v4760_v45  ;;  %4228 = vmatpush3.xpose.msk.msra.mxu1 %vm2030_vm0, %v4951_v28  ;;  %v1466_v61 = vmul.f32 %v5081_v44, %v5187_v38  ;;  %v1450_v1 = vmul.f32 %v5081_v44, %v5190_v39  ;;  %v3817_v39 = vld [vmem:[%s4675_s14 + $0x15a] sm:$0xff] }
  0x4a   : > { %v5211_v10 = vadd.f32 %v1612_v30, %v1574_v0  ;;  %v7575_v58 = vmax.f32 %v5182_v8, 0.0  ;;  %4229 = vmatprep.subr.msk.mxu1 %vm2030_vm0, %v4961_v19  ;;  %v5216_v41 = vadd.f32 %v1596_v34, %v1558_v6  ;;  %v1465_v9 = vmul.f32 %v5081_v44, %v7574_v55  ;;  %v3801_v0 = vld [vmem:[%s4675_s14 + $0x9a] sm:$0xff]  ;;  %4196 = vmatpush3.xpose.msk.msra.mxu0 %vm2030_vm0, %v4941_v22 }
  0x4b   : > { %v1487_v28 = vmul.f32 %v5039_v54, %v4762_v46  ;;  %v5224_v38 = vmul.f32 0.1875, %v4698_v14  ;;  %v5230_v30 = vadd.f32 %v1504_v33, %v1466_v61  ;;  %v5232_v19 = vadd.f32 %v1488_v17, %v1450_v1  ;;  %4197 = vmatprep.subr.msk.mxu0 %vm2030_vm0, %v4968_v36 }
  0x4c   : > { %v1449_v6 = vmul.f32 %v5081_v44, %v7575_v58  ;;  %v1573_v34 = vmul.f32 %v5071_v15, %v4702_v16  ;;  %v5241_v14 = vadd.f32 %v1503_v31, %v1465_v9  ;;  %v1611_v55 = vmul.f32 %v5056_v13, %v4760_v45  ;;  %v5256_v31 = vld [vmem:[%s4675_s14 + $0x152] sm:$0xff] }
  0x4d   : > { %7861 = vst [vmem:[#allocation94_spill] sm:$0xff] %v5224_v38  ;;  %v1557_v17 = vmul.f32 %v5071_v15, %v4718_v24  ;;  %v1595_v1 = vmul.f32 %v5056_v13, %v4762_v46  ;;  %4230 = vmatpush3.xpose.msk.msra.mxu1 %vm2030_vm0, %v4965_v48  ;;  %v1215_v61 = vmax.f32 %v3817_v39, 0.0  ;;  %v1502_v58 = vmul.f32 %v5039_v54, %v4781_v56  ;;  %v5270_v39 = vld [vmem:[%s4675_s14 + $0x92] sm:$0xff] }
  0x4e   : > { %v5251_v33 = vadd.f32 %v1487_v28, %v1449_v6  ;;  %v1199_v9 = vmax.f32 %v3801_v0, 0.0  ;;  %7862 = vst [vmem:[#allocation95_spill] sm:$0xff] %v5256_v31  ;;  %4231 = vmatprep.subr.msk.mxu1 %vm2030_vm0, %v4983_v21  ;;  %v5260_v38 = vadd.f32 %v1611_v55, %v1573_v34  ;;  %v1486_v7 = vmul.f32 %v5039_v54, %v4787_v59  ;;  %v7879_v16 = vld [vmem:[#allocation78_spill] sm:$0xff] }
  0x4f   : > { %v5262_v8 = vadd.f32 %v1595_v1, %v1557_v17  ;;  %v5267_v48 = vmul.f32 0.1875, %v4725_v27  ;;  %7864 = vst [vmem:[#allocation97_spill] sm:$0xff] %v5270_v39  ;;  %4198 = vmatpush3.xpose.msk.msra.mxu0 %vm2030_vm0, %v4975_v50  ;;  %v5275_v28 = vmul.f32 %v4707_v20, %v1215_v61  ;;  %v1572_v55 = vmul.f32 %v5071_v15, %v4743_v35 }
  0x50   : > { %v5278_v21 = vmul.f32 %v4707_v20, %v1199_v9  ;;  %v1610_v0 = vmul.f32 %v5056_v13, %v4781_v56  ;;  %4199 = vmatprep.subr.msk.mxu0 %vm2030_vm0, %v4986_v52  ;;  %v1556_v27 = vmul.f32 %v5071_v15, %v4705_v18  ;;  %v1594_v6 = vmul.f32 %v5056_v13, %v4787_v59 }
  0x51   : > { %7863 = vst [vmem:[#allocation96_spill] sm:$0xff] %v5267_v48  ;;  %7865 = vst [vmem:[#allocation98_spill] sm:$0xff] %v5275_v28  ;;  %v1501_v17 = vmul.f32 %v5039_v54, %v4798_v3  ;;  %4232 = vmatpush3.xpose.msk.msra.mxu1 %vm2030_vm0, %v4999_v60  ;;  %v1464_v1 = vmul.f32 %v5081_v44, %v5275_v28  ;;  %v7584_v48 = vmax.f32 %v5270_v39, 0.0  ;;  %v7867_v18 = vmax.f32 %v5256_v31, 0.0 }
  0x52   : > { %7866 = vst [vmem:[#allocation99_spill] sm:$0xff] %v5278_v21  ;;  %v1448_v61 = vmul.f32 %v5081_v44, %v5278_v21  ;;  %v5299_v9 = vadd.f32 %v1610_v0, %v1572_v55  ;;  %4233 = vmatprep.subr.msk.mxu1 %vm2030_vm0, %v5006_v37  ;;  %v5304_v34 = vadd.f32 %v1594_v6, %v1556_v27  ;;  %v5312_v28 = vmul.f32 0.1875, %v4733_v32  ;;  %v3815_v21 = vld [vmem:[%s4675_s14 + $0x142] sm:$0xff] }
  0x53   : > { %v1463_v35 = vmul.f32 %v5081_v44, %v7867_v18  ;;  %v1485_v60 = vmul.f32 %v5039_v54, %v4800_v4  ;;  %v3799_v55 = vld [vmem:[%s4675_s14 + $0x82] sm:$0xff]  ;;  %4200 = vmatpush3.xpose.msk.msra.mxu0 %vm2030_vm0, %v4988_v42  ;;  %v5318_v0 = vadd.f32 %v1502_v58, %v1464_v1  ;;  %v1447_v18 = vmul.f32 %v5081_v44, %v7584_v48 }
  0x54   : > { %7868 = vst [vmem:[#allocation100_spill] sm:$0xff] %v5312_v28  ;;  %v5320_v37 = vadd.f32 %v1486_v7, %v1448_v61  ;;  %v1571_v27 = vmul.f32 %v5071_v15, %v4760_v45  ;;  %4201 = vmatprep.subr.msk.mxu0 %vm2030_vm0, %v5013_v2  ;;  %v1609_v6 = vmul.f32 %v5056_v13, %v4798_v3  ;;  %v1213_v61 = vmax.f32 %v3815_v21, 0.0  ;;  %v7869_v48 = vld [vmem:[#allocation31_spill] sm:$0xff] }
  0x55   : > { %v5329_v32 = vadd.f32 %v1501_v17, %v1463_v35  ;;  %v1555_v7 = vmul.f32 %v5071_v15, %v4762_v46  ;;  %v1593_v58 = vmul.f32 %v5056_v13, %v4800_v4  ;;  %4234 = vmatpush3.xpose.msk.msra.mxu1 %vm2030_vm0, %v5010_v62  ;;  %v5339_v1 = vadd.f32 %v1485_v60, %v1447_v18  ;;  %v5344_v17 = vld [vmem:[%s4675_s14 + $0x13a] sm:$0xff]  ;;  %v7871_v46 = vld [vmem:[#allocation33_spill] sm:$0xff] }
  0x56   : > { %v1500_v28 = vmul.f32 %v5039_v54, %v7869_v48  ;;  %v1197_v35 = vmax.f32 %v3799_v55, 0.0  ;;  %7870 = vst [vmem:[#allocation101_spill] sm:$0xff] %v5344_v17  ;;  %4235 = vmatprep.subr.msk.mxu1 %vm2030_vm0, %v5029_v11  ;;  %v5348_v39 = vadd.f32 %v1609_v6, %v1571_v27  ;;  %v1484_v45 = vmul.f32 %v5039_v54, %v7871_v46  ;;  %v7872_v62 = vld [vmem:[#allocation15_spill] sm:$0xff] }
  0x57   : > { %v5350_v31 = vadd.f32 %v1593_v58, %v1555_v7  ;;  %v5355_v60 = vmul.f32 0.1875, %v7872_v62  ;;  %v5358_v21 = vld [vmem:[%s4675_s14 + $0x7a] sm:$0xff]  ;;  %4202 = vmatpush3.xpose.msk.msra.mxu0 %vm2030_vm0, %v5019_v23  ;;  %v5363_v55 = vmul.f32 %v4707_v20, %v1213_v61  ;;  %v1570_v18 = vmul.f32 %v5071_v15, %v4781_v56  ;;  %v7877_v61 = vld [vmem:[#allocation36_spill] sm:$0xff]  ;;  %v7878_v62 = vld [vmem:[#allocation77_spill] sm:$0xff] }
  0x58   : > { %7874 = vst [vmem:[#allocation102_spill] sm:$0xff] %v5358_v21  ;;  %v5366_v11 = vmul.f32 %v4707_v20, %v1197_v35  ;;  %v1608_v27 = vmul.f32 %v5056_v13, %v7869_v48  ;;  %4203 = vmatprep.subr.msk.mxu0 %vm2030_vm0, %v5032_v53  ;;  %v1554_v6 = vmul.f32 %v5071_v15, %v4787_v59  ;;  %v7880_v43 = vmax.f32 %v5344_v17, 0.0  ;;  %v7890_v17 = vld [vmem:[#allocation3_spill] sm:$0xff] }
  0x59   : > { %7873 = vst [vmem:[#allocation15_spill] sm:$0xff] %v5355_v60  ;;  %7875 = vst [vmem:[#allocation103_spill] sm:$0xff] %v5363_v55  ;;  %v1592_v7 = vmul.f32 %v5056_v13, %v7871_v46  ;;  %v1499_v35 = vmul.f32 %v5039_v54, %v7877_v61  ;;  %4236 = vmatpush3.xpose.msk.msra.mxu1 %vm2030_vm0, %v7878_v62  ;;  %v1462_v60 = vmul.f32 %v5081_v44, %v5363_v55  ;;  %v7881_v62 = vld [vmem:[#allocation37_spill] sm:$0xff]  ;;  %v7882_v55 = vld [vmem:[#allocation20_spill] sm:$0xff] }
  0x5a   : > { %7876 = vst [vmem:[#allocation104_spill] sm:$0xff] %v5366_v11  ;;  %v1446_v56 = vmul.f32 %v5081_v44, %v5366_v11  ;;  %v5387_v24 = vadd.f32 %v1608_v27, %v1570_v18  ;;  %4237 = vmatprep.subr.msk.mxu1 %vm2030_vm0, %v7879_v16  ;;  %v1461_v53 = vmul.f32 %v5081_v44, %v7880_v43  ;;  %v5400_v2 = vmul.f32 0.1875, %v7882_v55  ;;  %v3813_v11 = vld [vmem:[%s4675_s14 + $0x12a] sm:$0xff]  ;;  %v7884_v27 = vld [vmem:[#allocation74_spill] sm:$0xff] }
  0x5b   : > { %v5392_v58 = vadd.f32 %v1592_v7, %v1554_v6  ;;  %v1483_v23 = vmul.f32 %v5039_v54, %v7881_v62  ;;  %v3797_v18 = vld [vmem:[%s4675_s14 + $0x6a] sm:$0xff]  ;;  %4204 = vmatpush3.xpose.msk.msra.mxu0 %vm2030_vm0, %v7884_v27  ;;  %v5406_v59 = vadd.f32 %v1500_v28, %v1462_v60  ;;  %v7885_v6 = vmax.f32 %v5358_v21, 0.0  ;;  %v7886_v28 = vld [vmem:[#allocation79_spill] sm:$0xff] }
  0x5c   : > { %7883 = vst [vmem:[#allocation36_spill] sm:$0xff] %v5400_v2  ;;  %v5408_v16 = vadd.f32 %v1484_v45, %v1446_v56  ;;  %v1569_v7 = vmul.f32 %v5071_v15, %v4798_v3  ;;  %4241 = vmatprep.subr.msk.mxu0 %vm2030_vm0, %v5132_v40  ;;  %v5417_v55 = vadd.f32 %v1499_v35, %v1461_v53  ;;  %v7888_v21 = vld [vmem:[#allocation41_spill] sm:$0xff]  ;;  %v1195_v40 = vmax.f32 %v3797_v18, 0.0  ;;  %v5432_v35 = vld [vmem:[%s4675_s14 + $0x122] sm:$0xff] }
  0x5d   : > { %v1445_v43 = vmul.f32 %v5081_v44, %v7885_v6  ;;  %v1607_v2 = vmul.f32 %v5056_v13, %v7877_v61  ;;  %v1553_v45 = vmul.f32 %v5071_v15, %v4800_v4  ;;  %v1591_v56 = vmul.f32 %v5056_v13, %v7881_v62  ;;  %4238 = vmatpush3.xpose.msk.msra.mxu1 %vm2030_vm0, %v7886_v28  ;;  %v7892_v28 = vld [vmem:[#allocation43_spill] sm:$0xff] }
  0x5e   : > { %v1211_v6 = vmax.f32 %v3813_v11, 0.0  ;;  %v1498_v53 = vmul.f32 %v5039_v54, %v7888_v21  ;;  %7889 = vst [vmem:[#allocation78_spill] sm:$0xff] %v5432_v35  ;;  %4206 = vmatmul.mubr.msk.f32.vlgmr.msra.gmra.mxu0 %vm2030_vm0, %v7890_v17  ;;  %4275 = vmatprep.subr.msk.mxu1 %vm2030_vm0, %v5153_v57  ;;  %v7893_v11 = vld [vmem:[#allocation24_spill] sm:$0xff]  ;;  %v5456_v57 = vmul.f32 %v4707_v20, %v1195_v40 }
  0x5f   : > { %v5427_v60 = vadd.f32 %v1483_v23, %v1445_v43  ;;  %v5438_v4 = vadd.f32 %v1607_v2, %v1569_v7  ;;  %v5440_v3 = vadd.f32 %v1591_v56, %v1553_v45  ;;  %v1482_v23 = vmul.f32 %v5039_v54, %v7892_v28  ;;  %4242 = vmatpush3.xpose.msk.msra.mxu0 %vm2030_vm0, %v5143_v47  ;;  %v7898_v7 = vld [vmem:[#allocation4_spill] sm:$0xff] }
  0x60   : > { %v5445_v43 = vmul.f32 0.1875, %v7893_v11  ;;  %v5453_v17 = vmul.f32 %v4707_v20, %v1211_v6  ;;  %7897 = vst [vmem:[#allocation105_spill] sm:$0xff] %v5456_v57  ;;  %v1568_v2 = vmul.f32 %v5071_v15, %v7869_v48  ;;  %v1606_v18 = vmul.f32 %v5056_v13, %v7888_v21  ;;  %4240 = vmatmul.mubr.msk.f32.vlgmr.msra.gmra.mxu1 %vm2030_vm0, %v7898_v7  ;;  %v7899_v6 = vld [vmem:[#allocation46_spill] sm:$0xff]  ;;  %v7900_v11 = vld [vmem:[#allocation87_spill] sm:$0xff] }
  0x61   : > { %7887 = vst [vmem:[#allocation77_spill] sm:$0xff] %v5427_v60  ;;  %7891 = vst [vmem:[#allocation20_spill] sm:$0xff] %v5440_v3  ;;  %v5448_v60 = vld [vmem:[%s4675_s14 + $0x62] sm:$0xff]  ;;  %4243 = vmatprep.subr.msk.mxu0 %vm2030_vm0, %v5145_v26  ;;  %v1552_v47 = vmul.f32 %v5071_v15, %v7871_v46  ;;  %v1590_v45 = vmul.f32 %v5056_v13, %v7892_v28  ;;  %v1497_v40 = vmul.f32 %v5039_v54, %v7899_v6  ;;  %v3795_v46 = vld [vmem:[%s4675_s14 + $0x52] sm:$0xff] }
  0x62   : > { %7894 = vst [vmem:[#allocation79_spill] sm:$0xff] %v5445_v43  ;;  %7895 = vst [vmem:[#allocation3_spill] sm:$0xff] %v5448_v60  ;;  %4276 = vmatpush3.xpose.msk.msra.mxu1 %vm2030_vm0, %v7900_v11  ;;  %v1460_v43 = vmul.f32 %v5081_v44, %v5453_v17  ;;  %v1444_v26 = vmul.f32 %v5081_v44, %v5456_v57  ;;  %v5479_v48 = vadd.f32 %v1606_v18, %v1568_v2  ;;  %v7902_v57 = vld [vmem:[#allocation30_spill] sm:$0xff] }
  0x63   : > { %7896 = vst [vmem:[#allocation24_spill] sm:$0xff] %v5453_v17  ;;  %4273 = vmatprep.mubr.msk.f32.mxu0 %vm2030_vm0, %v7898_v7  ;;  %4277 = vmatprep.subr.msk.mxu1 %vm2030_vm0, %v5198_v5  ;;  %v5486_v56 = vadd.f32 %v1590_v45, %v1552_v47  ;;  %v7901_v11 = vmax.f32 %v5432_v35, 0.0  ;;  %v1481_v17 = vmul.f32 %v5039_v54, %v4893_v51  ;;  %v5494_v2 = vmul.f32 0.1875, %v7902_v57  ;;  %v3811_v18 = vld [vmem:[%s4675_s14 + $0x112] sm:$0xff] }
  0x64   : > { %4307 = vmatprep.mubr.msk.f32.mxu1 %vm2030_vm0, %v7898_v7  ;;  %4244 = vmatpush3.xpose.msk.msra.mxu0 %vm2030_vm0, %v5155_v49  ;;  %v5502_v5 = vadd.f32 %v1498_v53, %v1460_v43  ;;  %v5504_v47 = vadd.f32 %v1482_v23, %v1444_v26  ;;  %v7904_v45 = vmax.f32 %v5448_v60, 0.0  ;;  %v1567_v57 = vmul.f32 %v5071_v15, %v7877_v61 }
  0x65   : > { %v1459_v3 = vmul.f32 %v5081_v44, %v7901_v11  ;;  %7903 = vst [vmem:[#allocation4_spill] sm:$0xff] %v5494_v2  ;;  %4245 = vmatprep.subr.msk.mxu0 %vm2030_vm0, %v5230_v30  ;;  %v1605_v49 = vmul.f32 %v5056_v13, %v7899_v6  ;;  %v1551_v53 = vmul.f32 %v5071_v15, %v7881_v62  ;;  %v1209_v26 = vmax.f32 %v3811_v18, 0.0  ;;  %v5542_v18 = vld [vmem:[%s4675_s14 + $0x4a] sm:$0xff] }
  0x66   : > { %v1443_v11 = vmul.f32 %v5081_v44, %v7904_v45  ;;  %v1589_v23 = vmul.f32 %v5056_v13, %v4893_v51  ;;  %4278 = vmatpush3.xpose.msk.msra.mxu1 %vm2030_vm0, %v5174_v25  ;;  %v1496_v30 = vmul.f32 %v5039_v54, %v4920_v63  ;;  %v1480_v60 = vmul.f32 %v5039_v54, %v4926_v29  ;;  %v7906_v25 = vld [vmem:[#allocation34_spill] sm:$0xff] }
  0x67   : > { %v5513_v7 = vadd.f32 %v1497_v40, %v1459_v3  ;;  %v1193_v3 = vmax.f32 %v3795_v46, 0.0  ;;  %v5528_v40 = vld [vmem:[%s4675_s14 + $0x10a] sm:$0xff]  ;;  %4279 = vmatprep.subr.msk.mxu1 %vm2030_vm0, %v5211_v10  ;;  %v5532_v45 = vadd.f32 %v1605_v49, %v1567_v57  ;;  %7908 = vst [vmem:[#allocation34_spill] sm:$0xff] %v5542_v18  ;;  %v5547_v46 = vmul.f32 %v4707_v20, %v1209_v26 }
  0x68   : > { %v5523_v43 = vadd.f32 %v1481_v17, %v1443_v11  ;;  %7905 = vst [vmem:[#allocation87_spill] sm:$0xff] %v5528_v40  ;;  %v5534_v2 = vadd.f32 %v1589_v23, %v1551_v53  ;;  %v5539_v17 = vmul.f32 0.1875, %v7906_v25  ;;  %4246 = vmatpush3.xpose.msk.msra.mxu0 %vm2030_vm0, %v5232_v19  ;;  %v1566_v11 = vmul.f32 %v5071_v15, %v7888_v21 }
  0x69   : > { %7909 = vst [vmem:[#allocation106_spill] sm:$0xff] %v5547_v46  ;;  %v5550_v10 = vmul.f32 %v4707_v20, %v1193_v3  ;;  %v1604_v57 = vmul.f32 %v5056_v13, %v4920_v63  ;;  %4247 = vmatprep.subr.msk.mxu0 %vm2030_vm0, %v5241_v14  ;;  %v1550_v19 = vmul.f32 %v5071_v15, %v7892_v28  ;;  %v7623_v25 = vmax.f32 %v5542_v18, 0.0 }
  0x6a   : > { %7907 = vst [vmem:[#allocation30_spill] sm:$0xff] %v5539_v17  ;;  %v1588_v49 = vmul.f32 %v5056_v13, %v4926_v29  ;;  %v1495_v23 = vmul.f32 %v5039_v54, %v4939_v12  ;;  %4280 = vmatpush3.xpose.msk.msra.mxu1 %vm2030_vm0, %v5216_v41  ;;  %v1458_v26 = vmul.f32 %v5081_v44, %v5547_v46  ;;  %v7911_v17 = vmax.f32 %v5528_v40, 0.0  ;;  %v7912_v46 = vld [vmem:[#allocation40_spill] sm:$0xff] }
  0x6b   : > { %7910 = vst [vmem:[#allocation107_spill] sm:$0xff] %v5550_v10  ;;  %v1442_v14 = vmul.f32 %v5081_v44, %v5550_v10  ;;  %v5571_v3 = vadd.f32 %v1604_v57, %v1566_v11  ;;  %4281 = vmatprep.subr.msk.mxu1 %vm2030_vm0, %v5260_v38  ;;  %v1479_v41 = vmul.f32 %v5039_v54, %v4941_v22  ;;  %v5584_v28 = vmul.f32 0.1875, %v7912_v46  ;;  %v3809_v10 = vld [vmem:[%s4675_s14 + $0xfa] sm:$0xff] }
  0x6c   : > { %v5576_v53 = vadd.f32 %v1588_v49, %v1550_v19  ;;  %v1457_v35 = vmul.f32 %v5081_v44, %v7911_v17  ;;  %v3793_v11 = vld [vmem:[%s4675_s14 + $0x3a] sm:$0xff]  ;;  %4248 = vmatpush3.xpose.msk.msra.mxu0 %vm2030_vm0, %v5251_v33  ;;  %v5590_v57 = vadd.f32 %v1496_v30, %v1458_v26  ;;  %v1441_v17 = vmul.f32 %v5081_v44, %v7623_v25 }
  0x6d   : > { %7913 = vst [vmem:[#allocation40_spill] sm:$0xff] %v5584_v28  ;;  %v5592_v38 = vadd.f32 %v1480_v60, %v1442_v14  ;;  %v1565_v19 = vmul.f32 %v5071_v15, %v7899_v6  ;;  %4249 = vmatprep.subr.msk.mxu0 %vm2030_vm0, %v5318_v0  ;;  %v1603_v33 = vmul.f32 %v5056_v13, %v4939_v12  ;;  %v1207_v26 = vmax.f32 %v3809_v10, 0.0  ;;  %v5630_v10 = vld [vmem:[%s4675_s14 + $0x32] sm:$0xff] }
  0x6e   : > { %v5601_v46 = vadd.f32 %v1495_v23, %v1457_v35  ;;  %v1549_v60 = vmul.f32 %v5071_v15, %v4893_v51  ;;  %v1587_v30 = vmul.f32 %v5056_v13, %v4941_v22  ;;  %4282 = vmatpush3.xpose.msk.msra.mxu1 %vm2030_vm0, %v5262_v8  ;;  %v5611_v49 = vadd.f32 %v1479_v41, %v1441_v17  ;;  %v5616_v23 = vld [vmem:[%s4675_s14 + $0xf2] sm:$0xff]  ;;  %v7915_v8 = vld [vmem:[#allocation44_spill] sm:$0xff] }
  0x6f   : > { %v1494_v0 = vmul.f32 %v5039_v54, %v4968_v36  ;;  %v1191_v35 = vmax.f32 %v3793_v11, 0.0  ;;  %7914 = vst [vmem:[#allocation108_spill] sm:$0xff] %v5616_v23  ;;  %4283 = vmatprep.subr.msk.mxu1 %vm2030_vm0, %v5299_v9  ;;  %v5620_v14 = vadd.f32 %v1603_v33, %v1565_v19  ;;  %v1478_v28 = vmul.f32 %v5039_v54, %v4975_v50 }
  0x70   : > { %v5622_v25 = vadd.f32 %v1587_v30, %v1549_v60  ;;  %v5627_v41 = vmul.f32 0.1875, %v7915_v8  ;;  %7917 = vst [vmem:[#allocation109_spill] sm:$0xff] %v5630_v10  ;;  %4250 = vmatpush3.xpose.msk.msra.mxu0 %vm2030_vm0, %v5320_v37  ;;  %v5635_v11 = vmul.f32 %v4707_v20, %v1207_v26  ;;  %v1564_v17 = vmul.f32 %v5071_v15, %v4920_v63 }
  0x71   : > { %v5638_v9 = vmul.f32 %v4707_v20, %v1191_v35  ;;  %v1602_v19 = vmul.f32 %v5056_v13, %v4968_v36  ;;  %4251 = vmatprep.subr.msk.mxu0 %vm2030_vm0, %v5329_v32  ;;  %v1548_v37 = vmul.f32 %v5071_v15, %v4926_v29  ;;  %v1586_v33 = vmul.f32 %v5056_v13, %v4975_v50  ;;  %v7940_v29 = vld [vmem:[#allocation6_spill] sm:$0xff] }
  0x72   : > { %7916 = vst [vmem:[#allocation44_spill] sm:$0xff] %v5627_v41  ;;  %7918 = vst [vmem:[#allocation110_spill] sm:$0xff] %v5635_v11  ;;  %v1493_v30 = vmul.f32 %v5039_v54, %v4986_v52  ;;  %4284 = vmatpush3.xpose.msk.msra.mxu1 %vm2030_vm0, %v5304_v34  ;;  %v1456_v26 = vmul.f32 %v5081_v44, %v5635_v11  ;;  %v7628_v8 = vmax.f32 %v5630_v10, 0.0  ;;  %v7920_v41 = vmax.f32 %v5616_v23, 0.0  ;;  %v7921_v11 = vld [vmem:[#allocation50_spill] sm:$0xff]  ;;  %v7924_v10 = vld [vmem:[#allocation71_spill] sm:$0xff] }
  0x73   : > { %7919 = vst [vmem:[#allocation111_spill] sm:$0xff] %v5638_v9  ;;  %v1440_v32 = vmul.f32 %v5081_v44, %v5638_v9  ;;  %v5659_v35 = vadd.f32 %v1602_v19, %v1564_v17  ;;  %4285 = vmatprep.subr.msk.mxu1 %vm2030_vm0, %v5348_v39  ;;  %v5664_v60 = vadd.f32 %v1586_v33, %v1548_v37  ;;  %v5672_v40 = vmul.f32 0.1875, %v7921_v11  ;;  %v3807_v9 = vld [vmem:[%s4675_s14 + $0xe2] sm:$0xff] }
  0x74   : > { %v1455_v18 = vmul.f32 %v5081_v44, %v7920_v41  ;;  %v1477_v34 = vmul.f32 %v5039_v54, %v4988_v42  ;;  %v3791_v17 = vld [vmem:[%s4675_s14 + $0x22] sm:$0xff]  ;;  %4252 = vmatpush3.xpose.msk.msra.mxu0 %vm2030_vm0, %v5339_v1  ;;  %v5678_v19 = vadd.f32 %v1494_v0, %v1456_v26  ;;  %v1439_v41 = vmul.f32 %v5081_v44, %v7628_v8 }
  0x75   : > { %7922 = vst [vmem:[#allocation50_spill] sm:$0xff] %v5672_v40  ;;  %v5680_v39 = vadd.f32 %v1478_v28, %v1440_v32  ;;  %v1563_v37 = vmul.f32 %v5071_v15, %v4939_v12  ;;  %4253 = vmatprep.subr.msk.mxu0 %vm2030_vm0, %v5406_v59  ;;  %v1601_v1 = vmul.f32 %v5056_v13, %v4986_v52  ;;  %v1205_v26 = vmax.f32 %v3807_v9, 0.0  ;;  %v7923_v32 = vld [vmem:[#allocation69_spill] sm:$0xff]  ;;  %v3852_v12 = vld [vmem:[%s4675_s14 + $0x19a] sm:$0xff] }
  0x76   : > { %v5689_v11 = vadd.f32 %v1493_v30, %v1455_v18  ;;  %v1547_v28 = vmul.f32 %v5071_v15, %v4941_v22  ;;  %v1585_v0 = vmul.f32 %v5056_v13, %v4988_v42  ;;  %4286 = vmatpush3.xpose.msk.msra.mxu1 %vm2030_vm0, %v5350_v31  ;;  %v5699_v33 = vadd.f32 %v1477_v34, %v1439_v41  ;;  %v3806_v30 = vld [vmem:[%s4675_s14 + $0xda] sm:$0xff] }
  0x77   : > { %v1492_v59 = vmul.f32 %v5039_v54, %v7923_v32  ;;  %v1189_v18 = vmax.f32 %v3791_v17, 0.0  ;;  %4287 = vmatprep.subr.msk.mxu1 %vm2030_vm0, %v5387_v24  ;;  %v5706_v8 = vadd.f32 %v1601_v1, %v1563_v37  ;;  %v1476_v23 = vmul.f32 %v5039_v54, %v7924_v10  ;;  %v7925_v22 = vld [vmem:[#allocation54_spill] sm:$0xff]  ;;  %v7931_v1 = vld [vmem:[#allocation73_spill] sm:$0xff] }
  0x78   : > { %v5708_v40 = vadd.f32 %v1585_v0, %v1547_v28  ;;  %v5713_v31 = vmul.f32 0.1875, %v7925_v22  ;;  %v5716_v34 = vld [vmem:[%s4675_s14 + $0x1a] sm:$0xff]  ;;  %4254 = vmatpush3.xpose.msk.msra.mxu0 %vm2030_vm0, %v5408_v16  ;;  %v5721_v9 = vmul.f32 %v4707_v20, %v1205_v26  ;;  %v1562_v17 = vmul.f32 %v5071_v15, %v4968_v36  ;;  %v3853_v36 = vld [vmem:[%s4675_s14 + $0x1a2] sm:$0xff] }
  0x79   : > { %7927 = vst [vmem:[#allocation112_spill] sm:$0xff] %v5716_v34  ;;  %v5724_v24 = vmul.f32 %v4707_v20, %v1189_v18  ;;  %v1600_v41 = vmul.f32 %v5056_v13, %v7923_v32  ;;  %4255 = vmatprep.subr.msk.mxu0 %vm2030_vm0, %v5417_v55  ;;  %v1546_v22 = vmul.f32 %v5071_v15, %v4975_v50  ;;  %v5736_v37 = vmax.f32 %v3806_v30, 0.0 }
  0x7a   : > { %7926 = vst [vmem:[#allocation54_spill] sm:$0xff] %v5713_v31  ;;  %7928 = vst [vmem:[#allocation113_spill] sm:$0xff] %v5721_v9  ;;  %v1584_v16 = vmul.f32 %v5056_v13, %v7924_v10  ;;  %v1491_v28 = vmul.f32 %v5039_v54, %v7931_v1  ;;  %4288 = vmatpush3.xpose.msk.msra.mxu1 %vm2030_vm0, %v5392_v58  ;;  %v1454_v0 = vmul.f32 %v5081_v44, %v5721_v9  ;;  %v7932_v10 = vld [vmem:[#allocation60_spill] sm:$0xff] }
  0x7b   : > { %7929 = vst [vmem:[#allocation114_spill] sm:$0xff] %v5724_v24  ;;  %7930 = vst [vmem:[#allocation115_spill] sm:$0xff] %v5736_v37  ;;  %v1438_v55 = vmul.f32 %v5081_v44, %v5724_v24  ;;  %v5746_v26 = vadd.f32 %v1600_v41, %v1562_v17  ;;  %v7638_v18 = vmax.f32 %v5716_v34, 0.0  ;;  %4289 = vmatprep.subr.msk.mxu1 %vm2030_vm0, %v5438_v4  ;;  %v5758_v50 = vmul.f32 0.1875, %v7932_v10  ;;  %v5764_v17 = vld [vmem:[%s7497_s5 + $0x2] ss:$0 sm:$0xff] }
  0x7c   : > { %v5751_v30 = vadd.f32 %v1584_v16, %v1546_v22  ;;  %v1453_v31 = vmul.f32 %v5081_v44, %v5736_v37  ;;  %v1475_v58 = vmul.f32 %v5039_v54, %v7884_v27  ;;  %v7934_v41 = vld [vmem:[#allocation77_spill] sm:$0xff]  ;;  %v5768_v4 = vadd.f32 %v1492_v59, %v1454_v0  ;;  %v5780_v16 = vld [vmem:[%s7497_s5 + $0x6] ss:$0 sm:$0xff]  ;;  %v5785_v59 = vld [vmem:[%s7497_s5 + $0x8] ss:$0 sm:$0xff] }
  0x7d   : > { %7933 = vst [vmem:[#allocation60_spill] sm:$0xff] %v5758_v50  ;;  %4256 = vmatpush3.xpose.msk.msra.mxu0 %vm2030_vm0, %v7934_v41  ;;  %v5770_v22 = vadd.f32 %v1476_v23, %v1438_v55  ;;  %v1437_v54 = vmul.f32 %v5081_v44, %v7638_v18  ;;  %v1561_v10 = vmul.f32 %v5071_v15, %v4986_v52  ;;  %v5800_v41 = vld [vmem:[%s7497_s5] ss:$0 sm:$0xff]  ;;  %v7935_v18 = vld [vmem:[#allocation20_spill] sm:$0xff]  ;;  %v7936_v50 = vld [vmem:[#allocation86_spill] sm:$0xff] }
  0x7e   : > { %4257 = vmatprep.subr.msk.mxu0 %vm2030_vm0, %v5502_v5  ;;  %v5789_v23 = vadd.f32 %v1491_v28, %v1453_v31  ;;  %v1599_v44 = vmul.f32 %v5056_v13, %v7931_v1  ;;  %v1545_v0 = vmul.f32 %v5071_v15, %v4988_v42  ;;  %v1583_v55 = vmul.f32 %v5056_v13, %v7884_v27  ;;  %v343_v34 = vld [vmem:[%s4675_s14 + $0x171] sm:$0xff]  ;;  %v3725_v13 = vld [vmem:[%s4675_s14 + $0x188] sm:$0xff] }
  0x7f   : > { %4290 = vmatpush3.xpose.msk.msra.mxu1 %vm2030_vm0, %v7935_v18  ;;  %v5804_v5 = vadd.f32 %v1475_v58, %v1437_v54  ;;  %v1347_v31 = vmax.f32 %v3853_v36, 0.0  ;;  %v1351_v28 = vmul.f32 0.0, %v4707_v20  ;;  %v1722_v15 = vmul.f32 %v5764_v17, %v7936_v50  ;;  %v7937_v18 = vld [vmem:[#allocation83_spill] sm:$0xff]  ;;  %v7938_v58 = vld [vmem:[#allocation5_spill] sm:$0xff]  ;;  %v3709_v50 = vld [vmem:[%s4675_s14 + $0xc8] sm:$0xff] }
  0x80   : > { %4291 = vmatprep.subr.msk.mxu1 %vm2030_vm0, %v5479_v48  ;;  %v5813_v27 = vadd.f32 %v1599_v44, %v1561_v10  ;;  %v5815_v24 = vadd.f32 %v1583_v55, %v1545_v0  ;;  %v1792_v36 = vmul.f32 %v5780_v16, %v7937_v18  ;;  %v1862_v54 = vmul.f32 %v5785_v59, %v7938_v58  ;;  %v5822_v42 = vld [vmem:[%s4675_s14 + $0x170] sm:$0xff]  ;;  %v7939_v44 = vld [vmem:[#allocation84_spill] sm:$0xff] }
  0x81   : > { %4258 = vmatpush3.xpose.msk.msra.mxu0 %vm2030_vm0, %v5504_v47  ;;  %v1383_v52 = vmul.f32 %v1351_v28, %v1347_v31  ;;  %v1668_v48 = vmul.f32 %v5800_v41, %v5721_v9  ;;  %v1706_v10 = vmul.f32 %v5764_v17, %v7923_v32  ;;  %v1776_v0 = vmul.f32 %v5780_v16, %v7939_v44  ;;  %v5834_v55 = vld [vmem:[%s4675_s14 + $0xb0] sm:$0xff] }
  0x82   : > { %4259 = vmatprep.subr.msk.mxu0 %vm2030_vm0, %v5513_v7  ;;  %v1846_v63 = vmul.f32 %v5785_v59, %v7940_v29  ;;  %v4507_v47 = vld [vmem:[%s4675_s14 + $0x189] sm:$0xff]  ;;  %v632_v28 = vmul.f32 0.1875, %v343_v34  ;;  %v5844_v9 = vmul.f32 0.1875, %v3725_v13  ;;  %v824_v6 = vmul.f32 0.0625, %v5822_v42 }
  0x83   : > { %v5842_v31 = vmul.f32 0.5625, %v4507_v47  ;;  %4292 = vmatpush3.xpose.msk.msra.mxu1 %vm2030_vm0, %v5486_v56  ;;  %v1684_v32 = vmul.f32 %v5800_v41, %v1383_v52  ;;  %v1738_v51 = vadd.f32 %v1706_v10, %v1668_v48  ;;  %v5850_v21 = vmul.f32 0.1875, %v3709_v50  ;;  %v7945_v47 = vld [vmem:[#allocation88_spill] sm:$0xff]  ;;  %v7946_v50 = vld [vmem:[#allocation9_spill] sm:$0xff] }
  0x84   : > { %7942 = vst [vmem:[#allocation20_spill] sm:$0xff] %v5844_v9  ;;  %4293 = vmatprep.subr.msk.mxu1 %vm2030_vm0, %v5532_v45  ;;  %v808_v34 = vmul.f32 0.0625, %v5834_v55  ;;  %v1346_v13 = vmax.f32 %v3852_v12, 0.0  ;;  %v1721_v62 = vmul.f32 %v5764_v17, %v7945_v47  ;;  %v7947_v48 = vld [vmem:[#allocation85_spill] sm:$0xff]  ;;  %v7948_v47 = vld [vmem:[#allocation7_spill] sm:$0xff] }
  0x85   : > { %7941 = vst [vmem:[#allocation77_spill] sm:$0xff] %v5842_v31  ;;  %7943 = vst [vmem:[#allocation86_spill] sm:$0xff] %v5850_v21  ;;  %v5855_v7 = vadd.f32 %v632_v28, %v5842_v31  ;;  %4260 = vmatpush3.xpose.msk.msra.mxu0 %vm2030_vm0, %v5523_v43  ;;  %v1754_v52 = vadd.f32 %v1722_v15, %v1684_v32  ;;  %v1808_v56 = vadd.f32 %v1776_v0, %v1738_v51  ;;  %v2024_v51 = vld [vmem:[%s7496_s4] sm:$0xff]  ;;  %v4591_v0 = vmov 0  }
  0x86   : > { %v776_v45 = vadd.f32 %v7946_v50, %v5850_v21  ;;  %v1791_v10 = vmul.f32 %v5780_v16, %v7947_v48  ;;  %4261 = vmatprep.subr.msk.mxu0 %vm2030_vm0, %v5590_v57  ;;  %v1382_v28 = vmul.f32 0.0, %v1346_v13  ;;  %v1861_v43 = vmul.f32 %v5785_v59, %v7948_v47  ;;  %4506 = vset.pattern.permute.xlu0 %v4591_v0  ;;  %v342_v13 = vld [vmem:[%s4675_s14 + $0x169] sm:$0xff]  ;;  %v4508_v31 = vld [vmem:[%s4675_s14 + $0x181] sm:$0xff] }
  0x87   : > { %7944 = vst [vmem:[#allocation83_spill] sm:$0xff] %v5855_v7  ;;  %v792_v12 = vadd.f32 %v5855_v7, %v5844_v9  ;;  %4294 = vmatpush3.xpose.msk.msra.mxu1 %vm2030_vm0, %v5534_v2  ;;  %v1824_v32 = vadd.f32 %v1792_v36, %v1754_v52  ;;  %v5877_v15 = vadd.f32 %v1846_v63, %v1808_v56  ;;  %v3724_v9 = vld [vmem:[%s4675_s14 + $0x180] sm:$0xff]  ;;  %v5884_v21 = vmul.f32 0.5625, %v4508_v31  ;;  %v5900_v56 = vld [vmem:[%s4675_s14 + $0xa8] sm:$0xff] }
  0x88   : > { %v5879_v57 = vadd.f32 %v808_v34, %v776_v45  ;;  %4295 = vmatprep.subr.msk.mxu1 %vm2030_vm0, %v5571_v3  ;;  %v1683_v2 = vmul.f32 %v5800_v41, %v1382_v28  ;;  %v1667_v63 = vmul.f32 %v5800_v41, %v5736_v37  ;;  %v1705_v36 = vmul.f32 %v5764_v17, %v7931_v1  ;;  %v5896_v34 = vld [vmem:[%s4675_s14 + $0x168] sm:$0xff]  ;;  %v3708_v52 = vld [vmem:[%s4675_s14 + $0xc0] sm:$0xff]  ;;  %v7949_v3 = vld [vmem:[#allocation81_spill] sm:$0xff] }
  0x89   : > { %v5888_v50 = vadd.f32 %v824_v6, %v792_v12  ;;  %4262 = vmatpush3.xpose.msk.msra.mxu0 %vm2030_vm0, %v5592_v38  ;;  %v5904_v31 = vadd.f32 %v1862_v54, %v1824_v32  ;;  %v7950_v45 = vmax.f32 %v7949_v3, 0.0  ;;  %v7951_v28 = vld [vmem:[#allocation10_spill] sm:$0xff]  ;;  %2027 = vperm.xlu0 %4506, %v2024_v51   ;;  %v631_v38 = vmul.f32 0.1875, %v342_v13 }
  0x8a   : > { %v1845_v0 = vmul.f32 %v5785_v59, %v7951_v28  ;;  %4263 = vmatprep.subr.msk.mxu0 %vm2030_vm0, %v5601_v46  ;;  %v1753_v1 = vadd.f32 %v1721_v62, %v1683_v2  ;;  %v1737_v37 = vadd.f32 %v1705_v36, %v1667_v63  ;;  %v5917_v54 = vmul.f32 0.1875, %v3724_v9  ;;  %v7953_v63 = vld [vmem:[#allocation92_spill] sm:$0xff] }
  0x8b   : > { %v1775_v12 = vmul.f32 %v5780_v16, %v7950_v45  ;;  %4296 = vmatpush3.xpose.msk.msra.mxu1 %vm2030_vm0, %v5576_v53  ;;  %v823_v32 = vmul.f32 0.0625, %v5896_v34  ;;  %v5920_v3 = vmul.f32 0.1875, %v3708_v52  ;;  %v807_v51 = vmul.f32 0.0625, %v5900_v56  ;;  %v7952_v53 = vld [vmem:[#allocation13_spill] sm:$0xff] }
  0x8c   : > { %4297 = vmatprep.subr.msk.mxu1 %vm2030_vm0, %v5620_v14  ;;  %v1823_v46 = vadd.f32 %v1791_v10, %v1753_v1  ;;  %v5926_v62 = vadd.f32 %v631_v38, %v5884_v21  ;;  %v1682_v13 = vmul.f32 %v5800_v41, %v7937_v18  ;;  %v1720_v2 = vmul.f32 %v5764_v17, %v7938_v58  ;;  %v341_v10 = vld [vmem:[%s4675_s14 + $0x159] sm:$0xff] }
  0x8d   : > { %v1807_v45 = vadd.f32 %v1775_v12, %v1737_v37  ;;  %4264 = vmatpush3.xpose.msk.msra.mxu0 %vm2030_vm0, %v5611_v49  ;;  %v775_v9 = vadd.f32 %v7952_v53, %v5920_v3  ;;  %v1790_v14 = vmul.f32 %v5780_v16, %v7953_v63  ;;  %v7954_v37 = vld [vmem:[#allocation12_spill] sm:$0xff]  ;;  %v1666_v58 = vmul.f32 %v5800_v41, %v7939_v44 }
  0x8e   : > { %v1860_v1 = vmul.f32 %v5785_v59, %v7954_v37  ;;  %4265 = vmatprep.subr.msk.mxu0 %vm2030_vm0, %v5678_v19  ;;  %v5943_v18 = vadd.f32 %v1861_v43, %v1823_v46  ;;  %v791_v36 = vadd.f32 %v5926_v62, %v5917_v54  ;;  %v1752_v12 = vadd.f32 %v1720_v2, %v1682_v13  ;;  %v7955_v43 = vld [vmem:[#allocation93_spill] sm:$0xff]  ;;  %v7956_v44 = vld [vmem:[#allocation8_spill] sm:$0xff] }
  0x8f   : > { %v5945_v49 = vadd.f32 %v1845_v0, %v1807_v45  ;;  %4298 = vmatpush3.xpose.msk.msra.mxu1 %vm2030_vm0, %v5622_v25  ;;  %v5953_v52 = vadd.f32 %v807_v51, %v775_v9  ;;  %v1704_v19 = vmul.f32 %v5764_v17, %v7940_v29  ;;  %v1774_v38 = vmul.f32 %v5780_v16, %v7955_v43  ;;  %v5960_v0 = vld [vmem:[%s4675_s14 + $0x158] sm:$0xff]  ;;  %v3834_v43 = vld [vmem:[%s4675_s14 + $0xc2] sm:$0xff] }
  0x90   : > { %4299 = vmatprep.subr.msk.mxu1 %vm2030_vm0, %v5659_v35  ;;  %v5964_v46 = vadd.f32 %v823_v32, %v791_v36  ;;  %v1844_v25 = vmul.f32 %v5785_v59, %v7956_v44  ;;  %v4509_v51 = vld [vmem:[%s4675_s14 + $0x171] sm:$0xff]  ;;  %v630_v13 = vmul.f32 0.1875, %v341_v10  ;;  %v1822_v2 = vadd.f32 %v1790_v14, %v1752_v12 }
  0x91   : > { %v5969_v45 = vmul.f32 0.5625, %v4509_v51  ;;  %v5972_v9 = vld [vmem:[%s4675_s14 + $0x98] sm:$0xff]  ;;  %4266 = vmatpush3.xpose.msk.msra.mxu0 %vm2030_vm0, %v5680_v39  ;;  %v1736_v63 = vadd.f32 %v1704_v19, %v1666_v58  ;;  %v5978_v35 = vmul.f32 0.1875, %v5822_v42  ;;  %v822_v36 = vmul.f32 0.0625, %v5960_v0  ;;  %v6028_v32 = vld [vmem:[%s4675_s14 + $0x150] sm:$0xff] }
  0x92   : > { %4267 = vmatprep.subr.msk.mxu0 %vm2030_vm0, %v5689_v11  ;;  %v5988_v39 = vmul.f32 0.1875, %v5834_v55  ;;  %v5993_v42 = vadd.f32 %v1860_v1, %v1822_v2  ;;  %v806_v11 = vmul.f32 0.0625, %v5972_v9  ;;  %v1681_v58 = vmul.f32 %v5800_v41, %v7947_v48  ;;  %v7957_v12 = vld [vmem:[#allocation18_spill] sm:$0xff]  ;;  %v7958_v1 = vld [vmem:[#allocation89_spill] sm:$0xff]  ;;  %v7960_v48 = vld [vmem:[#allocation16_spill] sm:$0xff] }
  0x93   : > { %v5984_v10 = vadd.f32 %v630_v13, %v5969_v45  ;;  %4300 = vmatpush3.xpose.msk.msra.mxu1 %vm2030_vm0, %v5664_v60  ;;  %v1806_v14 = vadd.f32 %v1774_v38, %v1736_v63  ;;  %v1719_v60 = vmul.f32 %v5764_v17, %v7948_v47  ;;  %v7959_v38 = vmax.f32 %v7958_v1, 0.0  ;;  %v340_v13 = vld [vmem:[%s4675_s14 + $0x151] sm:$0xff] }
  0x94   : > { %4301 = vmatprep.subr.msk.mxu1 %vm2030_vm0, %v5706_v8  ;;  %v774_v19 = vadd.f32 %v7957_v12, %v5988_v39  ;;  %v1859_v2 = vmul.f32 %v5785_v59, %v7960_v48  ;;  %v1328_v63 = vmax.f32 %v3834_v43, 0.0  ;;  %v1703_v47 = vmul.f32 %v5764_v17, %v7951_v28  ;;  %v7963_v28 = vld [vmem:[#allocation17_spill] sm:$0xff] }
  0x95   : > { %v790_v55 = vadd.f32 %v5984_v10, %v5978_v35  ;;  %v1789_v51 = vmul.f32 %v5780_v16, %v7959_v38  ;;  %4268 = vmatpush3.xpose.msk.msra.mxu0 %vm2030_vm0, %v5699_v33  ;;  %v6012_v8 = vadd.f32 %v1844_v25, %v1806_v14  ;;  %v1751_v29 = vadd.f32 %v1719_v60, %v1681_v58  ;;  %v7961_v33 = vld [vmem:[#allocation91_spill] sm:$0xff]  ;;  %v6039_v58 = vld [vmem:[%s4675_s14 + $0x90] sm:$0xff] }
  0x96   : > { %4269 = vmatprep.subr.msk.mxu0 %vm2030_vm0, %v5768_v4  ;;  %v6022_v38 = vadd.f32 %v806_v11, %v774_v19  ;;  %v7962_v25 = vmax.f32 %v7961_v33, 0.0  ;;  %v1665_v43 = vmul.f32 %v5800_v41, %v1328_v63  ;;  %v1843_v6 = vmul.f32 %v5785_v59, %v7963_v28  ;;  %v4510_v4 = vld [vmem:[%s4675_s14 + $0x169] sm:$0xff] }
  0x97   : > { %v6020_v1 = vadd.f32 %v822_v36, %v790_v55  ;;  %4302 = vmatpush3.xpose.msk.msra.mxu1 %vm2030_vm0, %v5708_v40  ;;  %v6036_v36 = vmul.f32 0.5625, %v4510_v4  ;;  %v629_v11 = vmul.f32 0.1875, %v340_v13  ;;  %v6042_v55 = vld [vmem:[%s4675_s14 + $0x172] sm:$0xff]  ;;  %v1821_v60 = vadd.f32 %v1789_v51, %v1751_v29  ;;  %v339_v40 = vld [vmem:[%s4675_s14 + $0x141] sm:$0xff] }
  0x98   : > { %v1773_v14 = vmul.f32 %v5780_v16, %v7962_v25  ;;  %4303 = vmatprep.subr.msk.mxu1 %vm2030_vm0, %v5746_v26  ;;  %v6049_v63 = vmul.f32 0.1875, %v5896_v34  ;;  %v1735_v33 = vadd.f32 %v1703_v47, %v1665_v43  ;;  %v821_v25 = vmul.f32 0.0625, %v6028_v32  ;;  %v6061_v26 = vld [vmem:[%s4675_s14 + $0xb2] sm:$0xff] }
  0x99   : > { %7964 = vst [vmem:[#allocation5_spill] sm:$0xff] %v6036_v36  ;;  %4270 = vmatpush3.xpose.msk.msra.mxu0 %vm2030_vm0, %v5770_v22  ;;  %v6054_v13 = vadd.f32 %v629_v11, %v6036_v36  ;;  %v6058_v4 = vmul.f32 0.1875, %v5900_v56  ;;  %v6065_v34 = vadd.f32 %v1859_v2, %v1821_v60  ;;  %v805_v29 = vmul.f32 0.0625, %v6039_v58  ;;  %v7968_v43 = vld [vmem:[#allocation22_spill] sm:$0xff]  ;;  %v7970_v60 = vld [vmem:[#allocation21_spill] sm:$0xff] }
  0x9a   : > { %7965 = vst [vmem:[#allocation84_spill] sm:$0xff] %v6049_v63  ;;  %4271 = vmatprep.subr.msk.mxu0 %vm2030_vm0, %v5789_v23  ;;  %v1343_v22 = vmax.f32 %v6042_v55, 0.0  ;;  %v1718_v51 = vmul.f32 %v5764_v17, %v7954_v37  ;;  %v1805_v56 = vadd.f32 %v1773_v14, %v1735_v33  ;;  %v7969_v2 = vld [vmem:[#allocation98_spill] sm:$0xff]  ;;  %v1327_v14 = vmax.f32 %v6061_v26, 0.0 }
  0x9b   : > { %7966 = vst [vmem:[#allocation6_spill] sm:$0xff] %v6054_v13  ;;  %7967 = vst [vmem:[#allocation88_spill] sm:$0xff] %v6058_v4  ;;  %4304 = vmatpush3.xpose.msk.msra.mxu1 %vm2030_vm0, %v5751_v30  ;;  %v789_v47 = vadd.f32 %v6054_v13, %v6049_v63  ;;  %v773_v23 = vadd.f32 %v7968_v43, %v6058_v4  ;;  %v1788_v11 = vmul.f32 %v5780_v16, %v7969_v2  ;;  %v6099_v63 = vld [vmem:[%s4675_s14 + $0x140] sm:$0xff] }
  0x9c   : > { %4305 = vmatprep.subr.msk.mxu1 %vm2030_vm0, %v5813_v27  ;;  %v1379_v37 = vmul.f32 %v4707_v20, %v1343_v22  ;;  %v1858_v30 = vmul.f32 %v5785_v59, %v7970_v60  ;;  %v1702_v33 = vmul.f32 %v5764_v17, %v7956_v44  ;;  %v6090_v2 = vadd.f32 %v1843_v6, %v1805_v56  ;;  %v7971_v22 = vld [vmem:[#allocation99_spill] sm:$0xff] }
  0x9d   : > { %4272 = vmatpush3.xpose.msk.msra.mxu0 %vm2030_vm0, %v5804_v5  ;;  %v6092_v27 = vadd.f32 %v821_v25, %v789_v47  ;;  %v6094_v19 = vadd.f32 %v805_v29, %v773_v23  ;;  %v1772_v7 = vmul.f32 %v5780_v16, %v7971_v22  ;;  %v1363_v4 = vmul.f32 %v4707_v20, %v1327_v14  ;;  %v7972_v5 = vld [vmem:[#allocation23_spill] sm:$0xff]  ;;  %v6114_v47 = vld [vmem:[%s4675_s14 + $0x16a] sm:$0xff] }
  0x9e   : > { %4309 = vmatprep.subr.msk.mxu0 %vm2030_vm0, %v5904_v31  ;;  %v1680_v44 = vmul.f32 %v5800_v41, %v1379_v37  ;;  %v1842_v6 = vmul.f32 %v5785_v59, %v7972_v5  ;;  %v4511_v25 = vld [vmem:[%s4675_s14 + $0x159] sm:$0xff]  ;;  %v628_v37 = vmul.f32 0.1875, %v339_v40  ;;  %v6121_v14 = vmul.f32 0.1875, %v5960_v0  ;;  %v6124_v22 = vld [vmem:[%s4675_s14 + $0xaa] sm:$0xff] }
  0x9f   : > { %v6108_v56 = vmul.f32 0.5625, %v4511_v25  ;;  %v6111_v29 = vld [vmem:[%s4675_s14 + $0x80] sm:$0xff]  ;;  %4306 = vmatpush3.xpose.msk.msra.mxu1 %vm2030_vm0, %v5815_v24  ;;  %v7975_v24 = vmax.f32 %v5888_v50, 0.0  ;;  %v1664_v40 = vmul.f32 %v5800_v41, %v1363_v4  ;;  %v820_v0 = vmul.f32 0.0625, %v6099_v63  ;;  %v7978_v4 = vld [vmem:[#allocation28_spill] sm:$0xff] }
  0xa0   : > { %7974 = vst [vmem:[#allocation7_spill] sm:$0xff] %v6121_v14  ;;  %v6129_v25 = vld [vmem:[%s7495_s3] sm:$0xff]  ;;  %v1750_v23 = vadd.f32 %v1718_v51, %v1680_v44  ;;  %v6139_v31 = vmul.f32 0.1875, %v5972_v9  ;;  %v804_v43 = vmul.f32 0.0625, %v6111_v29  ;;  %v1342_v50 = vmax.f32 %v6114_v47, 0.0 }
  0xa1   : > { %7973 = vst [vmem:[#allocation85_spill] sm:$0xff] %v6108_v56  ;;  %4274 = vmatmul.mubr.msk.f32.vlgmr.msra.gmra.mxu0 %vm2030_vm0, %v6129_v25  ;;  %4343 = vmatprep.subr.msk.mxu1 %vm2030_vm0, %v7975_v24  ;;  %v6144_v36 = vadd.f32 %v628_v37, %v6108_v56  ;;  %v1717_v51 = vmul.f32 %v5764_v17, %v7960_v48  ;;  %v1326_v37 = vmax.f32 %v6124_v22, 0.0  ;;  %v7979_v24 = vmax.f32 %v5879_v57, 0.0  ;;  %v7980_v13 = vld [vmem:[#allocation95_spill] sm:$0xff] }
  0xa2   : > { %7976 = vst [vmem:[#allocation81_spill] sm:$0xff] %v6139_v31  ;;  %4310 = vmatpush3.xpose.msk.msra.mxu0 %vm2030_vm0, %v5877_v15  ;;  %4341 = vmatprep.mubr.msk.f32.mxu0 %vm2030_vm0, %v6129_v25  ;;  %v1820_v15 = vadd.f32 %v1788_v11, %v1750_v23  ;;  %v1734_v9 = vadd.f32 %v1702_v33, %v1664_v40  ;;  %v7982_v33 = vld [vmem:[#allocation26_spill] sm:$0xff]  ;;  %v6173_v57 = vld [vmem:[%s7494_s2] sm:$0xff]  ;;  %v7983_v40 = vmax.f32 %v5964_v46, 0.0 }
  0xa3   : > { %7977 = vst [vmem:[#allocation10_spill] sm:$0xff] %v6144_v36  ;;  %4308 = vmatmul.mubr.msk.f32.vlgmr.msra.gmra.mxu1 %vm2030_vm0, %v6129_v25  ;;  %4311 = vmatprep.subr.msk.mxu0 %vm2030_vm0, %v5943_v18  ;;  %v772_v44 = vadd.f32 %v7978_v4, %v6139_v31  ;;  %v788_v48 = vadd.f32 %v6144_v36, %v6121_v14  ;;  %v7981_v18 = vmax.f32 %v7980_v13, 0.0  ;;  %v7984_v36 = vld [vmem:[#allocation97_spill] sm:$0xff] }
  0xa4   : > { %4344 = vmatpush3.xpose.msk.msra.mxu1 %vm2030_vm0, %v7979_v24  ;;  %v1679_v56 = vmul.f32 %v5800_v41, %v1342_v50  ;;  %v1857_v23 = vmul.f32 %v5785_v59, %v7982_v33  ;;  %v1890_v24 = vadd.f32 %v1858_v30, %v1820_v15  ;;  %v1804_v50 = vadd.f32 %v1772_v7, %v1734_v9  ;;  %v6192_v7 = vld [vmem:[%s4675_s14 + $0x138] sm:$0xff] }
  0xa5   : > { %v1787_v11 = vmul.f32 %v5780_v16, %v7981_v18  ;;  %4345 = vmatprep.subr.msk.mxu1 %vm2030_vm0, %v7983_v40  ;;  %v6178_v14 = vadd.f32 %v804_v43, %v772_v44  ;;  %v1663_v13 = vmul.f32 %v5800_v41, %v1326_v37  ;;  %v338_v18 = vld [vmem:[%s4675_s14 + $0x139] sm:$0xff]  ;;  %v6184_v31 = vadd.f32 %v820_v0, %v788_v48 }
  0xa6   : > { %4312 = vmatpush3.xpose.msk.msra.mxu0 %vm2030_vm0, %v5945_v49  ;;  %v1749_v4 = vadd.f32 %v1717_v51, %v1679_v56  ;;  %v1701_v46 = vmul.f32 %v5764_v17, %v7963_v28  ;;  %v7985_v40 = vmax.f32 %v7984_v36, 0.0  ;;  %v6195_v43 = vld [vmem:[%s4675_s14 + $0x78] sm:$0xff]  ;;  %v6199_v15 = vadd.f32 %v1842_v6, %v1804_v50  ;;  %v7986_v0 = vld [vmem:[#allocation27_spill] sm:$0xff]  ;;  %4375 = vmatprep.mubr.msk.f32.mxu1 %vm2030_vm0, %v6173_v57  ;;  %v7999_v49 = vld [vmem:[#allocation33_spill] sm:$0xff] }
  0xa7   : > { %4313 = vmatprep.subr.msk.mxu0 %vm2030_vm0, %v5993_v42  ;;  %v1841_v56 = vmul.f32 %v5785_v59, %v7986_v0  ;;  %v4513_v28 = vld [vmem:[%s4675_s14 + $0x151] sm:$0xff]  ;;  %v6208_v36 = vld [vmem:[%s4675_s14 + $0x15a] sm:$0xff]  ;;  %v7988_v9 = vmax.f32 %v5953_v52, 0.0  ;;  %v1922_v42 = vmax.f32 %v6184_v31, 0.0  ;;  %v627_v37 = vmul.f32 0.1875, %v338_v18 }
  0xa8   : > { %v1771_v30 = vmul.f32 %v5780_v16, %v7985_v40  ;;  %v6205_v51 = vmul.f32 0.5625, %v4513_v28  ;;  %v1819_v6 = vadd.f32 %v1787_v11, %v1749_v4  ;;  %v1733_v44 = vadd.f32 %v1701_v46, %v1663_v13  ;;  %v7994_v18 = vld [vmem:[#allocation103_spill] sm:$0xff] }
  0xa9   : > { %4346 = vmatpush3.xpose.msk.msra.mxu1 %vm2030_vm0, %v7988_v9  ;;  %v7989_v48 = vmax.f32 %v6020_v1, 0.0  ;;  %v6220_v50 = vmul.f32 0.1875, %v6028_v32  ;;  %v819_v40 = vmul.f32 0.0625, %v6192_v7  ;;  %v6224_v28 = vmul.f32 0.1875, %v6039_v58  ;;  %v6228_v9 = vld [vmem:[%s4675_s14 + $0x9a] sm:$0xff] }
  0xaa   : > { %7987 = vst [vmem:[#allocation13_spill] sm:$0xff] %v6205_v51  ;;  %v803_v52 = vmul.f32 0.0625, %v6195_v43  ;;  %4314 = vmatpush3.xpose.msk.msra.mxu0 %vm2030_vm0, %v6012_v8  ;;  %v1889_v1 = vadd.f32 %v1857_v23, %v1819_v6  ;;  %v1803_v31 = vadd.f32 %v1771_v30, %v1733_v44  ;;  %v6233_v4 = vadd.f32 %v627_v37, %v6205_v51  ;;  %v7993_v58 = vld [vmem:[#allocation35_spill] sm:$0xff]  ;;  %v337_v37 = vld [vmem:[%s4675_s14 + $0x129] sm:$0xff] }
  0xab   : > { %4347 = vmatprep.subr.msk.mxu1 %vm2030_vm0, %v7989_v48  ;;  %7990 = vst [vmem:[#allocation92_spill] sm:$0xff] %v6220_v50  ;;  %7991 = vst [vmem:[#allocation12_spill] sm:$0xff] %v6224_v28  ;;  %v1341_v32 = vmax.f32 %v6208_v36, 0.0  ;;  %4315 = vmatprep.subr.msk.mxu0 %vm2030_vm0, %v6065_v34  ;;  %v771_v11 = vadd.f32 %v7993_v58, %v6224_v28  ;;  %v1716_v13 = vmul.f32 %v5764_v17, %v7970_v60  ;;  %v7995_v46 = vld [vmem:[#allocation31_spill] sm:$0xff]  ;;  %v6255_v48 = vld [vmem:[%s4675_s14 + $0x128] sm:$0xff] }
  0xac   : > { %7992 = vst [vmem:[#allocation93_spill] sm:$0xff] %v6233_v4  ;;  %v1786_v8 = vmul.f32 %v5780_v16, %v7994_v18  ;;  %v1856_v23 = vmul.f32 %v5785_v59, %v7995_v46  ;;  %v7996_v30 = vmax.f32 %v6022_v38, 0.0  ;;  %v1873_v6 = vadd.f32 %v1841_v56, %v1803_v31  ;;  %v7998_v31 = vld [vmem:[#allocation104_spill] sm:$0xff] }
  0xad   : > { %v787_v34 = vadd.f32 %v6233_v4, %v6220_v50  ;;  %v1377_v44 = vmul.f32 %v4707_v20, %v1341_v32  ;;  %v1325_v60 = vmax.f32 %v6228_v9, 0.0  ;;  %v7997_v18 = vmax.f32 %v6092_v27, 0.0  ;;  %v6442_v4 = vld [vmem:[%s4675_s14 + $0x48] sm:$0xff] }
  0xae   : > { %4348 = vmatpush3.xpose.msk.msra.mxu1 %vm2030_vm0, %v7996_v30  ;;  %v6260_v38 = vadd.f32 %v803_v52, %v771_v11  ;;  %v1700_v56 = vmul.f32 %v5764_v17, %v7972_v5  ;;  %v1770_v30 = vmul.f32 %v5780_v16, %v7998_v31  ;;  %v1840_v32 = vmul.f32 %v5785_v59, %v7999_v49  ;;  %v4514_v52 = vld [vmem:[%s4675_s14 + $0x141] sm:$0xff]  ;;  %v6279_v5 = vld [vmem:[%s4675_s14 + $0x152] sm:$0xff] }
  0xaf   : > { %4349 = vmatprep.subr.msk.mxu1 %vm2030_vm0, %v7997_v18  ;;  %4316 = vmatpush3.xpose.msk.msra.mxu0 %vm2030_vm0, %v6090_v2  ;;  %v851_v50 = vadd.f32 %v819_v40, %v787_v34  ;;  %v1678_v28 = vmul.f32 %v5800_v41, %v1377_v44  ;;  %v1361_v27 = vmul.f32 %v4707_v20, %v1325_v60  ;;  %v6273_v11 = vmul.f32 0.5625, %v4514_v52  ;;  %v6276_v18 = vld [vmem:[%s4675_s14 + $0x68] sm:$0xff] }
  0xb0   : > { %4317 = vmatprep.subr.msk.mxu0 %vm2030_vm0, %v1890_v24  ;;  %v1905_v31 = vmax.f32 %v6260_v38, 0.0  ;;  %v626_v51 = vmul.f32 0.1875, %v337_v37  ;;  %v6284_v2 = vmul.f32 0.1875, %v6099_v63  ;;  %v818_v40 = vmul.f32 0.0625, %v6255_v48  ;;  %v6295_v24 = vld [vmem:[%s4675_s14 + $0x92] sm:$0xff] }
  0xb1   : > { %8000 = vst [vmem:[#allocation8_spill] sm:$0xff] %v6273_v11  ;;  %v8002_v34 = vmax.f32 %v6094_v19, 0.0  ;;  %v1921_v44 = vmax.f32 %v851_v50, 0.0  ;;  %v1748_v60 = vadd.f32 %v1716_v13, %v1678_v28  ;;  %v1662_v52 = vmul.f32 %v5800_v41, %v1361_v27  ;;  %v8005_v13 = vld [vmem:[#allocation38_spill] sm:$0xff] }
  0xb2   : > { %8001 = vst [vmem:[#allocation18_spill] sm:$0xff] %v6284_v2  ;;  %v6292_v58 = vmul.f32 0.1875, %v6111_v29  ;;  %v6299_v63 = vadd.f32 %v626_v51, %v6273_v11  ;;  %v802_v37 = vmul.f32 0.0625, %v6276_v18  ;;  %v1340_v19 = vmax.f32 %v6279_v5, 0.0  ;;  %v8009_v11 = vld [vmem:[#allocation102_spill] sm:$0xff] }
  0xb3   : > { %4350 = vmatpush3.xpose.msk.msra.mxu1 %vm2030_vm0, %v8002_v34  ;;  %v1715_v50 = vmul.f32 %v5764_v17, %v7982_v33  ;;  %4318 = vmatpush3.xpose.msk.msra.mxu0 %vm2030_vm0, %v6199_v15  ;;  %v1818_v29 = vadd.f32 %v1786_v8, %v1748_v60  ;;  %v1732_v28 = vadd.f32 %v1700_v56, %v1662_v52  ;;  %v1324_v8 = vmax.f32 %v6295_v24, 0.0 }
  0xb4   : > { %8003 = vst [vmem:[#allocation89_spill] sm:$0xff] %v6292_v58  ;;  %4351 = vmatprep.subr.msk.mxu1 %vm2030_vm0, %v1922_v42  ;;  %8004 = vst [vmem:[#allocation16_spill] sm:$0xff] %v6299_v63  ;;  %v770_v38 = vadd.f32 %v8005_v13, %v6292_v58  ;;  %v8006_v42 = vld [vmem:[#allocation101_spill] sm:$0xff]  ;;  %4319 = vmatprep.subr.msk.mxu0 %vm2030_vm0, %v1889_v1  ;;  %v786_v34 = vadd.f32 %v6299_v63, %v6284_v2  ;;  %v8008_v56 = vmax.f32 %v6178_v14, 0.0  ;;  %v6439_v63 = vld [vmem:[%s4675_s14 + $0x108] sm:$0xff] }
  0xb5   : > { %v8007_v27 = vmax.f32 %v8006_v42, 0.0  ;;  %v1677_v33 = vmul.f32 %v5800_v41, %v1340_v19  ;;  %v1855_v15 = vmul.f32 %v5785_v59, %v7877_v61  ;;  %v1888_v60 = vadd.f32 %v1856_v23, %v1818_v29  ;;  %v6334_v23 = vld [vmem:[%s4675_s14 + $0x60] sm:$0xff] }
  0xb6   : > { %v1802_v52 = vadd.f32 %v1770_v30, %v1732_v28  ;;  %v834_v1 = vadd.f32 %v802_v37, %v770_v38  ;;  %v1699_v42 = vmul.f32 %v5764_v17, %v7986_v0  ;;  %v850_v19 = vadd.f32 %v818_v40, %v786_v34  ;;  %v8011_v37 = vld [vmem:[#allocation37_spill] sm:$0xff]  ;;  %v4515_v40 = vld [vmem:[%s4675_s14 + $0x139] sm:$0xff]  ;;  %v6343_v29 = vld [vmem:[%s4675_s14 + $0x142] sm:$0xff] }
  0xb7   : > { %v1785_v51 = vmul.f32 %v5780_v16, %v8007_v27  ;;  %4352 = vmatpush3.xpose.msk.msra.mxu1 %vm2030_vm0, %v8008_v56  ;;  %v336_v27 = vld [vmem:[%s4675_s14 + $0x121] sm:$0xff]  ;;  %v1747_v2 = vadd.f32 %v1715_v50, %v1677_v33  ;;  %v1661_v58 = vmul.f32 %v5800_v41, %v1324_v8  ;;  %v8010_v13 = vmax.f32 %v8009_v11, 0.0  ;;  %4320 = vmatpush3.xpose.msk.msra.mxu0 %vm2030_vm0, %v1873_v6 }
  0xb8   : > { %4353 = vmatprep.subr.msk.mxu1 %vm2030_vm0, %v1921_v44  ;;  %v6331_v56 = vld [vmem:[%s4675_s14 + $0x120] sm:$0xff]  ;;  %v1872_v30 = vadd.f32 %v1840_v32, %v1802_v52  ;;  %v1904_v0 = vmax.f32 %v834_v1, 0.0  ;;  %v1839_v44 = vmul.f32 %v5785_v59, %v8011_v37  ;;  %v6340_v50 = vmul.f32 0.5625, %v4515_v40  ;;  %4321 = vmatprep.subr.msk.mxu0 %vm2030_vm0, %v1888_v60  ;;  %v8017_v52 = vld [vmem:[#allocation24_spill] sm:$0xff]  ;;  %v6379_v40 = vld [vmem:[%s4675_s14 + $0x110] sm:$0xff] }
  0xb9   : > { %v1769_v14 = vmul.f32 %v5780_v16, %v8010_v13  ;;  %v1920_v11 = vmax.f32 %v850_v19, 0.0  ;;  %v1817_v28 = vadd.f32 %v1785_v51, %v1747_v2  ;;  %v1731_v13 = vadd.f32 %v1699_v42, %v1661_v58  ;;  %v6356_v8 = vld [vmem:[%s4675_s14 + $0x82] sm:$0xff]  ;;  %v8018_v42 = vld [vmem:[#allocation41_spill] sm:$0xff] }
  0xba   : > { %8012 = vst [vmem:[#allocation91_spill] sm:$0xff] %v6340_v50  ;;  %v625_v38 = vmul.f32 0.1875, %v336_v27  ;;  %v6348_v6 = vmul.f32 0.1875, %v6192_v7  ;;  %v817_v32 = vmul.f32 0.0625, %v6331_v56  ;;  %v6352_v34 = vmul.f32 0.1875, %v6195_v43  ;;  %v8016_v43 = vld [vmem:[#allocation45_spill] sm:$0xff] }
  0xbb   : > { %4354 = vmatpush3.xpose.msk.msra.mxu1 %vm2030_vm0, %v1905_v31  ;;  %v801_v33 = vmul.f32 0.0625, %v6334_v23  ;;  %v1887_v58 = vadd.f32 %v1855_v15, %v1817_v28  ;;  %v1801_v2 = vadd.f32 %v1769_v14, %v1731_v13  ;;  %v1339_v7 = vmax.f32 %v6343_v29, 0.0  ;;  %4322 = vmatpush3.xpose.msk.msra.mxu0 %vm2030_vm0, %v1872_v30  ;;  %v8019_v13 = vld [vmem:[#allocation105_spill] sm:$0xff] }
  0xbc   : > { %8013 = vst [vmem:[#allocation17_spill] sm:$0xff] %v6348_v6  ;;  %8014 = vst [vmem:[#allocation98_spill] sm:$0xff] %v6352_v34  ;;  %4355 = vmatprep.subr.msk.mxu1 %vm2030_vm0, %v1920_v11  ;;  %v6360_v31 = vadd.f32 %v625_v38, %v6340_v50  ;;  %v769_v51 = vadd.f32 %v8016_v43, %v6352_v34  ;;  %v1714_v60 = vmul.f32 %v5764_v17, %v7995_v46  ;;  %v335_v46 = vld [vmem:[%s4675_s14 + $0x111] sm:$0xff]  ;;  %v8020_v38 = vld [vmem:[#allocation43_spill] sm:$0xff] }
  0xbd   : > { %v1784_v1 = vmul.f32 %v5780_v16, %v8017_v52  ;;  %v1854_v15 = vmul.f32 %v5785_v59, %v8018_v42  ;;  %4323 = vmatprep.subr.msk.mxu0 %vm2030_vm0, %v1887_v58  ;;  %v1871_v27 = vadd.f32 %v1839_v44, %v1801_v2  ;;  %v1375_v14 = vmul.f32 %v4707_v20, %v1339_v7  ;;  %v6409_v50 = vld [vmem:[%s4675_s14 + $0x7a] sm:$0xff] }
  0xbe   : > { %8015 = vst [vmem:[#allocation21_spill] sm:$0xff] %v6360_v31  ;;  %v785_v19 = vadd.f32 %v6360_v31, %v6348_v6  ;;  %v1323_v30 = vmax.f32 %v6356_v8, 0.0  ;;  %v833_v11 = vadd.f32 %v801_v33, %v769_v51  ;;  %v1698_v28 = vmul.f32 %v5764_v17, %v7999_v49  ;;  %v4516_v6 = vld [vmem:[%s4675_s14 + $0x129] sm:$0xff]  ;;  %v6397_v33 = vld [vmem:[%s4675_s14 + $0x13a] sm:$0xff] }
  0xbf   : > { %4356 = vmatpush3.xpose.msk.msra.mxu1 %vm2030_vm0, %v1904_v0  ;;  %v1768_v44 = vmul.f32 %v5780_v16, %v8019_v13  ;;  %v1838_v58 = vmul.f32 %v5785_v59, %v8020_v38  ;;  %v1676_v7 = vmul.f32 %v5800_v41, %v1375_v14  ;;  %v6391_v34 = vmul.f32 0.5625, %v4516_v6  ;;  %v6394_v0 = vld [vmem:[%s4675_s14 + $0x50] sm:$0xff]  ;;  %4324 = vmatpush3.xpose.msk.msra.mxu0 %vm2030_vm0, %v1871_v27  ;;  %v8028_v31 = vld [vmem:[#allocation46_spill] sm:$0xff] }
  0xc0   : > { %v849_v2 = vadd.f32 %v817_v32, %v785_v19  ;;  %v1359_v52 = vmul.f32 %v4707_v20, %v1323_v30  ;;  %v1903_v49 = vmax.f32 %v833_v11, 0.0  ;;  %v624_v51 = vmul.f32 0.1875, %v335_v46 }
  0xc1   : > { %8021 = vst [vmem:[#allocation99_spill] sm:$0xff] %v6391_v34  ;;  %v6401_v13 = vmul.f32 0.1875, %v6255_v48  ;;  %v816_v32 = vmul.f32 0.0625, %v6379_v40  ;;  %v1746_v14 = vadd.f32 %v1714_v60, %v1676_v7  ;;  %v6406_v6 = vmul.f32 0.1875, %v6276_v18  ;;  %v8025_v18 = vld [vmem:[#allocation48_spill] sm:$0xff]  ;;  %v8026_v7 = vld [vmem:[#allocation78_spill] sm:$0xff] }
  0xc2   : > { %v1919_v19 = vmax.f32 %v849_v2, 0.0  ;;  %v1660_v30 = vmul.f32 %v5800_v41, %v1359_v52  ;;  %v6412_v43 = vadd.f32 %v624_v51, %v6391_v34  ;;  %v800_v27 = vmul.f32 0.0625, %v6394_v0 }
  0xc3   : > { %8022 = vst [vmem:[#allocation23_spill] sm:$0xff] %v6401_v13  ;;  %8023 = vst [vmem:[#allocation95_spill] sm:$0xff] %v6406_v6  ;;  %v1338_v46 = vmax.f32 %v6397_v33, 0.0  ;;  %v1713_v48 = vmul.f32 %v5764_v17, %v7877_v61  ;;  %v1816_v60 = vadd.f32 %v1784_v1, %v1746_v14  ;;  %v768_v2 = vadd.f32 %v8025_v18, %v6406_v6  ;;  %v8029_v18 = vld [vmem:[#allocation3_spill] sm:$0xff] }
  0xc4   : > { %8024 = vst [vmem:[#allocation26_spill] sm:$0xff] %v6412_v43  ;;  %4357 = vmatprep.subr.msk.mxu1 %vm2030_vm0, %v1919_v19  ;;  %v1730_v11 = vadd.f32 %v1698_v28, %v1660_v30  ;;  %v8027_v52 = vmax.f32 %v8026_v7, 0.0  ;;  %v784_v34 = vadd.f32 %v6412_v43, %v6401_v13  ;;  %v1853_v1 = vmul.f32 %v5785_v59, %v8028_v31 }
  0xc5   : > { %4358 = vmatpush3.xpose.msk.msra.mxu1 %vm2030_vm0, %v1903_v49  ;;  %v1675_v61 = vmul.f32 %v5800_v41, %v1338_v46  ;;  %v1322_v28 = vmax.f32 %v6409_v50, 0.0  ;;  %v1886_v19 = vadd.f32 %v1854_v15, %v1816_v60  ;;  %v832_v30 = vadd.f32 %v800_v27, %v768_v2  ;;  %v8031_v27 = vld [vmem:[#allocation47_spill] sm:$0xff] }
  0xc6   : > { %v1783_v51 = vmul.f32 %v5780_v16, %v8027_v52  ;;  %v1800_v14 = vadd.f32 %v1768_v44, %v1730_v11  ;;  %v1697_v7 = vmul.f32 %v5764_v17, %v8011_v37  ;;  %v334_v52 = vld [vmem:[%s4675_s14 + $0x109] sm:$0xff]  ;;  %v848_v49 = vadd.f32 %v816_v32, %v784_v34  ;;  %v4517_v34 = vld [vmem:[%s4675_s14 + $0x121] sm:$0xff] }
  0xc7   : > { %v1745_v6 = vadd.f32 %v1713_v48, %v1675_v61  ;;  %v1659_v13 = vmul.f32 %v5800_v41, %v1322_v28  ;;  %v8030_v46 = vmax.f32 %v8029_v18, 0.0  ;;  %4325 = vmatprep.subr.msk.mxu0 %vm2030_vm0, %v1886_v19  ;;  %v1902_v44 = vmax.f32 %v832_v30, 0.0  ;;  %v6451_v48 = vld [vmem:[%s4675_s14 + $0x12a] sm:$0xff] }
  0xc8   : > { %v1870_v15 = vadd.f32 %v1838_v58, %v1800_v14  ;;  %v1837_v37 = vmul.f32 %v5785_v59, %v8031_v27  ;;  %v6448_v32 = vmul.f32 0.5625, %v4517_v34  ;;  %8033 = vst [vmem:[#allocation27_spill] sm:$0xff] %v6451_v48  ;;  %v1918_v60 = vmax.f32 %v848_v49, 0.0  ;;  %v6463_v14 = vld [vmem:[%s4675_s14 + $0x6a] sm:$0xff] }
  0xc9   : > { %v1767_v43 = vmul.f32 %v5780_v16, %v8030_v46  ;;  %v1815_v11 = vadd.f32 %v1783_v51, %v1745_v6  ;;  %v1729_v18 = vadd.f32 %v1697_v7, %v1659_v13  ;;  %v623_v2 = vmul.f32 0.1875, %v334_v52  ;;  %8036 = vst [vmem:[#allocation104_spill] sm:$0xff] %v6463_v14  ;;  %v8039_v52 = vld [vmem:[#allocation106_spill] sm:$0xff]  ;;  %v8040_v46 = vld [vmem:[#allocation51_spill] sm:$0xff] }
  0xca   : > { %8032 = vst [vmem:[#allocation97_spill] sm:$0xff] %v6448_v32  ;;  %4326 = vmatpush3.xpose.msk.msra.mxu0 %vm2030_vm0, %v1870_v15  ;;  %v6455_v61 = vmul.f32 0.1875, %v6331_v56  ;;  %v815_v58 = vmul.f32 0.0625, %v6439_v63  ;;  %v6459_v28 = vmul.f32 0.1875, %v6334_v23  ;;  %v799_v19 = vmul.f32 0.0625, %v6442_v4  ;;  %4359 = vmatprep.subr.msk.mxu1 %vm2030_vm0, %v1918_v60  ;;  %v8038_v23 = vld [vmem:[#allocation55_spill] sm:$0xff] }
  0xcb   : > { %v1885_v13 = vadd.f32 %v1853_v1, %v1815_v11  ;;  %v1799_v6 = vadd.f32 %v1767_v43, %v1729_v18  ;;  %v6467_v51 = vadd.f32 %v623_v2, %v6448_v32  ;;  %v1337_v56 = vmax.f32 %v6451_v48, 0.0  ;;  %4360 = vmatpush3.xpose.msk.msra.mxu1 %vm2030_vm0, %v1902_v44  ;;  %v6486_v60 = vld [vmem:[%s4675_s14 + $0xf8] sm:$0xff]  ;;  %v8041_v2 = vld [vmem:[#allocation107_spill] sm:$0xff]  ;;  %v6545_v48 = vld [vmem:[%s4675_s14 + $0xf0] sm:$0xff] }
  0xcc   : > { %8034 = vst [vmem:[#allocation103_spill] sm:$0xff] %v6455_v61  ;;  %8035 = vst [vmem:[#allocation31_spill] sm:$0xff] %v6459_v28  ;;  %v767_v30 = vadd.f32 %v8038_v23, %v6459_v28  ;;  %v1712_v7 = vmul.f32 %v5764_v17, %v8018_v42  ;;  %v1782_v49 = vmul.f32 %v5780_v16, %v8039_v52  ;;  %v1321_v34 = vmax.f32 %v6463_v14, 0.0  ;;  %v333_v42 = vld [vmem:[%s4675_s14 + $0xf9] sm:$0xff]  ;;  %v4518_v28 = vld [vmem:[%s4675_s14 + $0x111] sm:$0xff] }
  0xcd   : > { %8037 = vst [vmem:[#allocation33_spill] sm:$0xff] %v6467_v51  ;;  %v1852_v1 = vmul.f32 %v5785_v59, %v8040_v46  ;;  %4327 = vmatprep.subr.msk.mxu0 %vm2030_vm0, %v1885_v13  ;;  %v1869_v43 = vadd.f32 %v1837_v37, %v1799_v6  ;;  %v783_v15 = vadd.f32 %v6467_v51, %v6455_v61  ;;  %v8042_v37 = vld [vmem:[#allocation53_spill] sm:$0xff]  ;;  %v6498_v32 = vmul.f32 0.5625, %v4518_v28  ;;  %v6515_v28 = vld [vmem:[%s4675_s14 + $0x62] sm:$0xff] }
  0xce   : > { %v1373_v44 = vmul.f32 %v4707_v20, %v1337_v56  ;;  %v831_v11 = vadd.f32 %v799_v19, %v767_v30  ;;  %v1696_v18 = vmul.f32 %v5764_v17, %v8020_v38  ;;  %v1766_v13 = vmul.f32 %v5780_v16, %v8041_v2  ;;  %v6501_v19 = vld [vmem:[%s4675_s14 + $0x38] sm:$0xff]  ;;  %v6504_v38 = vld [vmem:[%s4675_s14 + $0x122] sm:$0xff]  ;;  %8047 = vst [vmem:[#allocation41_spill] sm:$0xff] %v6515_v28 }
  0xcf   : > { %v1836_v6 = vmul.f32 %v5785_v59, %v8042_v37  ;;  %4328 = vmatpush3.xpose.msk.msra.mxu0 %vm2030_vm0, %v1869_v43  ;;  %v847_v52 = vadd.f32 %v815_v58, %v783_v15  ;;  %v1357_v61 = vmul.f32 %v4707_v20, %v1321_v34  ;;  %8043 = vst [vmem:[#allocation101_spill] sm:$0xff] %v6498_v32  ;;  %8044 = vst [vmem:[#allocation102_spill] sm:$0xff] %v6504_v38 }
  0xd0   : > { %v1674_v56 = vmul.f32 %v5800_v41, %v1373_v44  ;;  %v1901_v30 = vmax.f32 %v831_v11, 0.0  ;;  %v622_v2 = vmul.f32 0.1875, %v333_v42  ;;  %v6507_v23 = vmul.f32 0.1875, %v6379_v40 }
  0xd1   : > { %v814_v43 = vmul.f32 0.0625, %v6486_v60  ;;  %v1917_v51 = vmax.f32 %v847_v52, 0.0  ;;  %v1658_v15 = vmul.f32 %v5800_v41, %v1357_v61  ;;  %v6512_v44 = vmul.f32 0.1875, %v6394_v0  ;;  %v8049_v0 = vld [vmem:[#allocation58_spill] sm:$0xff] }
  0xd2   : > { %8045 = vst [vmem:[#allocation37_spill] sm:$0xff] %v6507_v23  ;;  %v1744_v58 = vadd.f32 %v1712_v7, %v1674_v56  ;;  %v6518_v34 = vadd.f32 %v622_v2, %v6498_v32  ;;  %v798_v11 = vmul.f32 0.0625, %v6501_v19  ;;  %v1336_v42 = vmax.f32 %v6504_v38, 0.0  ;;  %v8050_v56 = vld [vmem:[#allocation87_spill] sm:$0xff]  ;;  %v8052_v38 = vld [vmem:[#allocation56_spill] sm:$0xff] }
  0xd3   : > { %8046 = vst [vmem:[#allocation24_spill] sm:$0xff] %v6512_v44  ;;  %v1711_v40 = vmul.f32 %v5764_v17, %v8028_v31  ;;  %4361 = vmatprep.subr.msk.mxu1 %vm2030_vm0, %v1917_v51  ;;  %v1728_v61 = vadd.f32 %v1696_v18, %v1658_v15  ;;  %v766_v52 = vadd.f32 %v8049_v0, %v6512_v44  ;;  %v8051_v14 = vmax.f32 %v8050_v56, 0.0  ;;  %v332_v56 = vld [vmem:[%s4675_s14 + $0xf1] sm:$0xff] }
  0xd4   : > { %8048 = vst [vmem:[#allocation105_spill] sm:$0xff] %v6518_v34  ;;  %v1814_v7 = vadd.f32 %v1782_v49, %v1744_v58  ;;  %4362 = vmatpush3.xpose.msk.msra.mxu1 %vm2030_vm0, %v1901_v30  ;;  %v782_v32 = vadd.f32 %v6518_v34, %v6507_v23  ;;  %v1673_v31 = vmul.f32 %v5800_v41, %v1336_v42  ;;  %v1320_v49 = vmax.f32 %v6515_v28, 0.0  ;;  %v8053_v0 = vld [vmem:[#allocation34_spill] sm:$0xff]  ;;  %v6548_v28 = vld [vmem:[%s4675_s14 + $0x30] sm:$0xff] }
  0xd5   : > { %v1781_v2 = vmul.f32 %v5780_v16, %v8051_v14  ;;  %v1851_v51 = vmul.f32 %v5785_v59, %v8052_v38  ;;  %v1798_v58 = vadd.f32 %v1766_v13, %v1728_v61  ;;  %v830_v15 = vadd.f32 %v798_v11, %v766_v52  ;;  %v8055_v11 = vld [vmem:[#allocation57_spill] sm:$0xff] }
  0xd6   : > { %v1884_v18 = vadd.f32 %v1852_v1, %v1814_v7  ;;  %v1695_v14 = vmul.f32 %v5764_v17, %v8031_v27  ;;  %v846_v30 = vadd.f32 %v814_v43, %v782_v32  ;;  %v1743_v44 = vadd.f32 %v1711_v40, %v1673_v31  ;;  %v4519_v32 = vld [vmem:[%s4675_s14 + $0x109] sm:$0xff] }
  0xd7   : > { %v1657_v23 = vmul.f32 %v5800_v41, %v1320_v49  ;;  %v8054_v42 = vmax.f32 %v8053_v0, 0.0  ;;  %v1868_v1 = vadd.f32 %v1836_v6, %v1798_v58  ;;  %v1900_v13 = vmax.f32 %v830_v15, 0.0  ;;  %v6557_v41 = vld [vmem:[%s4675_s14 + $0x112] sm:$0xff] }
  0xd8   : > { %4329 = vmatprep.subr.msk.mxu0 %vm2030_vm0, %v1884_v18  ;;  %v1835_v27 = vmul.f32 %v5785_v59, %v8055_v11  ;;  %v6554_v43 = vmul.f32 0.5625, %v4519_v32  ;;  %8057 = vst [vmem:[#allocation78_spill] sm:$0xff] %v6557_v41  ;;  %v1916_v40 = vmax.f32 %v846_v30, 0.0  ;;  %v1813_v7 = vadd.f32 %v1781_v2, %v1743_v44  ;;  %v6569_v18 = vld [vmem:[%s4675_s14 + $0x52] sm:$0xff]  ;;  %v331_v32 = vld [vmem:[%s4675_s14 + $0xe1] sm:$0xff] }
  0xd9   : > { %v1765_v34 = vmul.f32 %v5780_v16, %v8054_v42  ;;  %v1727_v61 = vadd.f32 %v1695_v14, %v1657_v23  ;;  %v621_v0 = vmul.f32 0.1875, %v332_v56  ;;  %4330 = vmatpush3.xpose.msk.msra.mxu0 %vm2030_vm0, %v1868_v1  ;;  %v6561_v52 = vmul.f32 0.1875, %v6439_v63  ;;  %8060 = vst [vmem:[#allocation47_spill] sm:$0xff] %v6569_v18  ;;  %v8063_v14 = vld [vmem:[#allocation110_spill] sm:$0xff]  ;;  %v8064_v30 = vld [vmem:[#allocation61_spill] sm:$0xff] }
  0xda   : > { %8056 = vst [vmem:[#allocation43_spill] sm:$0xff] %v6554_v43  ;;  %v813_v6 = vmul.f32 0.0625, %v6545_v48  ;;  %v6565_v31 = vmul.f32 0.1875, %v6442_v4  ;;  %v797_v49 = vmul.f32 0.0625, %v6548_v28  ;;  %4363 = vmatprep.subr.msk.mxu1 %vm2030_vm0, %v1916_v40  ;;  %v1883_v23 = vadd.f32 %v1851_v51, %v1813_v7  ;;  %v8062_v4 = vld [vmem:[#allocation64_spill] sm:$0xff]  ;;  %v8065_v40 = vld [vmem:[#allocation111_spill] sm:$0xff] }
  0xdb   : > { %8058 = vst [vmem:[#allocation46_spill] sm:$0xff] %v6561_v52  ;;  %v1797_v44 = vadd.f32 %v1765_v34, %v1727_v61  ;;  %v6573_v2 = vadd.f32 %v621_v0, %v6554_v43  ;;  %v1335_v63 = vmax.f32 %v6557_v41, 0.0  ;;  %4364 = vmatpush3.xpose.msk.msra.mxu1 %vm2030_vm0, %v1900_v13  ;;  %v1710_v15 = vmul.f32 %v5764_v17, %v8040_v46  ;;  %v6592_v17 = vld [vmem:[%s4675_s14 + $0xe0] sm:$0xff]  ;;  %v6611_v61 = vld [vmem:[%s7497_s5 + $0x8] ss:$0 sm:$0xff]  ;;  %v6674_v41 = vld [vmem:[%s4675_s14 + $0xd8] sm:$0xff] }
  0xdc   : > { %8059 = vst [vmem:[#allocation3_spill] sm:$0xff] %v6565_v31  ;;  %v765_v58 = vadd.f32 %v8062_v4, %v6565_v31  ;;  %v1780_v56 = vmul.f32 %v5780_v16, %v8063_v14  ;;  %v1850_v51 = vmul.f32 %v5785_v59, %v8064_v30  ;;  %4331 = vmatprep.subr.msk.mxu0 %vm2030_vm0, %v1883_v23  ;;  %v1319_v13 = vmax.f32 %v6569_v18, 0.0  ;;  %v6597_v59 = vld [vmem:[%s7497_s5 + $0x2] ss:$0 sm:$0xff] }
  0xdd   : > { %8061 = vst [vmem:[#allocation106_spill] sm:$0xff] %v6573_v2  ;;  %v1867_v34 = vadd.f32 %v1835_v27, %v1797_v44  ;;  %v781_v42 = vadd.f32 %v6573_v2, %v6561_v52  ;;  %v1371_v1 = vmul.f32 %v4707_v20, %v1335_v63  ;;  %v1694_v46 = vmul.f32 %v6597_v59, %v8042_v37  ;;  %v6604_v27 = vld [vmem:[%s7497_s5 + $0x6] ss:$0 sm:$0xff]  ;;  %v6619_v37 = vld [vmem:[%s7497_s5] ss:$0 sm:$0xff]  ;;  %v6630_v52 = vld [vmem:[%s4675_s14 + $0x10a] sm:$0xff] }
  0xde   : > { %v829_v16 = vadd.f32 %v797_v49, %v765_v58  ;;  %v1764_v7 = vmul.f32 %v6604_v27, %v8065_v40  ;;  %v8066_v0 = vld [vmem:[#allocation63_spill] sm:$0xff]  ;;  %v1355_v63 = vmul.f32 %v4707_v20, %v1319_v13  ;;  %8068 = vst [vmem:[#allocation107_spill] sm:$0xff] %v6630_v52  ;;  %v6640_v13 = vmul.f32 0.1875, %v6501_v19 }
  0xdf   : > { %v1834_v49 = vmul.f32 %v6611_v61, %v8066_v0  ;;  %4332 = vmatpush3.xpose.msk.msra.mxu0 %vm2030_vm0, %v1867_v34  ;;  %v845_v23 = vadd.f32 %v813_v6, %v781_v42  ;;  %v1672_v44 = vmul.f32 %v6619_v37, %v1371_v1  ;;  %v4524_v58 = vld [vmem:[%s4675_s14 + $0xf9] sm:$0xff]  ;;  %v620_v34 = vmul.f32 0.1875, %v331_v32 }
  0xe0   : > { %v6624_v14 = vmul.f32 0.5625, %v4524_v58  ;;  %v6627_v40 = vld [vmem:[%s4675_s14 + $0x20] sm:$0xff]  ;;  %v1899_v31 = vmax.f32 %v829_v16, 0.0  ;;  %v6633_v6 = vmul.f32 0.1875, %v6486_v60  ;;  %v6636_v42 = vmul.f32 0.0625, %v6592_v17  ;;  %8070 = vst [vmem:[#allocation87_spill] sm:$0xff] %v6640_v13 }
  0xe1   : > { %v1915_v43 = vmax.f32 %v845_v23, 0.0  ;;  %v1742_v4 = vadd.f32 %v1710_v15, %v1672_v44  ;;  %v1656_v1 = vmul.f32 %v6619_v37, %v1355_v63  ;;  %v6643_v58 = vld [vmem:[%s4675_s14 + $0x4a] sm:$0xff]  ;;  %v796_v32 = vmul.f32 0.0625, %v6627_v40  ;;  %v8073_v19 = vld [vmem:[#allocation67_spill] sm:$0xff] }
  0xe2   : > { %8067 = vst [vmem:[#allocation51_spill] sm:$0xff] %v6624_v14  ;;  %8069 = vst [vmem:[#allocation53_spill] sm:$0xff] %v6633_v6  ;;  %v6646_v2 = vadd.f32 %v620_v34, %v6624_v14  ;;  %v1334_v60 = vmax.f32 %v6630_v52, 0.0  ;;  %v1709_v16 = vmul.f32 %v6597_v59, %v8052_v38  ;;  %v764_v44 = vadd.f32 %v8073_v19, %v6640_v13  ;;  %v8074_v63 = vld [vmem:[#allocation108_spill] sm:$0xff]  ;;  %v8076_v52 = vld [vmem:[#allocation65_spill] sm:$0xff] }
  0xe3   : > { %8071 = vst [vmem:[#allocation56_spill] sm:$0xff] %v6643_v58  ;;  %4365 = vmatprep.subr.msk.mxu1 %vm2030_vm0, %v1915_v43  ;;  %v1812_v15 = vadd.f32 %v1780_v56, %v1742_v4  ;;  %v1726_v23 = vadd.f32 %v1694_v46, %v1656_v1  ;;  %v8075_v18 = vmax.f32 %v8074_v63, 0.0  ;;  %v1849_v43 = vmul.f32 %v6611_v61, %v8076_v52  ;;  %v330_v63 = vld [vmem:[%s4675_s14 + $0xd9] sm:$0xff] }
  0xe4   : > { %8072 = vst [vmem:[#allocation34_spill] sm:$0xff] %v6646_v2  ;;  %4366 = vmatpush3.xpose.msk.msra.mxu1 %vm2030_vm0, %v1899_v31  ;;  %v780_v14 = vadd.f32 %v6646_v2, %v6633_v6  ;;  %v1671_v38 = vmul.f32 %v6619_v37, %v1334_v60  ;;  %v1318_v4 = vmax.f32 %v6643_v58, 0.0  ;;  %v828_v1 = vadd.f32 %v796_v32, %v764_v44  ;;  %v8077_v60 = vld [vmem:[#allocation109_spill] sm:$0xff]  ;;  %v6677_v58 = vld [vmem:[%s4675_s14 + $0x18] sm:$0xff] }
  0xe5   : > { %v1779_v34 = vmul.f32 %v6604_v27, %v8075_v18  ;;  %v1882_v56 = vadd.f32 %v1850_v51, %v1812_v15  ;;  %v1796_v46 = vadd.f32 %v1764_v7, %v1726_v23  ;;  %v1693_v18 = vmul.f32 %v6597_v59, %v8055_v11  ;;  %v8079_v11 = vld [vmem:[#allocation66_spill] sm:$0xff] }
  0xe6   : > { %v844_v31 = vadd.f32 %v6636_v42, %v780_v14  ;;  %v1741_v13 = vadd.f32 %v1709_v16, %v1671_v38  ;;  %v1655_v6 = vmul.f32 %v6619_v37, %v1318_v4  ;;  %v8078_v19 = vmax.f32 %v8077_v60, 0.0  ;;  %v4525_v14 = vld [vmem:[%s4675_s14 + $0xf1] sm:$0xff]  ;;  %v6686_v15 = vld [vmem:[%s4675_s14 + $0xfa] sm:$0xff] }
  0xe7   : > { %4333 = vmatprep.subr.msk.mxu0 %vm2030_vm0, %v1882_v56  ;;  %v1866_v51 = vadd.f32 %v1834_v49, %v1796_v46  ;;  %v1898_v7 = vmax.f32 %v828_v1, 0.0  ;;  %v1833_v32 = vmul.f32 %v6611_v61, %v8079_v11  ;;  %v6683_v16 = vmul.f32 0.5625, %v4525_v14  ;;  %v6700_v1 = vld [vmem:[%s4675_s14 + $0x3a] sm:$0xff] }
  0xe8   : > { %v1763_v2 = vmul.f32 %v6604_v27, %v8078_v19  ;;  %v1914_v23 = vmax.f32 %v844_v31, 0.0  ;;  %v1811_v44 = vadd.f32 %v1779_v34, %v1741_v13  ;;  %v1725_v19 = vadd.f32 %v1693_v18, %v1655_v6  ;;  %v8085_v31 = vld [vmem:[#allocation113_spill] sm:$0xff] }
  0xe9   : > { %8080 = vst [vmem:[#allocation57_spill] sm:$0xff] %v6683_v16  ;;  %v619_v38 = vmul.f32 0.1875, %v330_v63  ;;  %4334 = vmatpush3.xpose.msk.msra.mxu0 %vm2030_vm0, %v1866_v51  ;;  %v6690_v4 = vmul.f32 0.1875, %v6545_v48  ;;  %v6693_v49 = vmul.f32 0.0625, %v6674_v41  ;;  %v6696_v56 = vmul.f32 0.1875, %v6548_v28  ;;  %v8084_v28 = vld [vmem:[#allocation72_spill] sm:$0xff] }
  0xea   : > { %v795_v46 = vmul.f32 0.0625, %v6677_v58  ;;  %4367 = vmatprep.subr.msk.mxu1 %vm2030_vm0, %v1914_v23  ;;  %v1881_v6 = vadd.f32 %v1849_v43, %v1811_v44  ;;  %v1795_v13 = vadd.f32 %v1763_v2, %v1725_v19  ;;  %v1333_v48 = vmax.f32 %v6686_v15, 0.0  ;;  %v8086_v51 = vld [vmem:[#allocation69_spill] sm:$0xff]  ;;  %v393_v44 = vld [vmem:[%s4675_s14 + $0xc8] sm:$0xff] }
  0xeb   : > { %8081 = vst [vmem:[#allocation110_spill] sm:$0xff] %v6690_v4  ;;  %8082 = vst [vmem:[#allocation61_spill] sm:$0xff] %v6696_v56  ;;  %v6704_v34 = vadd.f32 %v619_v38, %v6683_v16  ;;  %4368 = vmatpush3.xpose.msk.msra.mxu1 %vm2030_vm0, %v1898_v7  ;;  %v763_v18 = vadd.f32 %v8084_v28, %v6696_v56  ;;  %v1708_v63 = vmul.f32 %v6597_v59, %v8064_v30  ;;  %v329_v30 = vld [vmem:[%s4675_s14 + $0xc9] sm:$0xff]  ;;  %v4526_v56 = vld [vmem:[%s4675_s14 + $0xe1] sm:$0xff] }
  0xec   : > { %v1778_v60 = vmul.f32 %v6604_v27, %v8085_v31  ;;  %v1848_v43 = vmul.f32 %v6611_v61, %v8086_v51  ;;  %4335 = vmatprep.subr.msk.mxu0 %vm2030_vm0, %v1881_v6  ;;  %v1865_v2 = vadd.f32 %v1833_v32, %v1795_v13  ;;  %v1369_v14 = vmul.f32 %v4707_v20, %v1333_v48  ;;  %v8087_v31 = vld [vmem:[#allocation114_spill] sm:$0xff]  ;;  %v8088_v6 = vld [vmem:[#allocation71_spill] sm:$0xff] }
  0xed   : > { %8083 = vst [vmem:[#allocation111_spill] sm:$0xff] %v6704_v34  ;;  %v779_v7 = vadd.f32 %v6704_v34, %v6690_v4  ;;  %v1317_v23 = vmax.f32 %v6700_v1, 0.0  ;;  %v827_v19 = vadd.f32 %v795_v46, %v763_v18  ;;  %v1692_v38 = vmul.f32 %v6597_v59, %v8066_v0  ;;  %v377_v18 = vld [vmem:[%s4675_s14 + $0x8] sm:$0xff]  ;;  %v6738_v0 = vld [vmem:[%s4675_s14 + $0xf2] sm:$0xff] }
  0xee   : > { %v1762_v51 = vmul.f32 %v6604_v27, %v8087_v31  ;;  %v1832_v32 = vmul.f32 %v6611_v61, %v8088_v6  ;;  %4336 = vmatpush3.xpose.msk.msra.mxu0 %vm2030_vm0, %v1865_v2  ;;  %v1670_v48 = vmul.f32 %v6619_v37, %v1369_v14  ;;  %v6734_v46 = vmul.f32 0.5625, %v4526_v56 }
  0xef   : > { %v843_v13 = vadd.f32 %v6693_v49, %v779_v7  ;;  %v1353_v4 = vmul.f32 %v4707_v20, %v1317_v23  ;;  %v1897_v16 = vmax.f32 %v827_v19, 0.0  ;;  %v618_v31 = vmul.f32 0.1875, %v329_v30  ;;  %v6750_v20 = vld [vmem:[%s4675_s14 + $0x32] sm:$0xff]  ;;  %v8094_v19 = vld [vmem:[#allocation115_spill] sm:$0xff] }
  0xf0   : > { %8089 = vst [vmem:[#allocation63_spill] sm:$0xff] %v6734_v46  ;;  %v6741_v28 = vmul.f32 0.1875, %v6592_v17  ;;  %v6743_v6 = vmul.f32 0.0625, %v393_v44  ;;  %v1740_v34 = vadd.f32 %v1708_v63, %v1670_v48  ;;  %v6747_v14 = vmul.f32 0.1875, %v6627_v40 }
  0xf1   : > { %v1913_v2 = vmax.f32 %v843_v13, 0.0  ;;  %v1654_v7 = vmul.f32 %v6619_v37, %v1353_v4  ;;  %v6753_v56 = vadd.f32 %v618_v31, %v6734_v46  ;;  %v794_v23 = vmul.f32 0.0625, %v377_v18  ;;  %v8093_v4 = vld [vmem:[#allocation75_spill] sm:$0xff]  ;;  %v8096_v46 = vld [vmem:[#allocation112_spill] sm:$0xff] }
  0xf2   : > { %8090 = vst [vmem:[#allocation108_spill] sm:$0xff] %v6741_v28  ;;  %8091 = vst [vmem:[#allocation65_spill] sm:$0xff] %v6747_v14  ;;  %v1332_v30 = vmax.f32 %v6738_v0, 0.0  ;;  %v1707_v17 = vmul.f32 %v6597_v59, %v8076_v52  ;;  %v1810_v63 = vadd.f32 %v1778_v60, %v1740_v34  ;;  %v762_v40 = vadd.f32 %v8093_v4, %v6747_v14  ;;  %v8095_v52 = vld [vmem:[#allocation73_spill] sm:$0xff] }
  0xf3   : > { %8092 = vst [vmem:[#allocation109_spill] sm:$0xff] %v6753_v56  ;;  %4369 = vmatprep.subr.msk.mxu1 %vm2030_vm0, %v1913_v2  ;;  %v1724_v44 = vadd.f32 %v1692_v38, %v1654_v7  ;;  %v1777_v13 = vmul.f32 %v6604_v27, %v8094_v19  ;;  %v778_v48 = vadd.f32 %v6753_v56, %v6741_v28  ;;  %v1316_v34 = vmax.f32 %v6750_v20, 0.0  ;;  %v328_v19 = vld [vmem:[%s4675_s14 + $0xc1] sm:$0xff] }
  0xf4   : > { %4370 = vmatpush3.xpose.msk.msra.mxu1 %vm2030_vm0, %v1897_v16  ;;  %v1669_v18 = vmul.f32 %v6619_v37, %v1332_v30  ;;  %v1847_v31 = vmul.f32 %v6611_v61, %v8095_v52  ;;  %v1880_v60 = vadd.f32 %v1848_v43, %v1810_v63  ;;  %v826_v2 = vadd.f32 %v794_v23, %v762_v40  ;;  %v392_v52 = vld [vmem:[%s4675_s14 + $0xc0] sm:$0xff]  ;;  %v8098_v23 = vld [vmem:[#allocation74_spill] sm:$0xff] }
  0xf5   : > { %v1794_v38 = vadd.f32 %v1762_v51, %v1724_v44  ;;  %v1691_v7 = vmul.f32 %v6597_v59, %v8079_v11  ;;  %v842_v16 = vadd.f32 %v6743_v6, %v778_v48  ;;  %v1653_v28 = vmul.f32 %v6619_v37, %v1316_v34  ;;  %v376_v56 = vld [vmem:[%s4675_s14] sm:$0xff] }
  0xf6   : > { %v1739_v14 = vadd.f32 %v1707_v17, %v1669_v18  ;;  %v8097_v30 = vmax.f32 %v8096_v46, 0.0  ;;  %4337 = vmatprep.subr.msk.mxu0 %vm2030_vm0, %v1880_v60  ;;  %v1896_v51 = vmax.f32 %v826_v2, 0.0  ;;  %v1831_v63 = vmul.f32 %v6611_v61, %v8098_v23  ;;  %v4527_v59 = vld [vmem:[%s4675_s14 + $0xd9] sm:$0xff] }
  0xf7   : > { %v1864_v43 = vadd.f32 %v1832_v32, %v1794_v38  ;;  %v6784_v11 = vmul.f32 0.5625, %v4527_v59  ;;  %v1912_v17 = vmax.f32 %v842_v16, 0.0  ;;  %v1723_v44 = vadd.f32 %v1691_v7, %v1653_v28  ;;  %v8102_v7 = vld [vmem:[#allocation83_spill] sm:$0xff]  ;;  %v8104_v23 = vld [vmem:[#allocation86_spill] sm:$0xff] }
  0xf8   : > { %v1761_v4 = vmul.f32 %v6604_v27, %v8097_v30  ;;  %v1809_v37 = vadd.f32 %v1777_v13, %v1739_v14  ;;  %v617_v46 = vmul.f32 0.1875, %v328_v19  ;;  %v6788_v27 = vmul.f32 0.1875, %v6674_v41  ;;  %v6800_v14 = vld [vmem:[%s4675_s14 + $0x18a] sm:$0xff]  ;;  %v3757_v41 = vld [vmem:[%s4675_s14 + $0x1a0] sm:$0xff] }
  0xf9   : > { %4338 = vmatpush3.xpose.msk.msra.mxu0 %vm2030_vm0, %v1864_v43  ;;  %v6790_v32 = vmul.f32 0.0625, %v392_v52  ;;  %v6793_v40 = vmul.f32 0.1875, %v6677_v58  ;;  %v793_v61 = vmul.f32 0.0625, %v376_v56  ;;  %4371 = vmatprep.subr.msk.mxu1 %vm2030_vm0, %v1912_v17  ;;  %v6803_v13 = vmul.f32 0.1875, %v6800_v14  ;;  %v8099_v58 = vld [vmem:[#allocation82_spill] sm:$0xff]  ;;  %v8103_v52 = vld [vmem:[#allocation9_spill] sm:$0xff] }
  0xfa   : > { %v1879_v48 = vadd.f32 %v1847_v31, %v1809_v37  ;;  %v1793_v18 = vadd.f32 %v1761_v4, %v1723_v44  ;;  %v6797_v28 = vadd.f32 %v617_v46, %v6784_v11  ;;  %4372 = vmatpush3.xpose.msk.msra.mxu1 %vm2030_vm0, %v1896_v51  ;;  %v6810_v56 = vmul.f32 0.0625, %v6042_v55  ;;  %v6813_v31 = vld [vmem:[%s4675_s14 + $0xca] sm:$0xff]  ;;  %v4530_v55 = vld [vmem:[%s4675_s14 + $0x1a1] sm:$0xff] }
  0xfb   : > { %v761_v34 = vadd.f32 %v8099_v58, %v6793_v40  ;;  %v6816_v4 = vmul.f32 0.1875, %v6813_v31  ;;  %v6819_v60 = vmul.f32 0.0625, %v6061_v26  ;;  %v888_v19 = vadd.f32 %v8102_v7, %v6803_v13  ;;  %v8105_v26 = vld [vmem:[#allocation11_spill] sm:$0xff]  ;;  %v8106_v37 = vld [vmem:[#allocation77_spill] sm:$0xff] }
  0xfc   : > { %8100 = vst [vmem:[#allocation66_spill] sm:$0xff] %v6810_v56  ;;  %4339 = vmatprep.subr.msk.mxu0 %vm2030_vm0, %v1879_v48  ;;  %v1863_v38 = vadd.f32 %v1831_v63, %v1793_v18  ;;  %v777_v2 = vadd.f32 %v6797_v28, %v6788_v27  ;;  %v664_v16 = vmul.f32 0.1875, %v4530_v55  ;;  %v1048_v51 = vmul.f32 0.0625, %v3757_v41  ;;  %v6838_v46 = vld [vmem:[%s4675_s14 + $0x182] sm:$0xff] }
  0xfd   : > { %8101 = vst [vmem:[#allocation113_spill] sm:$0xff] %v6819_v60  ;;  %v825_v30 = vadd.f32 %v793_v61, %v761_v34  ;;  %v872_v43 = vadd.f32 %v8103_v52, %v6816_v4  ;;  %v1000_v59 = vadd.f32 %v8105_v26, %v8104_v23  ;;  %v952_v17 = vadd.f32 %v6810_v56, %v888_v19  ;;  %v8108_v19 = vld [vmem:[#allocation20_spill] sm:$0xff] }
  0xfe   : > { %4340 = vmatpush3.xpose.msk.msra.mxu0 %vm2030_vm0, %v1863_v38  ;;  %v841_v63 = vadd.f32 %v6790_v32, %v777_v2  ;;  %v6835_v44 = vadd.f32 %v664_v16, %v8106_v37  ;;  %v6841_v61 = vmul.f32 0.1875, %v6838_v46  ;;  %v6846_v34 = vmul.f32 0.0625, %v6114_v47  ;;  %v3756_v38 = vld [vmem:[%s4675_s14 + $0x198] sm:$0xff] }
  0xff   : > { %v1895_v48 = vmax.f32 %v825_v30, 0.0  ;;  %v936_v18 = vadd.f32 %v6819_v60, %v872_v43  ;;  %v1064_v41 = vadd.f32 %v1000_v59, %v6636_v42  ;;  %v1958_v7 = vmax.f32 %v952_v17, 0.0  ;;  %v4532_v42 = vld [vmem:[%s4675_s14 + $0xc2] sm:$0xff]  ;;  %v4533_v59 = vld [vmem:[%s4675_s14 + $0x199] sm:$0xff] }
 0x100   : > { %8107 = vst [vmem:[#allocation69_spill] sm:$0xff] %v6846_v34  ;;  %v1911_v2 = vmax.f32 %v841_v63, 0.0  ;;  %v1016_v55 = vadd.f32 %v6835_v44, %v8108_v19  ;;  %v887_v16 = vadd.f32 %v5926_v62, %v6841_v61  ;;  %v6856_v43 = vmul.f32 0.1875, %v4532_v42  ;;  %v8162_v60 = vld [vmem:[#allocation36_spill] sm:$0xff] }
 0x101   : > { %4342 = vmatmul.mubr.msk.f32.vlgmr.msra.gmra.mxu0 %vm2030_vm0, %v6129_v25  ;;  %v1942_v30 = vmax.f32 %v936_v18, 0.0  ;;  %v1974_v52 = vmax.f32 %v1064_v41, 0.0  ;;  %v6859_v47 = vmul.f32 0.0625, %v6124_v22  ;;  %4377 = vmatprep.subr.msk.mxu0 %vm2030_vm0, %v1958_v7  ;;  %v663_v25 = vmul.f32 0.1875, %v4533_v59  ;;  %v8110_v22 = vld [vmem:[#allocation14_spill] sm:$0xff] }
 0x102   : > { %4373 = vmatprep.subr.msk.mxu1 %vm2030_vm0, %v1911_v2  ;;  %v1080_v23 = vadd.f32 %v1048_v51, %v1016_v55  ;;  %v951_v62 = vadd.f32 %v6846_v34, %v887_v16  ;;  %v1047_v63 = vmul.f32 0.0625, %v3756_v38  ;;  %v871_v17 = vadd.f32 %v7952_v53, %v6856_v43  ;;  %v4534_v18 = vld [vmem:[%s4675_s14 + $0x172] sm:$0xff]  ;;  %v3755_v2 = vld [vmem:[%s4675_s14 + $0x188] sm:$0xff]  ;;  %4409 = vmatprep.mubr.msk.f32.mxu0 %vm2030_vm0, %v6173_v57 }
 0x103   : > { %8109 = vst [vmem:[#allocation114_spill] sm:$0xff] %v6859_v47  ;;  %4374 = vmatpush3.xpose.msk.msra.mxu1 %vm2030_vm0, %v1895_v48  ;;  %4378 = vmatpush3.xpose.msk.msra.mxu0 %vm2030_vm0, %v1942_v30  ;;  %v999_v37 = vadd.f32 %v8110_v22, %v5920_v3  ;;  %v6872_v41 = vmul.f32 0.1875, %v4534_v18  ;;  %v6875_v51 = vmul.f32 0.0625, %v6208_v36  ;;  %v6879_v38 = vadd.f32 %v663_v25, %v5884_v21  ;;  %v4535_v48 = vld [vmem:[%s4675_s14 + $0xb2] sm:$0xff] }
 0x104   : > { %v1990_v7 = vmax.f32 %v1080_v23, 0.0  ;;  %v1957_v19 = vmax.f32 %v951_v62, 0.0  ;;  %v6882_v55 = vmul.f32 0.1875, %v4535_v48  ;;  %v935_v3 = vadd.f32 %v6859_v47, %v871_v17  ;;  %v4536_v17 = vld [vmem:[%s4675_s14 + $0x16a] sm:$0xff] }
 0x105   : > { %8111 = vst [vmem:[#allocation71_spill] sm:$0xff] %v6875_v51  ;;  %v1063_v53 = vadd.f32 %v999_v37, %v6693_v49  ;;  %v886_v36 = vadd.f32 %v5984_v10, %v6872_v41  ;;  %v6891_v16 = vmul.f32 0.0625, %v6228_v9  ;;  %v1015_v21 = vadd.f32 %v6879_v38, %v5917_v54  ;;  %v8113_v49 = vld [vmem:[#allocation90_spill] sm:$0xff]  ;;  %v8114_v54 = vld [vmem:[#allocation19_spill] sm:$0xff] }
 0x106   : > { %4376 = vmatmul.mubr.msk.f32.vlgmr.msra.gmra.mxu1 %vm2030_vm0, %v6173_v57  ;;  %4411 = vmatprep.subr.msk.mxu1 %vm2030_vm0, %v1990_v7  ;;  %v870_v30 = vadd.f32 %v7957_v12, %v6882_v55  ;;  %v6902_v42 = vadd.f32 %v8113_v49, %v5969_v45  ;;  %v1046_v10 = vmul.f32 0.0625, %v3755_v2  ;;  %v1941_v9 = vmax.f32 %v935_v3, 0.0  ;;  %v3754_v7 = vld [vmem:[%s4675_s14 + $0x180] sm:$0xff]  ;;  %v8116_v3 = vld [vmem:[#allocation6_spill] sm:$0xff] }
 0x107   : > { %8112 = vst [vmem:[#allocation115_spill] sm:$0xff] %v6891_v16  ;;  %4412 = vmatpush3.xpose.msk.msra.mxu1 %vm2030_vm0, %v1974_v52  ;;  %4379 = vmatprep.subr.msk.mxu0 %vm2030_vm0, %v1957_v19  ;;  %v1973_v23 = vmax.f32 %v1063_v53, 0.0  ;;  %v950_v62 = vadd.f32 %v6875_v51, %v886_v36  ;;  %v998_v59 = vadd.f32 %v8114_v54, %v5988_v39  ;;  %v6913_v37 = vmul.f32 0.1875, %v4536_v17  ;;  %v4537_v39 = vld [vmem:[%s4675_s14 + $0xaa] sm:$0xff]  ;;  %v8117_v36 = vld [vmem:[#allocation22_spill] sm:$0xff]  ;;  %v8149_v51 = vld [vmem:[#allocation15_spill] sm:$0xff] }
 0x108   : > { %v1079_v25 = vadd.f32 %v1047_v63, %v1015_v21  ;;  %v934_v12 = vadd.f32 %v6891_v16, %v870_v30  ;;  %v1014_v45 = vadd.f32 %v6902_v42, %v5978_v35  ;;  %4443 = vmatprep.mubr.msk.f32.mxu1 %vm2030_vm0, %v6173_v57  ;;  %4380 = vmatpush3.xpose.msk.msra.mxu0 %vm2030_vm0, %v1941_v9  ;;  %v6920_v2 = vmul.f32 0.0625, %v6279_v5  ;;  %v8119_v21 = vld [vmem:[#allocation5_spill] sm:$0xff]  ;;  %v8120_v30 = vld [vmem:[#allocation94_spill] sm:$0xff] }
 0x109   : > { %v1956_v52 = vmax.f32 %v950_v62, 0.0  ;;  %v1062_v18 = vadd.f32 %v998_v59, %v6743_v6  ;;  %v6923_v63 = vmul.f32 0.1875, %v4537_v39  ;;  %v885_v53 = vadd.f32 %v8116_v3, %v6913_v37  ;;  %v8121_v59 = vld [vmem:[#allocation88_spill] sm:$0xff] }
 0x10a   : > { %8115 = vst [vmem:[#allocation73_spill] sm:$0xff] %v6920_v2  ;;  %v1989_v19 = vmax.f32 %v1079_v25, 0.0  ;;  %v1940_v35 = vmax.f32 %v934_v12, 0.0  ;;  %v1078_v48 = vadd.f32 %v1046_v10, %v1014_v45  ;;  %v6932_v5 = vmul.f32 0.0625, %v6295_v24  ;;  %v8122_v25 = vld [vmem:[#allocation25_spill] sm:$0xff]  ;;  %v8123_v45 = vld [vmem:[#allocation84_spill] sm:$0xff] }
 0x10b   : > { %4381 = vmatprep.subr.msk.mxu0 %vm2030_vm0, %v1956_v52  ;;  %v1972_v57 = vmax.f32 %v1062_v18, 0.0  ;;  %v869_v6 = vadd.f32 %v8117_v36, %v6923_v63  ;;  %v6936_v49 = vadd.f32 %v8120_v30, %v8119_v21  ;;  %v949_v9 = vadd.f32 %v6920_v2, %v885_v53  ;;  %v4538_v52 = vld [vmem:[%s4675_s14 + $0x15a] sm:$0xff]  ;;  %v3737_v53 = vld [vmem:[%s4675_s14 + $0xb0] sm:$0xff] }
 0x10c   : > { %8118 = vst [vmem:[#allocation112_spill] sm:$0xff] %v6932_v5  ;;  %4413 = vmatprep.subr.msk.mxu1 %vm2030_vm0, %v1989_v19  ;;  %v1988_v10 = vmax.f32 %v1078_v48, 0.0  ;;  %v1045_v62 = vmul.f32 0.0625, %v3754_v7  ;;  %v997_v12 = vadd.f32 %v8122_v25, %v8121_v59  ;;  %4382 = vmatpush3.xpose.msk.msra.mxu0 %vm2030_vm0, %v1940_v35  ;;  %v6948_v18 = vmul.f32 0.1875, %v4538_v52  ;;  %v3753_v7 = vld [vmem:[%s4675_s14 + $0x170] sm:$0xff]  ;;  %v8126_v21 = vld [vmem:[#allocation10_spill] sm:$0xff] }
 0x10d   : > { %4414 = vmatpush3.xpose.msk.msra.mxu1 %vm2030_vm0, %v1973_v23  ;;  %v933_v24 = vadd.f32 %v6932_v5, %v869_v6  ;;  %v1013_v17 = vadd.f32 %v6936_v49, %v8123_v45  ;;  %v6951_v39 = vmul.f32 0.0625, %v6343_v29  ;;  %v1955_v19 = vmax.f32 %v949_v9, 0.0  ;;  %v4539_v23 = vld [vmem:[%s4675_s14 + $0x9a] sm:$0xff]  ;;  %v8127_v30 = vld [vmem:[#allocation85_spill] sm:$0xff]  ;;  %v8128_v59 = vld [vmem:[#allocation96_spill] sm:$0xff] }
 0x10e   : > { %4415 = vmatprep.subr.msk.mxu1 %vm2030_vm0, %v1988_v10  ;;  %v1061_v48 = vadd.f32 %v997_v12, %v6790_v32  ;;  %v6957_v3 = vmul.f32 0.1875, %v4539_v23  ;;  %v6960_v35 = vmul.f32 0.0625, %v6356_v8  ;;  %v884_v29 = vadd.f32 %v8126_v21, %v6948_v18  ;;  %v8129_v10 = vld [vmem:[#allocation28_spill] sm:$0xff]  ;;  %v8130_v12 = vld [vmem:[#allocation81_spill] sm:$0xff]  ;;  %v8132_v23 = vld [vmem:[#allocation7_spill] sm:$0xff] }
 0x10f   : > { %8124 = vst [vmem:[#allocation74_spill] sm:$0xff] %v6951_v39  ;;  %v1939_v36 = vmax.f32 %v933_v24, 0.0  ;;  %v1077_v6 = vadd.f32 %v1045_v62, %v1013_v17  ;;  %v6967_v45 = vadd.f32 %v8128_v59, %v8127_v30  ;;  %4383 = vmatprep.subr.msk.mxu0 %vm2030_vm0, %v1955_v19  ;;  %v1044_v9 = vmul.f32 0.0625, %v3753_v7  ;;  %v8131_v24 = vld [vmem:[#allocation29_spill] sm:$0xff]  ;;  %v8138_v5 = vld [vmem:[#allocation100_spill] sm:$0xff] }
 0x110   : > { %8125 = vst [vmem:[#allocation82_spill] sm:$0xff] %v6960_v35  ;;  %v1971_v32 = vmax.f32 %v1061_v48, 0.0  ;;  %v868_v8 = vadd.f32 %v8129_v10, %v6957_v3  ;;  %v996_v52 = vadd.f32 %v8131_v24, %v8130_v12  ;;  %v948_v17 = vadd.f32 %v6951_v39, %v884_v29  ;;  %v4540_v30 = vld [vmem:[%s4675_s14 + $0x152] sm:$0xff] }
 0x111   : > { %4416 = vmatpush3.xpose.msk.msra.mxu1 %vm2030_vm0, %v1972_v57  ;;  %4384 = vmatpush3.xpose.msk.msra.mxu0 %vm2030_vm0, %v1939_v36  ;;  %v1987_v62 = vmax.f32 %v1077_v6, 0.0  ;;  %v1012_v19 = vadd.f32 %v6967_v45, %v8132_v23  ;;  %v1028_v48 = vmul.f32 0.0625, %v3737_v53  ;;  %v6981_v59 = vmul.f32 0.1875, %v4540_v30  ;;  %v4541_v10 = vld [vmem:[%s4675_s14 + $0x92] sm:$0xff]  ;;  %v3752_v36 = vld [vmem:[%s4675_s14 + $0x168] sm:$0xff] }
 0x112   : > { %v932_v21 = vadd.f32 %v6960_v35, %v868_v8  ;;  %v6984_v7 = vmul.f32 0.0625, %v6397_v33  ;;  %v6987_v57 = vmul.f32 0.1875, %v4541_v10  ;;  %v1954_v6 = vmax.f32 %v948_v17, 0.0  ;;  %v3736_v53 = vld [vmem:[%s4675_s14 + $0xa8] sm:$0xff]  ;;  %v8135_v30 = vld [vmem:[#allocation93_spill] sm:$0xff]  ;;  %v8136_v33 = vld [vmem:[#allocation35_spill] sm:$0xff] }
 0x113   : > { %4417 = vmatprep.subr.msk.mxu1 %vm2030_vm0, %v1987_v62  ;;  %v1076_v29 = vadd.f32 %v1044_v9, %v1012_v19  ;;  %v1060_v12 = vadd.f32 %v1028_v48, %v996_v52  ;;  %v6992_v23 = vmul.f32 0.0625, %v6409_v50  ;;  %v883_v35 = vadd.f32 %v8135_v30, %v6981_v59  ;;  %v8137_v39 = vld [vmem:[#allocation13_spill] sm:$0xff]  ;;  %v8139_v62 = vld [vmem:[#allocation12_spill] sm:$0xff]  ;;  %v3751_v30 = vld [vmem:[%s4675_s14 + $0x158] sm:$0xff] }
 0x114   : > { %8133 = vst [vmem:[#allocation83_spill] sm:$0xff] %v6984_v7  ;;  %v1938_v8 = vmax.f32 %v932_v21, 0.0  ;;  %v867_v10 = vadd.f32 %v8136_v33, %v6987_v57  ;;  %v7001_v2 = vadd.f32 %v8138_v5, %v8137_v39  ;;  %4385 = vmatprep.subr.msk.mxu0 %vm2030_vm0, %v1954_v6  ;;  %v1043_v52 = vmul.f32 0.0625, %v3752_v36  ;;  %v8140_v17 = vld [vmem:[#allocation32_spill] sm:$0xff]  ;;  %v8142_v36 = vld [vmem:[#allocation27_spill] sm:$0xff] }
 0x115   : > { %8134 = vst [vmem:[#allocation9_spill] sm:$0xff] %v6992_v23  ;;  %4418 = vmatpush3.xpose.msk.msra.mxu1 %vm2030_vm0, %v1971_v32  ;;  %v1986_v50 = vmax.f32 %v1076_v29, 0.0  ;;  %v1970_v9 = vmax.f32 %v1060_v12, 0.0  ;;  %v995_v19 = vadd.f32 %v8140_v17, %v8139_v62  ;;  %v947_v48 = vadd.f32 %v6984_v7, %v883_v35  ;;  %v8141_v5 = vld [vmem:[#allocation92_spill] sm:$0xff] }
 0x116   : > { %4386 = vmatpush3.xpose.msk.msra.mxu0 %vm2030_vm0, %v1938_v8  ;;  %v931_v21 = vadd.f32 %v6992_v23, %v867_v10  ;;  %v1011_v39 = vadd.f32 %v7001_v2, %v8141_v5  ;;  %v1027_v32 = vmul.f32 0.0625, %v3736_v53  ;;  %v4542_v6 = vld [vmem:[%s4675_s14 + $0x142] sm:$0xff]  ;;  %v7018_v12 = vmul.f32 0.0625, %v8142_v36  ;;  %v3735_v10 = vld [vmem:[%s4675_s14 + $0x98] sm:$0xff] }
 0x117   : > { %4419 = vmatprep.subr.msk.mxu1 %vm2030_vm0, %v1986_v50  ;;  %v7015_v29 = vmul.f32 0.1875, %v4542_v6  ;;  %v4543_v33 = vld [vmem:[%s4675_s14 + $0x82] sm:$0xff]  ;;  %v1953_v23 = vmax.f32 %v947_v48, 0.0  ;;  %v8147_v36 = vld [vmem:[#allocation38_spill] sm:$0xff] }
 0x118   : > { %8143 = vst [vmem:[#allocation86_spill] sm:$0xff] %v7018_v12  ;;  %v7021_v62 = vmul.f32 0.1875, %v4543_v33  ;;  %v8144_v8 = vld [vmem:[#allocation104_spill] sm:$0xff]  ;;  %v1937_v7 = vmax.f32 %v931_v21, 0.0  ;;  %v1075_v5 = vadd.f32 %v1043_v52, %v1011_v39  ;;  %v1059_v53 = vadd.f32 %v1027_v32, %v995_v19  ;;  %v8150_v19 = vld [vmem:[#allocation89_spill] sm:$0xff]  ;;  %v8151_v21 = vld [vmem:[#allocation39_spill] sm:$0xff] }
 0x119   : > { %v7024_v35 = vmul.f32 0.0625, %v8144_v8  ;;  %4420 = vmatpush3.xpose.msk.msra.mxu1 %vm2030_vm0, %v1970_v9  ;;  %v8146_v50 = vld [vmem:[#allocation16_spill] sm:$0xff]  ;;  %v1042_v8 = vmul.f32 0.0625, %v3751_v30  ;;  %4387 = vmatprep.subr.msk.mxu0 %vm2030_vm0, %v1953_v23  ;;  %v994_v9 = vadd.f32 %v8151_v21, %v8150_v19  ;;  %v1026_v39 = vmul.f32 0.0625, %v3735_v10  ;;  %v4544_v30 = vld [vmem:[%s4675_s14 + $0x13a] sm:$0xff]  ;;  %v3750_v23 = vld [vmem:[%s4675_s14 + $0x150] sm:$0xff] }
 0x11a   : > { %v882_v6 = vadd.f32 %v8146_v50, %v7015_v29  ;;  %v866_v16 = vadd.f32 %v8147_v36, %v7021_v62  ;;  %v8148_v33 = vld [vmem:[#allocation8_spill] sm:$0xff]  ;;  %v1985_v52 = vmax.f32 %v1075_v5, 0.0  ;;  %v1969_v48 = vmax.f32 %v1059_v53, 0.0  ;;  %4388 = vmatpush3.xpose.msk.msra.mxu0 %vm2030_vm0, %v1937_v7  ;;  %v8152_v36 = vld [vmem:[#allocation18_spill] sm:$0xff]  ;;  %v8157_v7 = vld [vmem:[#allocation41_spill] sm:$0xff] }
 0x11b   : > { %8145 = vst [vmem:[#allocation11_spill] sm:$0xff] %v7024_v35  ;;  %v7034_v47 = vadd.f32 %v8149_v51, %v8148_v33  ;;  %v7045_v33 = vmul.f32 0.1875, %v4544_v30  ;;  %v1058_v5 = vadd.f32 %v1026_v39, %v994_v9  ;;  %v8154_v53 = vld [vmem:[#allocation102_spill] sm:$0xff]  ;;  %v8160_v39 = vld [vmem:[#allocation45_spill] sm:$0xff] }
 0x11c   : > { %v946_v32 = vadd.f32 %v7018_v12, %v882_v6  ;;  %v930_v50 = vadd.f32 %v7024_v35, %v866_v16  ;;  %4421 = vmatprep.subr.msk.mxu1 %vm2030_vm0, %v1985_v52  ;;  %v7050_v34 = vmul.f32 0.0625, %v8154_v53  ;;  %v4545_v10 = vld [vmem:[%s4675_s14 + $0x7a] sm:$0xff]  ;;  %v7056_v6 = vmul.f32 0.0625, %v8157_v7  ;;  %v3734_v16 = vld [vmem:[%s4675_s14 + $0x90] sm:$0xff] }
 0x11d   : > { %v1010_v51 = vadd.f32 %v7034_v47, %v8152_v36  ;;  %8153 = vst [vmem:[#allocation77_spill] sm:$0xff] %v7045_v33  ;;  %v7053_v19 = vmul.f32 0.1875, %v4545_v10  ;;  %4422 = vmatpush3.xpose.msk.msra.mxu1 %vm2030_vm0, %v1969_v48  ;;  %v8159_v12 = vld [vmem:[#allocation21_spill] sm:$0xff]  ;;  %v1968_v9 = vmax.f32 %v1058_v5, 0.0  ;;  %v8161_v10 = vld [vmem:[#allocation91_spill] sm:$0xff]  ;;  %v1041_v7 = vmul.f32 0.0625, %v3750_v23 }
 0x11e   : > { %8155 = vst [vmem:[#allocation20_spill] sm:$0xff] %v7050_v34  ;;  %8158 = vst [vmem:[#allocation90_spill] sm:$0xff] %v7056_v6  ;;  %v1952_v36 = vmax.f32 %v946_v32, 0.0  ;;  %v1936_v30 = vmax.f32 %v930_v50, 0.0  ;;  %v881_v52 = vadd.f32 %v8159_v12, %v7045_v33  ;;  %v7066_v56 = vadd.f32 %v8162_v60, %v8161_v10  ;;  %v8165_v50 = vld [vmem:[#allocation42_spill] sm:$0xff]  ;;  %v4546_v10 = vld [vmem:[%s4675_s14 + $0x12a] sm:$0xff] }
 0x11f   : > { %8156 = vst [vmem:[#allocation14_spill] sm:$0xff] %v7053_v19  ;;  %v1074_v35 = vadd.f32 %v1042_v8, %v1010_v51  ;;  %v865_v53 = vadd.f32 %v8160_v39, %v7053_v19  ;;  %v8164_v8 = vld [vmem:[#allocation98_spill] sm:$0xff]  ;;  %v1025_v51 = vmul.f32 0.0625, %v3734_v16  ;;  %v8166_v39 = vld [vmem:[#allocation17_spill] sm:$0xff]  ;;  %v7077_v23 = vmul.f32 0.1875, %v4546_v10  ;;  %v8175_v33 = vld [vmem:[#allocation79_spill] sm:$0xff] }
 0x120   : > { %8163 = vst [vmem:[#allocation19_spill] sm:$0xff] %v7066_v56  ;;  %4389 = vmatprep.subr.msk.mxu0 %vm2030_vm0, %v1952_v36  ;;  %v945_v32 = vadd.f32 %v7050_v34, %v881_v52  ;;  %v993_v12 = vadd.f32 %v8165_v50, %v8164_v8  ;;  %v1009_v60 = vadd.f32 %v7066_v56, %v8166_v39  ;;  %v8168_v19 = vld [vmem:[#allocation78_spill] sm:$0xff]  ;;  %v4547_v8 = vld [vmem:[%s4675_s14 + $0x6a] sm:$0xff]  ;;  %v8174_v56 = vld [vmem:[#allocation99_spill] sm:$0xff] }
 0x121   : > { %v1984_v48 = vmax.f32 %v1074_v35, 0.0  ;;  %4390 = vmatpush3.xpose.msk.msra.mxu0 %vm2030_vm0, %v1936_v30  ;;  %v929_v5 = vadd.f32 %v7056_v6, %v865_v53  ;;  %8167 = vst [vmem:[#allocation6_spill] sm:$0xff] %v7077_v23  ;;  %v7080_v36 = vmul.f32 0.0625, %v8168_v19  ;;  %v3749_v35 = vld [vmem:[%s4675_s14 + $0x140] sm:$0xff]  ;;  %v7085_v16 = vmul.f32 0.1875, %v4547_v8  ;;  %v8173_v19 = vld [vmem:[#allocation26_spill] sm:$0xff] }
 0x122   : > { %v1951_v52 = vmax.f32 %v945_v32, 0.0  ;;  %v1057_v34 = vadd.f32 %v1025_v51, %v993_v12  ;;  %v8171_v30 = vld [vmem:[#allocation47_spill] sm:$0xff]  ;;  %v1073_v10 = vadd.f32 %v1041_v7, %v1009_v60  ;;  %v880_v6 = vadd.f32 %v8173_v19, %v7077_v23  ;;  %v8177_v12 = vld [vmem:[#allocation48_spill] sm:$0xff] }
 0x123   : > { %8169 = vst [vmem:[#allocation22_spill] sm:$0xff] %v7080_v36  ;;  %4423 = vmatprep.subr.msk.mxu1 %vm2030_vm0, %v1984_v48  ;;  %8170 = vst [vmem:[#allocation5_spill] sm:$0xff] %v7085_v16  ;;  %v7088_v50 = vmul.f32 0.0625, %v8171_v30  ;;  %v3733_v53 = vld [vmem:[%s4675_s14 + $0x80] sm:$0xff]  ;;  %v1935_v39 = vmax.f32 %v929_v5, 0.0  ;;  %v7096_v48 = vadd.f32 %v8175_v33, %v8174_v56  ;;  %v864_v51 = vadd.f32 %v8177_v12, %v7085_v16  ;;  %v8179_v30 = vld [vmem:[#allocation49_spill] sm:$0xff] }
 0x124   : > { %4424 = vmatpush3.xpose.msk.msra.mxu1 %vm2030_vm0, %v1968_v9  ;;  %4391 = vmatprep.subr.msk.mxu0 %vm2030_vm0, %v1951_v52  ;;  %v1967_v32 = vmax.f32 %v1057_v34, 0.0  ;;  %v1040_v8 = vmul.f32 0.0625, %v3749_v35  ;;  %v8178_v9 = vld [vmem:[#allocation95_spill] sm:$0xff]  ;;  %v1983_v7 = vmax.f32 %v1073_v10, 0.0  ;;  %v944_v60 = vadd.f32 %v7080_v36, %v880_v6 }
 0x125   : > { %8172 = vst [vmem:[#allocation94_spill] sm:$0xff] %v7088_v50  ;;  %8176 = vst [vmem:[#allocation88_spill] sm:$0xff] %v7096_v48  ;;  %v992_v5 = vadd.f32 %v8179_v30, %v8178_v9  ;;  %4392 = vmatpush3.xpose.msk.msra.mxu0 %vm2030_vm0, %v1935_v39  ;;  %v8180_v19 = vld [vmem:[#allocation23_spill] sm:$0xff]  ;;  %v1024_v33 = vmul.f32 0.0625, %v3733_v53  ;;  %v928_v52 = vadd.f32 %v7088_v50, %v864_v51  ;;  %v3748_v39 = vld [vmem:[%s4675_s14 + $0x138] sm:$0xff] }
 0x126   : > { %v1008_v56 = vadd.f32 %v7096_v48, %v8180_v19  ;;  %v4548_v34 = vld [vmem:[%s4675_s14 + $0x122] sm:$0xff]  ;;  %4425 = vmatprep.subr.msk.mxu1 %vm2030_vm0, %v1983_v7  ;;  %v1950_v10 = vmax.f32 %v944_v60, 0.0  ;;  %v3732_v53 = vld [vmem:[%s4675_s14 + $0x78] sm:$0xff]  ;;  %v8189_v48 = vld [vmem:[#allocation97_spill] sm:$0xff] }
 0x127   : > { %v7109_v23 = vmul.f32 0.1875, %v4548_v34  ;;  %v8182_v12 = vld [vmem:[#allocation107_spill] sm:$0xff]  ;;  %v1056_v36 = vadd.f32 %v1024_v33, %v992_v5  ;;  %v8185_v30 = vld [vmem:[#allocation56_spill] sm:$0xff]  ;;  %v1934_v51 = vmax.f32 %v928_v52, 0.0  ;;  %v8187_v34 = vld [vmem:[#allocation33_spill] sm:$0xff]  ;;  %v1039_v5 = vmul.f32 0.0625, %v3748_v39 }
 0x128   : > { %v7112_v35 = vmul.f32 0.0625, %v8182_v12  ;;  %v4549_v16 = vld [vmem:[%s4675_s14 + $0x62] sm:$0xff]  ;;  %v1072_v6 = vadd.f32 %v1040_v8, %v1008_v56  ;;  %v7120_v19 = vmul.f32 0.0625, %v8185_v30  ;;  %4426 = vmatpush3.xpose.msk.msra.mxu1 %vm2030_vm0, %v1967_v32  ;;  %4393 = vmatprep.subr.msk.mxu0 %vm2030_vm0, %v1950_v10  ;;  %v4550_v10 = vld [vmem:[%s4675_s14 + $0x112] sm:$0xff]  ;;  %v7146_v39 = vmul.f32 0.0625, %v6686_v15 }
 0x129   : > { %8181 = vst [vmem:[#allocation25_spill] sm:$0xff] %v7109_v23  ;;  %v7115_v9 = vmul.f32 0.1875, %v4549_v16  ;;  %v879_v12 = vadd.f32 %v8187_v34, %v7109_v23  ;;  %v8188_v16 = vld [vmem:[#allocation55_spill] sm:$0xff]  ;;  %v8190_v7 = vld [vmem:[#allocation4_spill] sm:$0xff]  ;;  %v1966_v30 = vmax.f32 %v1056_v36, 0.0  ;;  %4394 = vmatpush3.xpose.msk.msra.mxu0 %vm2030_vm0, %v1934_v51  ;;  %v7143_v36 = vmul.f32 0.1875, %v4550_v10 }
 0x12a   : > { %8183 = vst [vmem:[#allocation84_spill] sm:$0xff] %v7112_v35  ;;  %8186 = vst [vmem:[#allocation85_spill] sm:$0xff] %v7120_v19  ;;  %v7130_v60 = vadd.f32 %v8190_v7, %v8189_v48  ;;  %v1982_v8 = vmax.f32 %v1072_v6, 0.0  ;;  %v8192_v32 = vld [vmem:[#allocation31_spill] sm:$0xff]  ;;  %v8193_v56 = vld [vmem:[#allocation52_spill] sm:$0xff]  ;;  %v1023_v7 = vmul.f32 0.0625, %v3732_v53 }
 0x12b   : > { %8184 = vst [vmem:[#allocation10_spill] sm:$0xff] %v7115_v9  ;;  %v863_v50 = vadd.f32 %v8188_v16, %v7115_v9  ;;  %v991_v33 = vadd.f32 %v8193_v56, %v8192_v32  ;;  %v943_v52 = vadd.f32 %v7112_v35, %v879_v12  ;;  %v8194_v16 = vld [vmem:[#allocation103_spill] sm:$0xff]  ;;  %v3747_v9 = vld [vmem:[%s4675_s14 + $0x128] sm:$0xff]  ;;  %8195 = vst [vmem:[#allocation28_spill] sm:$0xff] %v7143_v36  ;;  %v7152_v51 = vmul.f32 0.0625, %v6700_v1 }
 0x12c   : > { %8191 = vst [vmem:[#allocation96_spill] sm:$0xff] %v7130_v60  ;;  %v1007_v48 = vadd.f32 %v7130_v60, %v8194_v16  ;;  %4427 = vmatprep.subr.msk.mxu1 %vm2030_vm0, %v1982_v8  ;;  %8196 = vst [vmem:[#allocation81_spill] sm:$0xff] %v7146_v39  ;;  %v4551_v6 = vld [vmem:[%s4675_s14 + $0x52] sm:$0xff]  ;;  %v1038_v1 = vmul.f32 0.0625, %v3747_v9  ;;  %v4552_v9 = vld [vmem:[%s4675_s14 + $0x10a] sm:$0xff] }
 0x12d   : > { %v927_v34 = vadd.f32 %v7120_v19, %v863_v50  ;;  %v7149_v32 = vmul.f32 0.1875, %v4551_v6  ;;  %8198 = vst [vmem:[#allocation7_spill] sm:$0xff] %v7152_v51  ;;  %v3731_v50 = vld [vmem:[%s4675_s14 + $0x68] sm:$0xff]  ;;  %4428 = vmatpush3.xpose.msk.msra.mxu1 %vm2030_vm0, %v1966_v30  ;;  %v1949_v12 = vmax.f32 %v943_v52, 0.0  ;;  %v1055_v8 = vadd.f32 %v1023_v7, %v991_v33  ;;  %v8199_v10 = vld [vmem:[#allocation105_spill] sm:$0xff]  ;;  %v8200_v15 = vld [vmem:[#allocation58_spill] sm:$0xff] }
 0x12e   : > { %v1071_v16 = vadd.f32 %v1039_v5, %v1007_v48  ;;  %v878_v19 = vadd.f32 %v8199_v10, %v7143_v36  ;;  %v8201_v6 = vld [vmem:[#allocation101_spill] sm:$0xff]  ;;  %v8202_v56 = vld [vmem:[#allocation30_spill] sm:$0xff]  ;;  %v8205_v5 = vld [vmem:[#allocation59_spill] sm:$0xff]  ;;  %v1022_v48 = vmul.f32 0.0625, %v3731_v50  ;;  %v7178_v50 = vmul.f32 0.0625, %v6738_v0 }
 0x12f   : > { %8197 = vst [vmem:[#allocation29_spill] sm:$0xff] %v7149_v32  ;;  %v1933_v53 = vmax.f32 %v927_v34, 0.0  ;;  %v862_v35 = vadd.f32 %v8200_v15, %v7149_v32  ;;  %v7162_v60 = vadd.f32 %v8202_v56, %v8201_v6  ;;  %4395 = vmatprep.subr.msk.mxu0 %vm2030_vm0, %v1949_v12  ;;  %v1965_v52 = vmax.f32 %v1055_v8, 0.0  ;;  %v8204_v34 = vld [vmem:[#allocation24_spill] sm:$0xff]  ;;  %v8206_v15 = vld [vmem:[#allocation37_spill] sm:$0xff]  ;;  %v3746_v12 = vld [vmem:[%s4675_s14 + $0x120] sm:$0xff] }
 0x130   : > { %v1981_v30 = vmax.f32 %v1071_v16, 0.0  ;;  %v990_v33 = vadd.f32 %v8205_v5, %v8204_v34  ;;  %v942_v7 = vadd.f32 %v7146_v39, %v878_v19  ;;  %v7173_v6 = vmul.f32 0.1875, %v4552_v9  ;;  %8208 = vst [vmem:[#allocation13_spill] sm:$0xff] %v7178_v50  ;;  %v3730_v19 = vld [vmem:[%s4675_s14 + $0x60] sm:$0xff]  ;;  %v8211_v39 = vld [vmem:[#allocation106_spill] sm:$0xff]  ;;  %v8212_v0 = vld [vmem:[#allocation64_spill] sm:$0xff] }
 0x131   : > { %8203 = vst [vmem:[#allocation93_spill] sm:$0xff] %v7162_v60  ;;  %4396 = vmatpush3.xpose.msk.msra.mxu0 %vm2030_vm0, %v1933_v53  ;;  %v926_v10 = vadd.f32 %v7152_v51, %v862_v35  ;;  %v1006_v56 = vadd.f32 %v7162_v60, %v8206_v15  ;;  %v4553_v53 = vld [vmem:[%s4675_s14 + $0x4a] sm:$0xff]  ;;  %v7184_v35 = vmul.f32 0.0625, %v6750_v20  ;;  %v8213_v51 = vld [vmem:[#allocation43_spill] sm:$0xff]  ;;  %v1037_v32 = vmul.f32 0.0625, %v3746_v12 }
 0x132   : > { %8207 = vst [vmem:[#allocation35_spill] sm:$0xff] %v7173_v6  ;;  %4429 = vmatprep.subr.msk.mxu1 %vm2030_vm0, %v1981_v30  ;;  %v1054_v16 = vadd.f32 %v1022_v48, %v990_v33  ;;  %v7181_v8 = vmul.f32 0.1875, %v4553_v53  ;;  %v1948_v34 = vmax.f32 %v942_v7, 0.0  ;;  %v877_v30 = vadd.f32 %v8211_v39, %v7173_v6  ;;  %v427_v33 = vld [vmem:[%s4675_s14 + $0xe2] sm:$0xff]  ;;  %v8217_v39 = vld [vmem:[#allocation62_spill] sm:$0xff] }
 0x133   : > { %8210 = vst [vmem:[#allocation12_spill] sm:$0xff] %v7184_v35  ;;  %4430 = vmatpush3.xpose.msk.msra.mxu1 %vm2030_vm0, %v1965_v52  ;;  %v1932_v15 = vmax.f32 %v926_v10, 0.0  ;;  %v1070_v9 = vadd.f32 %v1038_v1, %v1006_v56  ;;  %v8214_v5 = vld [vmem:[#allocation40_spill] sm:$0xff]  ;;  %v8216_v7 = vld [vmem:[#allocation3_spill] sm:$0xff]  ;;  %v1021_v56 = vmul.f32 0.0625, %v3730_v19 }
 0x134   : > { %8209 = vst [vmem:[#allocation100_spill] sm:$0xff] %v7181_v8  ;;  %v1964_v48 = vmax.f32 %v1054_v16, 0.0  ;;  %v861_v53 = vadd.f32 %v8212_v0, %v7181_v8  ;;  %v7195_v20 = vadd.f32 %v8214_v5, %v8213_v51  ;;  %v411_v60 = vld [vmem:[%s4675_s14 + $0x22] sm:$0xff]  ;;  %4397 = vmatprep.subr.msk.mxu0 %vm2030_vm0, %v1948_v34  ;;  %v941_v52 = vadd.f32 %v7178_v50, %v877_v30  ;;  %v8218_v0 = vld [vmem:[#allocation46_spill] sm:$0xff] }
 0x135   : > { %v1980_v1 = vmax.f32 %v1070_v9, 0.0  ;;  %v989_v10 = vadd.f32 %v8217_v39, %v8216_v7  ;;  %4398 = vmatpush3.xpose.msk.msra.mxu0 %vm2030_vm0, %v1932_v15  ;;  %v4554_v5 = vld [vmem:[%s4675_s14 + $0xfa] sm:$0xff]  ;;  %v908_v34 = vmul.f32 0.0625, %v427_v33  ;;  %v3745_v9 = vld [vmem:[%s4675_s14 + $0x110] sm:$0xff]  ;;  %v892_v15 = vmul.f32 0.0625, %v411_v60  ;;  %v8223_v8 = vld [vmem:[#allocation44_spill] sm:$0xff] }
 0x136   : > { %8215 = vst [vmem:[#allocation32_spill] sm:$0xff] %v7195_v20  ;;  %v925_v16 = vadd.f32 %v7184_v35, %v861_v53  ;;  %v1005_v51 = vadd.f32 %v7195_v20, %v8218_v0  ;;  %v7207_v12 = vmul.f32 0.1875, %v4554_v5  ;;  %v1947_v30 = vmax.f32 %v941_v52, 0.0  ;;  %v4555_v7 = vld [vmem:[%s4675_s14 + $0x3a] sm:$0xff]  ;;  %v3729_v39 = vld [vmem:[%s4675_s14 + $0x50] sm:$0xff]  ;;  %v424_v36 = vld [vmem:[%s4675_s14 + $0xc2] sm:$0xff] }
 0x137   : > { %4431 = vmatprep.subr.msk.mxu1 %vm2030_vm0, %v1980_v1  ;;  %v1053_v50 = vadd.f32 %v1021_v56, %v989_v10  ;;  %v7212_v19 = vmul.f32 0.1875, %v4555_v7  ;;  %v8221_v35 = vld [vmem:[#allocation34_spill] sm:$0xff]  ;;  %v8222_v33 = vld [vmem:[#allocation51_spill] sm:$0xff]  ;;  %v8228_v7 = vld [vmem:[#allocation53_spill] sm:$0xff] }
 0x138   : > { %8219 = vst [vmem:[#allocation92_spill] sm:$0xff] %v7207_v12  ;;  %4432 = vmatpush3.xpose.msk.msra.mxu1 %vm2030_vm0, %v1964_v48  ;;  %v1931_v53 = vmax.f32 %v925_v16, 0.0  ;;  %v1069_v0 = vadd.f32 %v1037_v32, %v1005_v51  ;;  %v876_v5 = vadd.f32 %v8221_v35, %v7207_v12  ;;  %v7220_v20 = vadd.f32 %v8223_v8, %v8222_v33  ;;  %v426_v1 = vld [vmem:[%s4675_s14 + $0xda] sm:$0xff]  ;;  %v8227_v32 = vld [vmem:[#allocation68_spill] sm:$0xff] }
 0x139   : > { %8220 = vst [vmem:[#allocation27_spill] sm:$0xff] %v7212_v19  ;;  %4399 = vmatprep.subr.msk.mxu0 %vm2030_vm0, %v1947_v30  ;;  %v1963_v52 = vmax.f32 %v1053_v50, 0.0  ;;  %v8225_v60 = vld [vmem:[#allocation67_spill] sm:$0xff]  ;;  %v1036_v48 = vmul.f32 0.0625, %v3745_v9  ;;  %v1020_v12 = vmul.f32 0.0625, %v3729_v39  ;;  %v4556_v50 = vld [vmem:[%s4675_s14 + $0xf2] sm:$0xff] }
 0x13a   : > { %8224 = vst [vmem:[#allocation104_spill] sm:$0xff] %v7220_v20  ;;  %v860_v10 = vadd.f32 %v8225_v60, %v7212_v19  ;;  %v8226_v56 = vld [vmem:[#allocation87_spill] sm:$0xff]  ;;  %4400 = vmatpush3.xpose.msk.msra.mxu0 %vm2030_vm0, %v1931_v53  ;;  %v1979_v35 = vmax.f32 %v1069_v0, 0.0  ;;  %v940_v8 = vadd.f32 %v908_v34, %v876_v5  ;;  %v1004_v33 = vadd.f32 %v7220_v20, %v8228_v7  ;;  %v4557_v9 = vld [vmem:[%s4675_s14 + $0x32] sm:$0xff] }
 0x13b   : > { %v988_v16 = vadd.f32 %v8227_v32, %v8226_v56  ;;  %v410_v51 = vld [vmem:[%s4675_s14 + $0x1a] sm:$0xff]  ;;  %v7233_v6 = vmul.f32 0.1875, %v4556_v50  ;;  %v907_v60 = vmul.f32 0.0625, %v426_v1  ;;  %v7236_v19 = vmul.f32 0.1875, %v4557_v9  ;;  %v3744_v56 = vld [vmem:[%s4675_s14 + $0x108] sm:$0xff]  ;;  %v8233_v50 = vld [vmem:[#allocation57_spill] sm:$0xff] }
 0x13c   : > { %v924_v30 = vadd.f32 %v892_v15, %v860_v10  ;;  %4433 = vmatprep.subr.msk.mxu1 %vm2030_vm0, %v1979_v35  ;;  %v1946_v53 = vmax.f32 %v940_v8, 0.0  ;;  %v1068_v0 = vadd.f32 %v1036_v48, %v1004_v33  ;;  %v891_v5 = vmul.f32 0.0625, %v410_v51  ;;  %v3728_v32 = vld [vmem:[%s4675_s14 + $0x48] sm:$0xff]  ;;  %v8231_v15 = vld [vmem:[#allocation111_spill] sm:$0xff]  ;;  %v8234_v9 = vld [vmem:[#allocation50_spill] sm:$0xff] }
 0x13d   : > { %8229 = vst [vmem:[#allocation16_spill] sm:$0xff] %v7233_v6  ;;  %8230 = vst [vmem:[#allocation38_spill] sm:$0xff] %v7236_v19  ;;  %v1052_v34 = vadd.f32 %v1020_v12, %v988_v16  ;;  %4434 = vmatpush3.xpose.msk.msra.mxu1 %vm2030_vm0, %v1963_v52  ;;  %v875_v10 = vadd.f32 %v8231_v15, %v7233_v6  ;;  %v8232_v1 = vld [vmem:[#allocation72_spill] sm:$0xff]  ;;  %v7248_v20 = vadd.f32 %v8234_v9, %v8233_v50  ;;  %v8236_v51 = vld [vmem:[#allocation61_spill] sm:$0xff] }
 0x13e   : > { %v1930_v39 = vmax.f32 %v924_v30, 0.0  ;;  %v859_v7 = vadd.f32 %v8232_v1, %v7236_v19  ;;  %v425_v35 = vld [vmem:[%s4675_s14 + $0xca] sm:$0xff]  ;;  %4401 = vmatprep.subr.msk.mxu0 %vm2030_vm0, %v1946_v53  ;;  %v1978_v12 = vmax.f32 %v1068_v0, 0.0  ;;  %v1035_v16 = vmul.f32 0.0625, %v3744_v56  ;;  %v8237_v8 = vld [vmem:[#allocation70_spill] sm:$0xff]  ;;  %v7261_v6 = vld [vmem:[%s4675_s14 + $0xe2] sm:$0xff] }
 0x13f   : > { %8235 = vst [vmem:[#allocation8_spill] sm:$0xff] %v7248_v20  ;;  %v409_v48 = vld [vmem:[%s4675_s14 + $0xa] sm:$0xff]  ;;  %v1962_v52 = vmax.f32 %v1052_v34, 0.0  ;;  %v987_v33 = vadd.f32 %v8237_v8, %v8236_v51  ;;  %v939_v30 = vadd.f32 %v907_v60, %v875_v10  ;;  %v8238_v1 = vld [vmem:[#allocation110_spill] sm:$0xff]  ;;  %v1019_v9 = vmul.f32 0.0625, %v3728_v32  ;;  %v4559_v0 = vld [vmem:[%s4675_s14 + $0x22] sm:$0xff] }
 0x140   : > { %4402 = vmatpush3.xpose.msk.msra.mxu0 %vm2030_vm0, %v1930_v39  ;;  %v923_v15 = vadd.f32 %v891_v5, %v859_v7  ;;  %v1003_v50 = vadd.f32 %v7248_v20, %v8238_v1  ;;  %v3743_v19 = vld [vmem:[%s4675_s14 + $0xf8] sm:$0xff]  ;;  %4435 = vmatprep.subr.msk.mxu1 %vm2030_vm0, %v1978_v12  ;;  %v7264_v53 = vmul.f32 0.1875, %v7261_v6  ;;  %v906_v56 = vmul.f32 0.0625, %v425_v35  ;;  %v8241_v12 = vld [vmem:[#allocation109_spill] sm:$0xff]  ;;  %v8242_v1 = vld [vmem:[#allocation75_spill] sm:$0xff] }
 0x141   : > { %v7267_v34 = vmul.f32 0.1875, %v4559_v0  ;;  %v890_v60 = vmul.f32 0.0625, %v409_v48  ;;  %v3727_v5 = vld [vmem:[%s4675_s14 + $0x38] sm:$0xff]  ;;  %4436 = vmatpush3.xpose.msk.msra.mxu1 %vm2030_vm0, %v1962_v52  ;;  %v1945_v39 = vmax.f32 %v939_v30, 0.0  ;;  %v1051_v7 = vadd.f32 %v1019_v9, %v987_v33  ;;  %v8243_v20 = vld [vmem:[#allocation63_spill] sm:$0xff]  ;;  %v8245_v33 = vld [vmem:[#allocation65_spill] sm:$0xff] }
 0x142   : > { %8239 = vst [vmem:[#allocation15_spill] sm:$0xff] %v7264_v53  ;;  %v1929_v32 = vmax.f32 %v923_v15, 0.0  ;;  %v1067_v10 = vadd.f32 %v1035_v16, %v1003_v50  ;;  %v874_v51 = vadd.f32 %v8241_v12, %v7264_v53  ;;  %v8244_v35 = vld [vmem:[#allocation54_spill] sm:$0xff]  ;;  %v1034_v48 = vmul.f32 0.0625, %v3743_v19  ;;  %v408_v23 = vld [vmem:[%s4675_s14 + $0x2] sm:$0xff]  ;;  %v3742_v53 = vld [vmem:[%s4675_s14 + $0xf0] sm:$0xff] }
 0x143   : > { %8240 = vst [vmem:[#allocation89_spill] sm:$0xff] %v7267_v34  ;;  %v858_v8 = vadd.f32 %v8242_v1, %v7267_v34  ;;  %v7277_v0 = vadd.f32 %v8244_v35, %v8243_v20  ;;  %4403 = vmatprep.subr.msk.mxu0 %vm2030_vm0, %v1945_v39  ;;  %v1961_v16 = vmax.f32 %v1051_v7, 0.0  ;;  %v8246_v30 = vld [vmem:[#allocation76_spill] sm:$0xff]  ;;  %v1018_v50 = vmul.f32 0.0625, %v3727_v5  ;;  %v4560_v19 = vld [vmem:[%s4675_s14 + $0xda] sm:$0xff]  ;;  %v3726_v5 = vld [vmem:[%s4675_s14 + $0x30] sm:$0xff] }
 0x144   : > { %v1977_v52 = vmax.f32 %v1067_v10, 0.0  ;;  %v986_v15 = vadd.f32 %v8246_v30, %v8245_v33  ;;  %4404 = vmatpush3.xpose.msk.msra.mxu0 %vm2030_vm0, %v1929_v32  ;;  %v938_v9 = vadd.f32 %v906_v56, %v874_v51  ;;  %v8247_v1 = vld [vmem:[#allocation108_spill] sm:$0xff]  ;;  %v7288_v35 = vmul.f32 0.1875, %v4560_v19  ;;  %v4561_v7 = vld [vmem:[%s4675_s14 + $0x1a] sm:$0xff] }
 0x145   : > { %v922_v12 = vadd.f32 %v890_v60, %v858_v8  ;;  %v1002_v20 = vadd.f32 %v7277_v0, %v8247_v1  ;;  %v905_v10 = vmul.f32 0.0625, %v424_v36  ;;  %v7293_v34 = vmul.f32 0.1875, %v4561_v7  ;;  %v8248_v36 = vld [vmem:[#allocation60_spill] sm:$0xff] }
 0x146   : > { %4437 = vmatprep.subr.msk.mxu1 %vm2030_vm0, %v1977_v52  ;;  %v1050_v39 = vadd.f32 %v1018_v50, %v986_v15  ;;  %v889_v33 = vmul.f32 0.0625, %v408_v23  ;;  %v1944_v56 = vmax.f32 %v938_v9, 0.0  ;;  %v873_v32 = vadd.f32 %v6797_v28, %v7288_v35  ;;  %v8249_v9 = vld [vmem:[#allocation80_spill] sm:$0xff] }
 0x147   : > { %4438 = vmatpush3.xpose.msk.msra.mxu1 %vm2030_vm0, %v1961_v16  ;;  %v1928_v8 = vmax.f32 %v922_v12, 0.0  ;;  %v1066_v60 = vadd.f32 %v1034_v48, %v1002_v20  ;;  %v857_v52 = vadd.f32 %v8099_v58, %v7293_v34  ;;  %v7303_v15 = vadd.f32 %v8248_v36, %v6784_v11  ;;  %v4562_v58 = vld [vmem:[%s4675_s14 + $0x1a2] sm:$0xff] }
 0x148   : > { %v1960_v51 = vmax.f32 %v1050_v39, 0.0  ;;  %v1033_v50 = vmul.f32 0.0625, %v3742_v53  ;;  %4405 = vmatprep.subr.msk.mxu0 %vm2030_vm0, %v1944_v56  ;;  %v937_v16 = vadd.f32 %v905_v10, %v873_v32  ;;  %v985_v12 = vadd.f32 %v8249_v9, %v6793_v40 }
 0x149   : > { %v1976_v23 = vmax.f32 %v1066_v60, 0.0  ;;  %v1017_v48 = vmul.f32 0.0625, %v3726_v5  ;;  %4406 = vmatpush3.xpose.msk.msra.mxu0 %vm2030_vm0, %v1928_v8  ;;  %v921_v28 = vadd.f32 %v889_v33, %v857_v52  ;;  %v1001_v1 = vadd.f32 %v7303_v15, %v6788_v27 }
 0x14a   : > { %v1112_v11 = vadd.f32 %v6835_v44, %v6803_v13  ;;  %v1144_v53 = vmul.f32 0.0625, %v4562_v58  ;;  %v1943_v20 = vmax.f32 %v937_v16, 0.0  ;;  %v1096_v40 = vadd.f32 %v8105_v26, %v6816_v4  ;;  %v4563_v44 = vld [vmem:[%s4675_s14 + $0x19a] sm:$0xff] }
 0x14b   : > { %4439 = vmatprep.subr.msk.mxu1 %vm2030_vm0, %v1976_v23  ;;  %v1049_v39 = vadd.f32 %v1017_v48, %v985_v12  ;;  %v1927_v10 = vmax.f32 %v921_v28, 0.0  ;;  %v1065_v7 = vadd.f32 %v1033_v50, %v1001_v1  ;;  %v1128_v27 = vmul.f32 0.0625, %v7261_v6  ;;  %v8251_v1 = vld [vmem:[#allocation77_spill] sm:$0xff]  ;;  %v8255_v58 = vld [vmem:[#allocation6_spill] sm:$0xff] }
 0x14c   : > { %4440 = vmatpush3.xpose.msk.msra.mxu1 %vm2030_vm0, %v1960_v51  ;;  %v1176_v33 = vadd.f32 %v1144_v53, %v1112_v11  ;;  %4407 = vmatprep.subr.msk.mxu0 %vm2030_vm0, %v1943_v20  ;;  %v1111_v13 = vadd.f32 %v6879_v38, %v6841_v61  ;;  %v1143_v56 = vmul.f32 0.0625, %v4563_v44  ;;  %v1095_v26 = vadd.f32 %v8110_v22, %v6856_v43  ;;  %v8253_v11 = vld [vmem:[#allocation14_spill] sm:$0xff]  ;;  %v8257_v53 = vld [vmem:[#allocation113_spill] sm:$0xff] }
 0x14d   : > { %v1959_v5 = vmax.f32 %v1049_v39, 0.0  ;;  %4408 = vmatpush3.xpose.msk.msra.mxu0 %vm2030_vm0, %v1927_v10  ;;  %v1975_v8 = vmax.f32 %v1065_v7, 0.0  ;;  %v1160_v4 = vadd.f32 %v1128_v27, %v1096_v40  ;;  %v1127_v51 = vmul.f32 0.0625, %v4560_v19  ;;  %v8258_v39 = vld [vmem:[#allocation5_spill] sm:$0xff]  ;;  %v8261_v7 = vld [vmem:[#allocation96_spill] sm:$0xff]  ;;  %v8263_v44 = vld [vmem:[#allocation10_spill] sm:$0xff] }
 0x14e   : > { %v2022_v60 = vmax.f32 %v1176_v33, 0.0  ;;  %v1175_v32 = vadd.f32 %v1143_v56, %v1111_v13  ;;  %v1110_v6 = vadd.f32 %v6902_v42, %v6872_v41  ;;  %v1142_v52 = vmul.f32 0.0625, %v6800_v14  ;;  %v7340_v14 = vld [vmem:[%s7494_s2] sm:$0xff]  ;;  %v8259_v40 = vld [vmem:[#allocation49_spill] sm:$0xff]  ;;  %v8264_v56 = vld [vmem:[#allocation52_spill] sm:$0xff] }
 0x14f   : > { %4441 = vmatprep.subr.msk.mxu1 %vm2030_vm0, %v1975_v8  ;;  %v2006_v61 = vmax.f32 %v1160_v4, 0.0  ;;  %v1094_v38 = vadd.f32 %v8114_v54, %v6882_v55  ;;  %v1126_v36 = vmul.f32 0.0625, %v6813_v31  ;;  %v1109_v43 = vadd.f32 %v6936_v49, %v6913_v37  ;;  %v4565_v37 = vld [vmem:[%s4675_s14 + $0xc2] sm:$0xff]  ;;  %v8266_v4 = vld [vmem:[#allocation93_spill] sm:$0xff]  ;;  %s238_s14 = sand.u32 1, %s4580_s21   ;;  %s4172_s21 = sshll.u32 (%p4652_p4), %s4640_s24, 4 }
 0x150   : > { %4445 = vmatprep.subr.msk.mxu0 %vm2030_vm0, %v2022_v60  ;;  %4442 = vmatpush3.xpose.msk.msra.mxu1 %vm2030_vm0, %v1959_v5  ;;  %v2021_v22 = vmax.f32 %v1175_v32, 0.0  ;;  %v1159_v41 = vadd.f32 %v1127_v51, %v1095_v26  ;;  %v1174_v42 = vadd.f32 %v1142_v52, %v1110_v6  ;;  %v1141_v55 = vmul.f32 0.0625, %v6838_v46  ;;  %v8262_v5 = vld [vmem:[#allocation69_spill] sm:$0xff]  ;;  %v8265_v60 = vld [vmem:[#allocation28_spill] sm:$0xff]  ;;  %v8268_v51 = vld [vmem:[#allocation59_spill] sm:$0xff]  ;;  %s3660_s15 = sshll.u32 %s238_s14, 6  ;;  %s3573_s19 = scalar_lea.vmem (%p4652_p4), %s7498_s6, %s4172_s21 }
 0x151   : > { %4410 = vmatmul.mubr.msk.f32.vlgmr.msra.gmra.mxu0 %vm2030_vm0, %v7340_v14  ;;  %v1158_v31 = vadd.f32 %v1126_v36, %v1094_v38  ;;  %v1093_v54 = vadd.f32 %v8122_v25, %v6923_v63  ;;  %v1125_v49 = vmul.f32 0.0625, %v4565_v37  ;;  %v1108_v19 = vadd.f32 %v6967_v45, %v6948_v18  ;;  %v8267_v32 = vld [vmem:[#allocation29_spill] sm:$0xff]  ;;  %v8270_v36 = vld [vmem:[#allocation35_spill] sm:$0xff]  ;;  %v8275_v37 = vld [vmem:[#allocation62_spill] sm:$0xff]  ;;  %s7458_s16 = scalar_lea.vmem [#allocation2], %s3660_s15 }
 0x152   : > { %4446 = vmatpush3.xpose.msk.msra.mxu0 %vm2030_vm0, %v2006_v61  ;;  %4477 = vmatprep.mubr.msk.f32.mxu0 %vm2030_vm0, %v7340_v14  ;;  %v2005_v50 = vmax.f32 %v1159_v41, 0.0  ;;  %v2020_v23 = vmax.f32 %v1174_v42, 0.0  ;;  %v1173_v16 = vadd.f32 %v1141_v55, %v1109_v43  ;;  %v1092_v46 = vadd.f32 %v8131_v24, %v6957_v3  ;;  %v8250_v24 = vld [vmem:[#allocation66_spill] sm:$0xff]  ;;  %v8271_v43 = vld [vmem:[#allocation32_spill] sm:$0xff]  ;;  %v8273_v55 = vld [vmem:[#allocation11_spill] sm:$0xff] }
 0x153   : > { %4447 = vmatprep.subr.msk.mxu0 %vm2030_vm0, %v2021_v22  ;;  %4444 = vmatmul.mubr.msk.f32.vlgmr.msra.gmra.mxu1 %vm2030_vm0, %v7340_v14  ;;  %v1107_v63 = vadd.f32 %v7001_v2, %v6981_v59  ;;  %v1091_v25 = vadd.f32 %v8140_v17, %v6987_v57  ;;  %v1106_v18 = vadd.f32 %v7034_v47, %v7015_v29  ;;  %v2004_v45 = vmax.f32 %v1158_v31, 0.0  ;;  %v8252_v2 = vld [vmem:[#allocation19_spill] sm:$0xff]  ;;  %v8254_v57 = vld [vmem:[#allocation42_spill] sm:$0xff]  ;;  %v8256_v47 = vld [vmem:[#allocation88_spill] sm:$0xff] }
 0x154   : > { %v1157_v12 = vadd.f32 %v1125_v49, %v1093_v54  ;;  %v1090_v48 = vadd.f32 %v8151_v21, %v7021_v62  ;;  %v2019_v3 = vmax.f32 %v1173_v16, 0.0  ;;  %v1172_v28 = vadd.f32 %v1108_v19, %v8250_v24  ;;  %v8260_v21 = vld [vmem:[#allocation25_spill] sm:$0xff]  ;;  %v8269_v61 = vld [vmem:[#allocation86_spill] sm:$0xff]  ;;  %v8274_v54 = vld [vmem:[#allocation100_spill] sm:$0xff] }
 0x155   : > { %v1105_v59 = vadd.f32 %v8252_v2, %v8251_v1  ;;  %v1089_v17 = vadd.f32 %v8254_v57, %v8253_v11  ;;  %v1104_v29 = vadd.f32 %v8256_v47, %v8255_v58  ;;  %v1156_v20 = vadd.f32 %v1092_v46, %v8257_v53  ;;  %v8272_v41 = vld [vmem:[#allocation114_spill] sm:$0xff]  ;;  %v8276_v19 = vld [vmem:[#allocation92_spill] sm:$0xff]  ;;  %v8278_v46 = vld [vmem:[#allocation71_spill] sm:$0xff] }
 0x156   : > { %4448 = vmatpush3.xpose.msk.msra.mxu0 %vm2030_vm0, %v2005_v50  ;;  %v1088_v10 = vadd.f32 %v8259_v40, %v8258_v39  ;;  %v2003_v62 = vmax.f32 %v1157_v12, 0.0  ;;  %v1103_v33 = vadd.f32 %v8261_v7, %v8260_v21  ;;  %v2018_v27 = vmax.f32 %v1172_v28, 0.0  ;;  %v8277_v50 = vld [vmem:[#allocation104_spill] sm:$0xff]  ;;  %v8282_v1 = vld [vmem:[#allocation90_spill] sm:$0xff]  ;;  %v8289_v21 = vld [vmem:[#allocation115_spill] sm:$0xff] }
 0x157   : > { %4449 = vmatprep.subr.msk.mxu0 %vm2030_vm0, %v2020_v23  ;;  %v1171_v13 = vadd.f32 %v1107_v63, %v8262_v5  ;;  %v1087_v8 = vadd.f32 %v8264_v56, %v8263_v44  ;;  %v1102_v26 = vadd.f32 %v8266_v4, %v8265_v60  ;;  %v1086_v6 = vadd.f32 %v8268_v51, %v8267_v32  ;;  %v8281_v24 = vld [vmem:[#allocation68_spill] sm:$0xff]  ;;  %v8283_v2 = vld [vmem:[#allocation22_spill] sm:$0xff]  ;;  %v8292_v60 = vld [vmem:[#allocation73_spill] sm:$0xff] }
 0x158   : > { %v2002_v52 = vmax.f32 %v1156_v20, 0.0  ;;  %v1101_v22 = vadd.f32 %v8271_v43, %v8270_v36  ;;  %v1155_v42 = vadd.f32 %v1091_v25, %v8272_v41  ;;  %v1085_v49 = vadd.f32 %v8275_v37, %v8274_v54  ;;  %v8284_v57 = vld [vmem:[#allocation16_spill] sm:$0xff]  ;;  %v8286_v53 = vld [vmem:[#allocation94_spill] sm:$0xff]  ;;  %v8294_v51 = vld [vmem:[#allocation7_spill] sm:$0xff] }
 0x159   : > { %v1166_v38 = vadd.f32 %v1102_v26, %v8269_v61  ;;  %v1150_v31 = vadd.f32 %v1086_v6, %v8273_v55  ;;  %v1100_v23 = vadd.f32 %v8277_v50, %v8276_v19  ;;  %v2017_v16 = vmax.f32 %v1171_v13, 0.0  ;;  %v8285_v58 = vld [vmem:[#allocation8_spill] sm:$0xff]  ;;  %v8287_v39 = vld [vmem:[#allocation38_spill] sm:$0xff]  ;;  %v8291_v13 = vld [vmem:[#allocation89_spill] sm:$0xff] }
 0x15a   : > { %4450 = vmatpush3.xpose.msk.msra.mxu0 %vm2030_vm0, %v2004_v45  ;;  %v1170_v63 = vadd.f32 %v1106_v18, %v8278_v46  ;;  %v8279_v45 = vld [vmem:[#allocation20_spill] sm:$0xff]  ;;  %v1149_v25 = vadd.f32 %v1085_v49, %v8282_v1  ;;  %v1099_v47 = vadd.f32 %v8285_v58, %v8284_v57  ;;  %v8288_v40 = vld [vmem:[#allocation70_spill] sm:$0xff]  ;;  %v2001_v18 = vmax.f32 %v1155_v42, 0.0  ;;  %v8293_v26 = vld [vmem:[#allocation85_spill] sm:$0xff]  ;;  %v2196_v58 = vpop.f32.mrf.mxu0 }
 0x15b   : > { %4451 = vmatprep.subr.msk.mxu0 %vm2030_vm0, %v2019_v3  ;;  %v1165_v12 = vadd.f32 %v1101_v22, %v8279_v45  ;;  %v8280_v3 = vld [vmem:[#allocation27_spill] sm:$0xff]  ;;  %v1164_v11 = vadd.f32 %v1100_v23, %v8283_v2  ;;  %v1154_v7 = vadd.f32 %v1090_v48, %v8289_v21  ;;  %v1082_v44 = vadd.f32 %v8246_v30, %v8291_v13  ;;  %v8295_v61 = vld [vmem:[#allocation112_spill] sm:$0xff]  ;;  %v8297_v41 = vld [vmem:[#allocation74_spill] sm:$0xff] }
 0x15c   : > { %v1084_v28 = vadd.f32 %v8281_v24, %v8280_v3  ;;  %v2016_v56 = vmax.f32 %v1170_v63, 0.0  ;;  %v1169_v4 = vadd.f32 %v1105_v59, %v8292_v60  ;;  %v1153_v36 = vadd.f32 %v1089_v17, %v8295_v61  ;;  %v8296_v43 = vld [vmem:[#allocation12_spill] sm:$0xff]  ;;  %v8298_v55 = vld [vmem:[#allocation82_spill] sm:$0xff]  ;;  %v8300_v49 = vld [vmem:[#allocation9_spill] sm:$0xff] }
 0x15d   : > { %v1146_v6 = vadd.f32 %v1082_v44, %v8294_v51  ;;  %v2000_v48 = vmax.f32 %v1154_v7, 0.0  ;;  %v1168_v42 = vadd.f32 %v1104_v29, %v8297_v41  ;;  %v1152_v54 = vadd.f32 %v1088_v10, %v8298_v55  ;;  %v8301_v46 = vld [vmem:[#allocation15_spill] sm:$0xff]  ;;  %v8302_v3 = vld [vmem:[#allocation81_spill] sm:$0xff] }
 0x15e   : > { %4452 = vmatpush3.xpose.msk.msra.mxu0 %vm2030_vm0, %v2003_v62  ;;  %v1148_v20 = vadd.f32 %v1084_v28, %v8286_v53  ;;  %v1083_v62 = vadd.f32 %v8288_v40, %v8287_v39  ;;  %v2015_v30 = vmax.f32 %v1169_v4, 0.0  ;;  %v1999_v59 = vmax.f32 %v1153_v36, 0.0  ;;  %v8303_v1 = vld [vmem:[#allocation13_spill] sm:$0xff]  ;;  %v2028_v53 = vpop.permute.xlu0 %2027 }
 0x15f   : > { %4453 = vmatprep.subr.msk.mxu0 %vm2030_vm0, %v2018_v27  ;;  %v8290_v27 = vld [vmem:[#allocation84_spill] sm:$0xff]  ;;  %v1998_v17 = vmax.f32 %v1152_v54, 0.0  ;;  %v1151_v19 = vadd.f32 %v1087_v8, %v8300_v49  ;;  %v2012_v23 = vmax.f32 %v1166_v38, 0.0  ;;  %v1996_v10 = vmax.f32 %v1150_v31, 0.0 }
 0x160   : > { %v1163_v5 = vadd.f32 %v1099_v47, %v8290_v27  ;;  %v1147_v32 = vadd.f32 %v1083_v62, %v8293_v26  ;;  %v2010_v8 = vmax.f32 %v1164_v11, 0.0  ;;  %v1098_v63 = vadd.f32 %v7277_v0, %v8301_v46 }
 0x161   : > { %v1997_v29 = vmax.f32 %v1151_v19, 0.0  ;;  %v1994_v45 = vmax.f32 %v1148_v20, 0.0  ;;  %v2198_v20 = vpop.f32.mrf.mxu0  ;;  %v2197_v40 = vadd.f32 %v2196_v58, %v2028_v53 }
 0x162   : > { %4454 = vmatpush3.xpose.msk.msra.mxu0 %vm2030_vm0, %v2002_v52  ;;  %v1081_v52 = vadd.f32 %v8249_v9, %v7293_v34  ;;  %v2014_v34 = vmax.f32 %v1168_v42, 0.0  ;;  %v8299_v9 = vld [vmem:[#allocation83_spill] sm:$0xff]  ;;  %v2009_v38 = vmax.f32 %v1163_v5, 0.0  ;;  %v1162_v31 = vadd.f32 %v1098_v63, %v8302_v3 }
 0x163   : > { %4455 = vmatprep.subr.msk.mxu0 %vm2030_vm0, %v2017_v16  ;;  %v1167_v37 = vadd.f32 %v1103_v33, %v8299_v9  ;;  %v2011_v33 = vmax.f32 %v1165_v12, 0.0  ;;  %v1995_v16 = vmax.f32 %v1149_v25, 0.0  ;;  %v1097_v12 = vadd.f32 %v7303_v15, %v7288_v35  ;;  %v2656_v35 = vpop.f32.mrf.mxu1  ;;  %v2727_v5 = vpop.f32.mrf.mxu0 }
 0x164   : > { %v1145_v22 = vadd.f32 %v1081_v52, %v8296_v43  ;;  %v1993_v24 = vmax.f32 %v1147_v32, 0.0  ;;  %v2008_v28 = vmax.f32 %v1162_v31, 0.0  ;;  %v1992_v25 = vmax.f32 %v1146_v6, 0.0 }
 0x165   : > { %v2013_v50 = vmax.f32 %v1167_v37, 0.0  ;;  %v1161_v0 = vadd.f32 %v1097_v12, %v8303_v1  ;;  %v2658_v15 = vpop.f32.mrf.mxu1  ;;  %v2199_v21 = vadd.f32 %v2198_v20, %v2028_v53  ;;  %v2729_v13 = vpop.f32.mrf.mxu0 }
 0x166   : > { %4456 = vmatpush3.xpose.msk.msra.mxu0 %vm2030_vm0, %v2001_v18  ;;  %v1991_v11 = vmax.f32 %v1145_v22, 0.0 }
 0x167   : > { %4457 = vmatprep.subr.msk.mxu0 %vm2030_vm0, %v2016_v56  ;;  %v2007_v2 = vmax.f32 %v1161_v0, 0.0  ;;  %v2798_v57 = vpop.f32.mrf.mxu1 }
 0x169   : > { %v2800_v47 = vpop.f32.mrf.mxu1 }
 0x16a   : > { %4458 = vmatpush3.xpose.msk.msra.mxu0 %vm2030_vm0, %v2000_v48 }
 0x16b   : > { %4459 = vmatprep.subr.msk.mxu0 %vm2030_vm0, %v2015_v30 }
 0x16e   : > { %4460 = vmatpush3.xpose.msk.msra.mxu0 %vm2030_vm0, %v1999_v59 }
 0x16f   : > { %4461 = vmatprep.subr.msk.mxu0 %vm2030_vm0, %v2014_v34 }
 0x172   : > { %4462 = vmatpush3.xpose.msk.msra.mxu0 %vm2030_vm0, %v1998_v17 }
 0x173   : > { %4463 = vmatprep.subr.msk.mxu0 %vm2030_vm0, %v2013_v50 }
 0x176   : > { %4464 = vmatpush3.xpose.msk.msra.mxu0 %vm2030_vm0, %v1997_v29 }
 0x177   : > { %4465 = vmatprep.subr.msk.mxu0 %vm2030_vm0, %v2012_v23 }
 0x17a   : > { %4466 = vmatpush3.xpose.msk.msra.mxu0 %vm2030_vm0, %v1996_v10 }
 0x17b   : > { %4467 = vmatprep.subr.msk.mxu0 %vm2030_vm0, %v2011_v33 }
 0x17e   : > { %4468 = vmatpush3.xpose.msk.msra.mxu0 %vm2030_vm0, %v1995_v16 }
 0x17f   : > { %4469 = vmatprep.subr.msk.mxu0 %vm2030_vm0, %v2010_v8 }
 0x182   : > { %4470 = vmatpush3.xpose.msk.msra.mxu0 %vm2030_vm0, %v1994_v45 }
 0x183   : > { %4471 = vmatprep.subr.msk.mxu0 %vm2030_vm0, %v2009_v38 }
 0x186   : > { %4472 = vmatpush3.xpose.msk.msra.mxu0 %vm2030_vm0, %v1993_v24 }
 0x187   : > { %4473 = vmatprep.subr.msk.mxu0 %vm2030_vm0, %v2008_v28 }
 0x18a   : > { %4474 = vmatpush3.xpose.msk.msra.mxu0 %vm2030_vm0, %v1992_v25 }
 0x18b   : > { %4475 = vmatprep.subr.msk.mxu0 %vm2030_vm0, %v2007_v2 }
 0x18e   : > { %4476 = vmatpush3.xpose.msk.msra.mxu0 %vm2030_vm0, %v1991_v11 }
 0x191   : > { %4478 = vmatmul.mubr.msk.f32.vlgmr.msra.gmra.mxu0 %vm2030_vm0, %v7340_v14 }
 0x1c1   : > { %v2869_v44 = vpop.f32.mrf.mxu0 }
 0x1c3   : > { %v2871_v56 = vpop.f32.mrf.mxu0 }
 0x1c6   : > { %v3327_v39 = vpop.f32.mrf.mxu1 }
 0x1c7   : > { %v3328_v62 = vadd.f32 %v3327_v39, %v2656_v35 }
 0x1c8   : > { %v3329_v18 = vpop.f32.mrf.mxu1 }
 0x1c9   : > { %v3545_v7 = vadd.f32 %v3328_v62, %v2197_v40  ;;  %v3330_v27 = vadd.f32 %v3329_v18, %v2658_v15 }
 0x1cb   : > { %3547 = vst [vmem:[%s7458_s16] sm:$0xff] %v3545_v7  ;;  %v3546_v14 = vadd.f32 %v3330_v27, %v2199_v21 }
 0x1cd   : > { %3548 = vst [vmem:[%s7458_s16 + $0x8] sm:$0xff] %v3546_v14 }
 0x1d2   : > { %v3586_v34 = vld [vmem:[%s7458_s16] sm:$0xff] (%p4652_p4) }
 0x1d3   : > { %3587 = vst [vmem:[%s3573_s19] sm:$0xff] (%p4652_p4), %v3586_v34 }
 0x1d4   : > { %v3588_v9 = vld [vmem:[%s7458_s16 + $0x8] sm:$0xff] (%p4652_p4) }
 0x1d5   : > { %3589 = vst [vmem:[%s3573_s19 + $0x8] sm:$0xff] (%p4652_p4), %v3588_v9 }
 0x211   : > { %v3398_v60 = vpop.f32.mrf.mxu0 }
 0x212   : > { %v3399_v4 = vadd.f32 %v3398_v60, %v2727_v5 }
 0x213   : > { %v3400_v26 = vpop.f32.mrf.mxu0  ;;  %v3469_v6 = vpop.f32.mrf.mxu1 }
 0x214   : > { %v3549_v32 = vadd.f32 %v3399_v4, %v2197_v40  ;;  %v3401_v51 = vadd.f32 %v3400_v26, %v2729_v13  ;;  %v3470_v52 = vadd.f32 %v3469_v6, %v2798_v57 }
 0x215   : > { %v3471_v61 = vpop.f32.mrf.mxu1 }
 0x216   : > { %4161 = vst [vmem:[%s7458_s16 + $0x10] sm:$0xff] %v3549_v32  ;;  %v3550_v48 = vadd.f32 %v3401_v51, %v2199_v21  ;;  %v3554_v36 = vadd.f32 %v3470_v52, %v2197_v40  ;;  %v3472_v43 = vadd.f32 %v3471_v61, %v2800_v47 }
 0x218   : > { %4162 = vst [vmem:[%s7458_s16 + $0x18] sm:$0xff] %v3550_v48  ;;  %4163 = vst [vmem:[%s7458_s16 + $0x20] sm:$0xff] %v3554_v36  ;;  %v3555_v22 = vadd.f32 %v3472_v43, %v2199_v21 }
 0x21a   : > { %4164 = vst [vmem:[%s7458_s16 + $0x28] sm:$0xff] %v3555_v22 }
 0x21d   : > { %v3590_v37 = vld [vmem:[%s7458_s16 + $0x10] sm:$0xff] (%p4652_p4) }
 0x21e   : > { %3591 = vst [vmem:[%s3573_s19 + $0x20] sm:$0xff] (%p4652_p4), %v3590_v37 }
 0x21f   : > { %v3592_v17 = vld [vmem:[%s7458_s16 + $0x18] sm:$0xff] (%p4652_p4)  ;;  %v3594_v49 = vld [vmem:[%s7458_s16 + $0x20] sm:$0xff] (%p4652_p4) }
 0x220   : > { %3593 = vst [vmem:[%s3573_s19 + $0x28] sm:$0xff] (%p4652_p4), %v3592_v17  ;;  %3595 = vst [vmem:[%s3573_s19 + $0x40] sm:$0xff] (%p4652_p4), %v3594_v49 }
 0x221   : > { %v3596_v19 = vld [vmem:[%s7458_s16 + $0x28] sm:$0xff] (%p4652_p4) }
 0x222   : > { %3597 = vst [vmem:[%s3573_s19 + $0x48] sm:$0xff] (%p4652_p4), %v3596_v19 }
 0x251   : > { %v3540_v30 = vpop.f32.mrf.mxu0 }
 0x252   : > { %v3541_v41 = vadd.f32 %v3540_v30, %v2869_v44 }
 0x253   : > { %v3542_v42 = vpop.f32.mrf.mxu0 }
 0x254   : > { %v3559_v59 = vadd.f32 %v3541_v41, %v2197_v40  ;;  %v3543_v55 = vadd.f32 %v3542_v42, %v2871_v56  ;;  %3570 = sbr.rel (!%p4652_p4) target bundleno = 609 (0x261), region = 48 }
 0x256   : > { %4165 = vst [vmem:[%s7458_s16 + $0x30] sm:$0xff] %v3559_v59  ;;  %v3560_v54 = vadd.f32 %v3543_v55, %v2199_v21 }
 0x258   : > { %4166 = vst [vmem:[%s7458_s16 + $0x38] sm:$0xff] %v3560_v54 }
 0x25d   : > { %v3598_v50 = vld [vmem:[%s7458_s16 + $0x30] sm:$0xff] }
 0x25e   : > { %3599 = vst [vmem:[%s3573_s19 + $0x60] sm:$0xff] %v3598_v50 }
 0x25f   : > { %v3600_v29 = vld [vmem:[%s7458_s16 + $0x38] sm:$0xff] }
 0x260   : > { %3601 = vst [vmem:[%s3573_s19 + $0x68] sm:$0xff] %v3600_v29 }
 0x261 PF: > { %p13_p8 = scmp.ge.s32.totalorder %s4642_s25, 4   ;;  %s8304_s21 = smov %s4584_s22 }
 0x262   : > { %s8305_s22 = smov %s4650_s28  ;;  %s8306_s23 = smov %s4642_s25 }
 0x263   :  { %15 = sbr.rel (!%p13_p8) target bundleno = 2 (0x2), region = 102 }

</bundles_post_ra>
